<compile_context>
chip_gen: v5e
topology: v5e:2x2
jax: 0.10.0
libtpu: 0.0.40
codegen_flags: <defaults>
</compile_context>

<pallas_src>
import functools

import jax
import jax.numpy as jnp
from jax.experimental import pallas as pl
from jax.experimental.pallas import tpu as pltpu


# ------------------------------ Pallas kernel -------------------------------

def _rnn_maxpool_kernel(x_ref, mask_ref, *rest, seq_len, batch, hidden_dim,
                        n_layers, n_dirs):
    """Fused multi-layer (bi)LSTM + max-over-finals + Linear head.

    x_ref    : (S*B, E)          flattened embedded input, row = t*B + b
    mask_ref : (S*B, 1)  f32     1.0 where t < length(b) else 0.0
    per layer l (in rest): wih (Din_l, D*4H) [dir-major, gates i,f,g,o],
                           whh (D, H, 4H), b (1, D*4H)  (b_ih + b_hh)
    then: fc_w (H, O), fc_b (1, O), out_ref (B, O)
    scratch (only if n_layers > 1): two (S*B, D*H) VMEM ping-pong buffers.
    """
    S, B, H, D = seq_len, batch, hidden_dim, n_dirs
    w_refs = [rest[3 * l:3 * l + 3] for l in range(n_layers)]
    fc_w_ref, fc_b_ref, out_ref = rest[3 * n_layers:3 * n_layers + 3]
    y_bufs = rest[3 * n_layers + 3:]          # VMEM scratch (layer outputs)

    mask = mask_ref[...] != 0.0               # (S*B, 1) bool, loaded once

    finals = []
    for l in range(n_layers):
        wih_ref, whh_ref, b_ref = w_refs[l]
        x_l = x_ref[...] if l == 0 else y_bufs[(l - 1) % 2][...]

        # Hoisted input projection: whole sequence, all directions, one matmul.
        gx = (jnp.dot(x_l, wih_ref[...], preferred_element_type=jnp.float32)
              + b_ref[...])                   # (S*B, D*4H)

        whh = [whh_ref[d] for d in range(D)]  # recurrent weights, loaded once
        h = [jnp.zeros((B, H), jnp.float32) for _ in range(D)]
        c = [jnp.zeros((B, H), jnp.float32) for _ in range(D)]
        last = (l == n_layers - 1)

        for s in range(S):                    # statically unrolled time loop
            for d in range(D):
                t = s if d == 0 else S - 1 - s
                rows = slice(t * B, (t + 1) * B)
                g = (gx[rows, d * 4 * H:(d + 1) * 4 * H]
                     + jnp.dot(h[d], whh[d],
                               preferred_element_type=jnp.float32))  # (B, 4H)
                # Activations on the full 4H-lane vreg (EUP slot), then slice.
                sig = jax.nn.sigmoid(g)
                tnh = jnp.tanh(g)
                i_g = sig[:, 0:H]
                f_g = sig[:, H:2 * H]
                g_g = tnh[:, 2 * H:3 * H]
                o_g = sig[:, 3 * H:4 * H]
                c_new = f_g * c[d] + i_g * g_g
                h_new = o_g * jnp.tanh(c_new)
                m = mask[rows]                # (B, 1) bool
                # Packed-sequence emulation: frozen state on padded steps.
                h[d] = jnp.where(m, h_new, h[d])
                c[d] = jnp.where(m, c_new, c[d])
                if not last:
                    y_bufs[l % 2][rows, d * H:(d + 1) * H] = \
                        jnp.where(m, h_new, 0.0)
        finals.extend(h)

    # Head: elementwise max over (layer, direction) finals, then Linear.
    hmax = finals[0]
    for hf in finals[1:]:
        hmax = jnp.maximum(hmax, hf)
    out_ref[...] = (jnp.dot(hmax, fc_w_ref[...],
                            preferred_element_type=jnp.float32)
                    + fc_b_ref[...])


# -------------------------------- Wrapper ------------------------------------

def rnn_maxpool_classifier(text, text_lengths, params, *, n_layers,
                           bidirectional, hidden_dim):
    S, B = text.shape
    D = 2 if bidirectional else 1
    H = hidden_dim

    # Embedding lookup (glue, plain JAX). padding_idx row is zero in the table.
    emb = jnp.take(params["embedding"], text, axis=0)          # (S, B, E)
    E = emb.shape[-1]
    x_flat = emb.reshape(S * B, E)                             # row = t*B + b

    mask = (jnp.arange(S, dtype=jnp.int32)[:, None]
            < text_lengths[None, :]).astype(jnp.float32).reshape(S * B, 1)

    args = [x_flat, mask]
    for l in range(n_layers):
        wihs, whhs, bs = [], [], []
        for d in range(D):
            w_ih, w_hh, b = params["lstm"][(l, d)]
            wihs.append(w_ih)
            whhs.append(w_hh)
            bs.append(b)
        args.append(jnp.concatenate(wihs, axis=1))             # (Din_l, D*4H)
        args.append(jnp.stack(whhs, axis=0))                   # (D, H, 4H)
        args.append(jnp.concatenate(bs, axis=1))               # (1, D*4H)
    args.append(params["fc_w"])                                # (H, O)
    args.append(params["fc_b"])                                # (1, O)

    O = params["fc_w"].shape[1]
    vmem = pl.BlockSpec(memory_space=pltpu.MemorySpace.VMEM)
    scratch = ([pltpu.VMEM((S * B, D * H), jnp.float32),
                pltpu.VMEM((S * B, D * H), jnp.float32)]
               if n_layers > 1 else [])

    kernel = functools.partial(_rnn_maxpool_kernel, seq_len=S, batch=B,
                               hidden_dim=H, n_layers=n_layers, n_dirs=D)
    return pl.pallas_call(
        kernel,
        out_shape=jax.ShapeDtypeStruct((B, O), jnp.float32),
        in_specs=[vmem] * len(args),
        out_specs=vmem,
        scratch_shapes=scratch,
    )(*args)


# ----------------------- Pure-JAX reference (check) --------------------------

def _reference(text, text_lengths, params, *, n_layers, bidirectional,
               hidden_dim):
    seq_len, B = text.shape
    emb = jnp.take(params["embedding"], text, axis=0)
    mask = (jnp.arange(seq_len)[:, None] < text_lengths[None, :]
            ).astype(jnp.float32)[:, :, None]

    def run_dir(x, w_ih, w_hh, b, rev):
        H = hidden_dim
        ts = range(seq_len - 1, -1, -1) if rev else range(seq_len)
        h = jnp.zeros((B, H), jnp.float32)
        c = jnp.zeros((B, H), jnp.float32)
        outs = [None] * seq_len
        for t in ts:
            g = x[t] @ w_ih + h @ w_hh + b
            i_g = jax.nn.sigmoid(g[:, 0:H])
            f_g = jax.nn.sigmoid(g[:, H:2 * H])
            g_g = jnp.tanh(g[:, 2 * H:3 * H])
            o_g = jax.nn.sigmoid(g[:, 3 * H:4 * H])
            c_new = f_g * c + i_g * g_g
            h_new = o_g * jnp.tanh(c_new)
            m = mask[t]
            h = m * h_new + (1 - m) * h
            c = m * c_new + (1 - m) * c
            outs[t] = m * h_new
        return jnp.stack(outs, 0), h

    x = emb
    finals = []
    dirs = [False, True] if bidirectional else [False]
    for layer in range(n_layers):
        outs = []
        for rev in dirs:
            w_ih, w_hh, b = params["lstm"][(layer, int(rev))]
            o, hf = run_dir(x, w_ih, w_hh, b, rev)
            outs.append(o)
            finals.append(hf)
        x = jnp.concatenate(outs, axis=-1) if len(outs) > 1 else outs[0]
    hmax = jnp.max(jnp.stack(finals, 0), axis=0)
    return hmax @ params["fc_w"] + params["fc_b"]


# --------------------------------- Main --------------------------------------

if __name__ == "__main__":
    # Hyperparameters implied by the module.
    VOCAB, EMB, HID, OUT = 50, 32, 32, 4
    N_LAYERS, BIDIR, PAD_IDX = 2, True, 0
    SEQ, BATCH = 8, 2
    N_DIRS = 2 if BIDIR else 1

    key = jax.random.PRNGKey(0)
    keys = iter(jax.random.split(key, 64))

    def uni(k, shape, bound):
        return jax.random.uniform(k, shape, jnp.float32, -bound, bound)

    # Embedding table (padding_idx row zeroed, like nn.Embedding(padding_idx=...)).
    emb_tbl = jax.random.normal(next(keys), (VOCAB, EMB), jnp.float32)
    emb_tbl = emb_tbl.at[PAD_IDX].set(0.0)

    # LSTM params, PyTorch-style uniform(-1/sqrt(H), 1/sqrt(H)); stored pre-transposed.
    bound = 1.0 / (HID ** 0.5)
    lstm_params = {}
    for layer in range(N_LAYERS):
        in_dim = EMB if layer == 0 else HID * N_DIRS
        for d in range(N_DIRS):
            w_ih = uni(next(keys), (in_dim, 4 * HID), bound)   # (Din, 4H)
            w_hh = uni(next(keys), (HID, 4 * HID), bound)      # (H, 4H)
            b_ih = uni(next(keys), (1, 4 * HID), bound)
            b_hh = uni(next(keys), (1, 4 * HID), bound)
            lstm_params[(layer, d)] = (w_ih, w_hh, b_ih + b_hh)

    fc_bound = 1.0 / (HID ** 0.5)
    fc_w = uni(next(keys), (HID, OUT), fc_bound)               # (H, O) == W.T
    fc_b = uni(next(keys), (1, OUT), fc_bound)

    params = {"embedding": emb_tbl, "lstm": lstm_params,
              "fc_w": fc_w, "fc_b": fc_b}

    # Inputs: seq-major token ids, lengths sorted descending (pack_padded_sequence).
    text_lengths = jnp.array([SEQ, SEQ - 2], dtype=jnp.int32)
    text = jax.random.randint(next(keys), (SEQ, BATCH), 1, VOCAB, jnp.int32)
    pad_mask = (jnp.arange(SEQ)[:, None] < text_lengths[None, :])
    text = jnp.where(pad_mask, text, PAD_IDX)

    logits = rnn_maxpool_classifier(
        text, text_lengths, params,
        n_layers=N_LAYERS, bidirectional=BIDIR, hidden_dim=HID)
    logits = jax.block_until_ready(logits)

    ref = _reference(text, text_lengths, params, n_layers=N_LAYERS,
                     bidirectional=BIDIR, hidden_dim=HID)
    assert logits.shape == (BATCH, OUT)
    assert jnp.allclose(logits, ref, atol=1e-2, rtol=1e-2)

    print("KERNEL_OK")
</pallas_src>

<mosaic_0001>
module attributes {stable_mosaic.version = 11 : i64} {
  func.func @_rnn_maxpool_kernel(%arg0: memref<16x32xf32, #tpu.memory_space<vmem>>, %arg1: memref<16x1xf32, #tpu.memory_space<vmem>>, %arg2: memref<32x256xf32, #tpu.memory_space<vmem>>, %arg3: memref<2x32x128xf32, #tpu.memory_space<vmem>>, %arg4: memref<1x256xf32, #tpu.memory_space<vmem>>, %arg5: memref<64x256xf32, #tpu.memory_space<vmem>>, %arg6: memref<2x32x128xf32, #tpu.memory_space<vmem>>, %arg7: memref<1x256xf32, #tpu.memory_space<vmem>>, %arg8: memref<32x4xf32, #tpu.memory_space<vmem>>, %arg9: memref<1x4xf32, #tpu.memory_space<vmem>>, %arg10: memref<2x4xf32, #tpu.memory_space<vmem>>, %arg11: memref<16x64xf32, #tpu.memory_space<vmem>>, %arg12: memref<16x64xf32, #tpu.memory_space<vmem>>) attributes {dimension_semantics = [], scalar_prefetch = 0 : i64, scratch_operands = 2 : i64, tpu.core_type = #tpu.core_type<tc>} {
    %c0 = arith.constant 0 : index
    %c0_0 = arith.constant 0 : index
    %0 = vector.load %arg1[%c0, %c0_0] : memref<16x1xf32, #tpu.memory_space<vmem>>, vector<16x1xf32>
    %cst = arith.constant 0.000000e+00 : f32
    %1 = vector.broadcast %cst : f32 to vector<16x1xf32>
    %2 = arith.cmpf one, %0, %1 : vector<16x1xf32>
    %c0_1 = arith.constant 0 : index
    %c0_2 = arith.constant 0 : index
    %3 = vector.load %arg0[%c0_1, %c0_2] : memref<16x32xf32, #tpu.memory_space<vmem>>, vector<16x32xf32>
    %c0_3 = arith.constant 0 : index
    %c0_4 = arith.constant 0 : index
    %4 = vector.load %arg2[%c0_3, %c0_4] : memref<32x256xf32, #tpu.memory_space<vmem>>, vector<32x256xf32>
    %cst_5 = arith.constant dense<0.000000e+00> : vector<16x256xf32>
    %5 = tpu.matmul %3, %4, %cst_5 {dimension_numbers = #tpu.dot_dimension_numbers<[1], [0], [0], [1], [0, 0, 1, 1], [], []>} : vector<16x32xf32>, vector<32x256xf32>, vector<16x256xf32> -> vector<16x256xf32>
    %c0_6 = arith.constant 0 : index
    %c0_7 = arith.constant 0 : index
    %6 = vector.load %arg4[%c0_6, %c0_7] : memref<1x256xf32, #tpu.memory_space<vmem>>, vector<1x256xf32>
    %7 = vector.broadcast %6 : vector<1x256xf32> to vector<16x256xf32>
    %8 = arith.addf %5, %7 : vector<16x256xf32>
    %c0_8 = arith.constant 0 : index
    %c0_9 = arith.constant 0 : index
    %c0_10 = arith.constant 0 : index
    %9 = vector.load %arg3[%c0_8, %c0_9, %c0_10] : memref<2x32x128xf32, #tpu.memory_space<vmem>>, vector<1x32x128xf32>
    %10 = vector.shape_cast %9 : vector<1x32x128xf32> to vector<32x128xf32>
    %c1 = arith.constant 1 : index
    %c0_11 = arith.constant 0 : index
    %c0_12 = arith.constant 0 : index
    %11 = vector.load %arg3[%c1, %c0_11, %c0_12] : memref<2x32x128xf32, #tpu.memory_space<vmem>>, vector<1x32x128xf32>
    %12 = vector.shape_cast %11 : vector<1x32x128xf32> to vector<32x128xf32>
    %cst_13 = arith.constant 0.000000e+00 : f32
    %13 = vector.broadcast %cst_13 : f32 to vector<2x32xf32>
    %cst_14 = arith.constant 0.000000e+00 : f32
    %14 = vector.broadcast %cst_14 : f32 to vector<2x32xf32>
    %cst_15 = arith.constant 0.000000e+00 : f32
    %15 = vector.broadcast %cst_15 : f32 to vector<2x32xf32>
    %cst_16 = arith.constant 0.000000e+00 : f32
    %16 = vector.broadcast %cst_16 : f32 to vector<2x32xf32>
    %17 = vector.extract_strided_slice %8 {offsets = [0, 0], sizes = [2, 128], strides = [1, 1]} : vector<16x256xf32> to vector<2x128xf32>
    %cst_17 = arith.constant dense<0.000000e+00> : vector<2x128xf32>
    %18 = tpu.matmul %13, %10, %cst_17 {dimension_numbers = #tpu.dot_dimension_numbers<[1], [0], [0], [1], [0, 0, 1, 1], [], []>} : vector<2x32xf32>, vector<32x128xf32>, vector<2x128xf32> -> vector<2x128xf32>
    %19 = arith.addf %17, %18 : vector<2x128xf32>
    %20 = arith.negf %19 : vector<2x128xf32>
    %21 = math.exp %20 : vector<2x128xf32>
    %cst_18 = arith.constant 1.000000e+00 : f32
    %22 = vector.broadcast %cst_18 : f32 to vector<2x128xf32>
    %23 = arith.addf %22, %21 : vector<2x128xf32>
    %24 = arith.divf %22, %23 : vector<2x128xf32>
    %25 = math.tanh %19 : vector<2x128xf32>
    %26 = vector.extract_strided_slice %24 {offsets = [0, 0], sizes = [2, 32], strides = [1, 1]} : vector<2x128xf32> to vector<2x32xf32>
    %27 = vector.extract_strided_slice %24 {offsets = [0, 32], sizes = [2, 32], strides = [1, 1]} : vector<2x128xf32> to vector<2x32xf32>
    %28 = vector.extract_strided_slice %25 {offsets = [0, 64], sizes = [2, 32], strides = [1, 1]} : vector<2x128xf32> to vector<2x32xf32>
    %29 = vector.extract_strided_slice %24 {offsets = [0, 96], sizes = [2, 32], strides = [1, 1]} : vector<2x128xf32> to vector<2x32xf32>
    %30 = arith.mulf %27, %15 : vector<2x32xf32>
    %31 = arith.mulf %26, %28 : vector<2x32xf32>
    %32 = arith.addf %30, %31 : vector<2x32xf32>
    %33 = math.tanh %32 : vector<2x32xf32>
    %34 = arith.mulf %29, %33 : vector<2x32xf32>
    %35 = vector.extract_strided_slice %2 {offsets = [0, 0], sizes = [2, 1], strides = [1, 1]} : vector<16x1xi1> to vector<2x1xi1>
    %36 = vector.shape_cast %35 : vector<2x1xi1> to vector<2x1xi1>
    %37 = vector.broadcast %36 : vector<2x1xi1> to vector<2x32xi1>
    %38 = arith.select %37, %34, %13 : vector<2x32xi1>, vector<2x32xf32>
    %39 = vector.shape_cast %35 : vector<2x1xi1> to vector<2x1xi1>
    %40 = vector.broadcast %39 : vector<2x1xi1> to vector<2x32xi1>
    %41 = arith.select %40, %32, %15 : vector<2x32xi1>, vector<2x32xf32>
    %cst_19 = arith.constant 0.000000e+00 : f32
    %42 = vector.shape_cast %35 : vector<2x1xi1> to vector<2x1xi1>
    %43 = vector.broadcast %42 : vector<2x1xi1> to vector<2x32xi1>
    %44 = vector.broadcast %cst_19 : f32 to vector<2x32xf32>
    %45 = arith.select %43, %34, %44 : vector<2x32xi1>, vector<2x32xf32>
    %c0_20 = arith.constant 0 : index
    %c0_21 = arith.constant 0 : index
    %46 = vector.load %arg11[%c0_20, %c0_21] : memref<16x64xf32, #tpu.memory_space<vmem>>, vector<2x32xf32>
    tpu.vector_store %arg11[%c0_20, %c0_21], %45 {strides = array<i32>} : memref<16x64xf32, #tpu.memory_space<vmem>>, vector<2x32xf32>,
    %47 = vector.extract_strided_slice %8 {offsets = [14, 128], sizes = [2, 128], strides = [1, 1]} : vector<16x256xf32> to vector<2x128xf32>
    %cst_22 = arith.constant dense<0.000000e+00> : vector<2x128xf32>
    %48 = tpu.matmul %14, %12, %cst_22 {dimension_numbers = #tpu.dot_dimension_numbers<[1], [0], [0], [1], [0, 0, 1, 1], [], []>} : vector<2x32xf32>, vector<32x128xf32>, vector<2x128xf32> -> vector<2x128xf32>
    %49 = arith.addf %47, %48 : vector<2x128xf32>
    %50 = arith.negf %49 : vector<2x128xf32>
    %51 = math.exp %50 : vector<2x128xf32>
    %cst_23 = arith.constant 1.000000e+00 : f32
    %52 = vector.broadcast %cst_23 : f32 to vector<2x128xf32>
    %53 = arith.addf %52, %51 : vector<2x128xf32>
    %54 = arith.divf %52, %53 : vector<2x128xf32>
    %55 = math.tanh %49 : vector<2x128xf32>
    %56 = vector.extract_strided_slice %54 {offsets = [0, 0], sizes = [2, 32], strides = [1, 1]} : vector<2x128xf32> to vector<2x32xf32>
    %57 = vector.extract_strided_slice %54 {offsets = [0, 32], sizes = [2, 32], strides = [1, 1]} : vector<2x128xf32> to vector<2x32xf32>
    %58 = vector.extract_strided_slice %55 {offsets = [0, 64], sizes = [2, 32], strides = [1, 1]} : vector<2x128xf32> to vector<2x32xf32>
    %59 = vector.extract_strided_slice %54 {offsets = [0, 96], sizes = [2, 32], strides = [1, 1]} : vector<2x128xf32> to vector<2x32xf32>
    %60 = arith.mulf %57, %16 : vector<2x32xf32>
    %61 = arith.mulf %56, %58 : vector<2x32xf32>
    %62 = arith.addf %60, %61 : vector<2x32xf32>
    %63 = math.tanh %62 : vector<2x32xf32>
    %64 = arith.mulf %59, %63 : vector<2x32xf32>
    %65 = vector.extract_strided_slice %2 {offsets = [14, 0], sizes = [2, 1], strides = [1, 1]} : vector<16x1xi1> to vector<2x1xi1>
    %66 = vector.shape_cast %65 : vector<2x1xi1> to vector<2x1xi1>
    %67 = vector.broadcast %66 : vector<2x1xi1> to vector<2x32xi1>
    %68 = arith.select %67, %64, %14 : vector<2x32xi1>, vector<2x32xf32>
    %69 = vector.shape_cast %65 : vector<2x1xi1> to vector<2x1xi1>
    %70 = vector.broadcast %69 : vector<2x1xi1> to vector<2x32xi1>
    %71 = arith.select %70, %62, %16 : vector<2x32xi1>, vector<2x32xf32>
    %cst_24 = arith.constant 0.000000e+00 : f32
    %72 = vector.shape_cast %65 : vector<2x1xi1> to vector<2x1xi1>
    %73 = vector.broadcast %72 : vector<2x1xi1> to vector<2x32xi1>
    %74 = vector.broadcast %cst_24 : f32 to vector<2x32xf32>
    %75 = arith.select %73, %64, %74 : vector<2x32xi1>, vector<2x32xf32>
    %c14 = arith.constant 14 : index
    %c32 = arith.constant 32 : index
    %76 = vector.load %arg11[%c14, %c32] : memref<16x64xf32, #tpu.memory_space<vmem>>, vector<2x32xf32>
    tpu.vector_store %arg11[%c14, %c32], %75 {strides = array<i32>} : memref<16x64xf32, #tpu.memory_space<vmem>>, vector<2x32xf32>,
    %77 = vector.extract_strided_slice %8 {offsets = [2, 0], sizes = [2, 128], strides = [1, 1]} : vector<16x256xf32> to vector<2x128xf32>
    %cst_25 = arith.constant dense<0.000000e+00> : vector<2x128xf32>
    %78 = tpu.matmul %38, %10, %cst_25 {dimension_numbers = #tpu.dot_dimension_numbers<[1], [0], [0], [1], [0, 0, 1, 1], [], []>} : vector<2x32xf32>, vector<32x128xf32>, vector<2x128xf32> -> vector<2x128xf32>
    %79 = arith.addf %77, %78 : vector<2x128xf32>
    %80 = arith.negf %79 : vector<2x128xf32>
    %81 = math.exp %80 : vector<2x128xf32>
    %cst_26 = arith.constant 1.000000e+00 : f32
    %82 = vector.broadcast %cst_26 : f32 to vector<2x128xf32>
    %83 = arith.addf %82, %81 : vector<2x128xf32>
    %84 = arith.divf %82, %83 : vector<2x128xf32>
    %85 = math.tanh %79 : vector<2x128xf32>
    %86 = vector.extract_strided_slice %84 {offsets = [0, 0], sizes = [2, 32], strides = [1, 1]} : vector<2x128xf32> to vector<2x32xf32>
    %87 = vector.extract_strided_slice %84 {offsets = [0, 32], sizes = [2, 32], strides = [1, 1]} : vector<2x128xf32> to vector<2x32xf32>
    %88 = vector.extract_strided_slice %85 {offsets = [0, 64], sizes = [2, 32], strides = [1, 1]} : vector<2x128xf32> to vector<2x32xf32>
    %89 = vector.extract_strided_slice %84 {offsets = [0, 96], sizes = [2, 32], strides = [1, 1]} : vector<2x128xf32> to vector<2x32xf32>
    %90 = arith.mulf %87, %41 : vector<2x32xf32>
    %91 = arith.mulf %86, %88 : vector<2x32xf32>
    %92 = arith.addf %90, %91 : vector<2x32xf32>
    %93 = math.tanh %92 : vector<2x32xf32>
    %94 = arith.mulf %89, %93 : vector<2x32xf32>
    %95 = vector.extract_strided_slice %2 {offsets = [2, 0], sizes = [2, 1], strides = [1, 1]} : vector<16x1xi1> to vector<2x1xi1>
    %96 = vector.shape_cast %95 : vector<2x1xi1> to vector<2x1xi1>
    %97 = vector.broadcast %96 : vector<2x1xi1> to vector<2x32xi1>
    %98 = arith.select %97, %94, %38 : vector<2x32xi1>, vector<2x32xf32>
    %99 = vector.shape_cast %95 : vector<2x1xi1> to vector<2x1xi1>
    %100 = vector.broadcast %99 : vector<2x1xi1> to vector<2x32xi1>
    %101 = arith.select %100, %92, %41 : vector<2x32xi1>, vector<2x32xf32>
    %cst_27 = arith.constant 0.000000e+00 : f32
    %102 = vector.shape_cast %95 : vector<2x1xi1> to vector<2x1xi1>
    %103 = vector.broadcast %102 : vector<2x1xi1> to vector<2x32xi1>
    %104 = vector.broadcast %cst_27 : f32 to vector<2x32xf32>
    %105 = arith.select %103, %94, %104 : vector<2x32xi1>, vector<2x32xf32>
    %c2 = arith.constant 2 : index
    %c0_28 = arith.constant 0 : index
    %106 = vector.load %arg11[%c2, %c0_28] : memref<16x64xf32, #tpu.memory_space<vmem>>, vector<2x32xf32>
    tpu.vector_store %arg11[%c2, %c0_28], %105 {strides = array<i32>} : memref<16x64xf32, #tpu.memory_space<vmem>>, vector<2x32xf32>,
    %107 = vector.extract_strided_slice %8 {offsets = [12, 128], sizes = [2, 128], strides = [1, 1]} : vector<16x256xf32> to vector<2x128xf32>
    %cst_29 = arith.constant dense<0.000000e+00> : vector<2x128xf32>
    %108 = tpu.matmul %68, %12, %cst_29 {dimension_numbers = #tpu.dot_dimension_numbers<[1], [0], [0], [1], [0, 0, 1, 1], [], []>} : vector<2x32xf32>, vector<32x128xf32>, vector<2x128xf32> -> vector<2x128xf32>
    %109 = arith.addf %107, %108 : vector<2x128xf32>
    %110 = arith.negf %109 : vector<2x128xf32>
    %111 = math.exp %110 : vector<2x128xf32>
    %cst_30 = arith.constant 1.000000e+00 : f32
    %112 = vector.broadcast %cst_30 : f32 to vector<2x128xf32>
    %113 = arith.addf %112, %111 : vector<2x128xf32>
    %114 = arith.divf %112, %113 : vector<2x128xf32>
    %115 = math.tanh %109 : vector<2x128xf32>
    %116 = vector.extract_strided_slice %114 {offsets = [0, 0], sizes = [2, 32], strides = [1, 1]} : vector<2x128xf32> to vector<2x32xf32>
    %117 = vector.extract_strided_slice %114 {offsets = [0, 32], sizes = [2, 32], strides = [1, 1]} : vector<2x128xf32> to vector<2x32xf32>
    %118 = vector.extract_strided_slice %115 {offsets = [0, 64], sizes = [2, 32], strides = [1, 1]} : vector<2x128xf32> to vector<2x32xf32>
    %119 = vector.extract_strided_slice %114 {offsets = [0, 96], sizes = [2, 32], strides = [1, 1]} : vector<2x128xf32> to vector<2x32xf32>
    %120 = arith.mulf %117, %71 : vector<2x32xf32>
    %121 = arith.mulf %116, %118 : vector<2x32xf32>
    %122 = arith.addf %120, %121 : vector<2x32xf32>
    %123 = math.tanh %122 : vector<2x32xf32>
    %124 = arith.mulf %119, %123 : vector<2x32xf32>
    %125 = vector.extract_strided_slice %2 {offsets = [12, 0], sizes = [2, 1], strides = [1, 1]} : vector<16x1xi1> to vector<2x1xi1>
    %126 = vector.shape_cast %125 : vector<2x1xi1> to vector<2x1xi1>
    %127 = vector.broadcast %126 : vector<2x1xi1> to vector<2x32xi1>
    %128 = arith.select %127, %124, %68 : vector<2x32xi1>, vector<2x32xf32>
    %129 = vector.shape_cast %125 : vector<2x1xi1> to vector<2x1xi1>
    %130 = vector.broadcast %129 : vector<2x1xi1> to vector<2x32xi1>
    %131 = arith.select %130, %122, %71 : vector<2x32xi1>, vector<2x32xf32>
    %cst_31 = arith.constant 0.000000e+00 : f32
    %132 = vector.shape_cast %125 : vector<2x1xi1> to vector<2x1xi1>
    %133 = vector.broadcast %132 : vector<2x1xi1> to vector<2x32xi1>
    %134 = vector.broadcast %cst_31 : f32 to vector<2x32xf32>
    %135 = arith.select %133, %124, %134 : vector<2x32xi1>, vector<2x32xf32>
    %c12 = arith.constant 12 : index
    %c32_32 = arith.constant 32 : index
    %136 = vector.load %arg11[%c12, %c32_32] : memref<16x64xf32, #tpu.memory_space<vmem>>, vector<2x32xf32>
    tpu.vector_store %arg11[%c12, %c32_32], %135 {strides = array<i32>} : memref<16x64xf32, #tpu.memory_space<vmem>>, vector<2x32xf32>,
    %137 = vector.extract_strided_slice %8 {offsets = [4, 0], sizes = [2, 128], strides = [1, 1]} : vector<16x256xf32> to vector<2x128xf32>
    %cst_33 = arith.constant dense<0.000000e+00> : vector<2x128xf32>
    %138 = tpu.matmul %98, %10, %cst_33 {dimension_numbers = #tpu.dot_dimension_numbers<[1], [0], [0], [1], [0, 0, 1, 1], [], []>} : vector<2x32xf32>, vector<32x128xf32>, vector<2x128xf32> -> vector<2x128xf32>
    %139 = arith.addf %137, %138 : vector<2x128xf32>
    %140 = arith.negf %139 : vector<2x128xf32>
    %141 = math.exp %140 : vector<2x128xf32>
    %cst_34 = arith.constant 1.000000e+00 : f32
    %142 = vector.broadcast %cst_34 : f32 to vector<2x128xf32>
    %143 = arith.addf %142, %141 : vector<2x128xf32>
    %144 = arith.divf %142, %143 : vector<2x128xf32>
    %145 = math.tanh %139 : vector<2x128xf32>
    %146 = vector.extract_strided_slice %144 {offsets = [0, 0], sizes = [2, 32], strides = [1, 1]} : vector<2x128xf32> to vector<2x32xf32>
    %147 = vector.extract_strided_slice %144 {offsets = [0, 32], sizes = [2, 32], strides = [1, 1]} : vector<2x128xf32> to vector<2x32xf32>
    %148 = vector.extract_strided_slice %145 {offsets = [0, 64], sizes = [2, 32], strides = [1, 1]} : vector<2x128xf32> to vector<2x32xf32>
    %149 = vector.extract_strided_slice %144 {offsets = [0, 96], sizes = [2, 32], strides = [1, 1]} : vector<2x128xf32> to vector<2x32xf32>
    %150 = arith.mulf %147, %101 : vector<2x32xf32>
    %151 = arith.mulf %146, %148 : vector<2x32xf32>
    %152 = arith.addf %150, %151 : vector<2x32xf32>
    %153 = math.tanh %152 : vector<2x32xf32>
    %154 = arith.mulf %149, %153 : vector<2x32xf32>
    %155 = vector.extract_strided_slice %2 {offsets = [4, 0], sizes = [2, 1], strides = [1, 1]} : vector<16x1xi1> to vector<2x1xi1>
    %156 = vector.shape_cast %155 : vector<2x1xi1> to vector<2x1xi1>
    %157 = vector.broadcast %156 : vector<2x1xi1> to vector<2x32xi1>
    %158 = arith.select %157, %154, %98 : vector<2x32xi1>, vector<2x32xf32>
    %159 = vector.shape_cast %155 : vector<2x1xi1> to vector<2x1xi1>
    %160 = vector.broadcast %159 : vector<2x1xi1> to vector<2x32xi1>
    %161 = arith.select %160, %152, %101 : vector<2x32xi1>, vector<2x32xf32>
    %cst_35 = arith.constant 0.000000e+00 : f32
    %162 = vector.shape_cast %155 : vector<2x1xi1> to vector<2x1xi1>
    %163 = vector.broadcast %162 : vector<2x1xi1> to vector<2x32xi1>
    %164 = vector.broadcast %cst_35 : f32 to vector<2x32xf32>
    %165 = arith.select %163, %154, %164 : vector<2x32xi1>, vector<2x32xf32>
    %c4 = arith.constant 4 : index
    %c0_36 = arith.constant 0 : index
    %166 = vector.load %arg11[%c4, %c0_36] : memref<16x64xf32, #tpu.memory_space<vmem>>, vector<2x32xf32>
    tpu.vector_store %arg11[%c4, %c0_36], %165 {strides = array<i32>} : memref<16x64xf32, #tpu.memory_space<vmem>>, vector<2x32xf32>,
    %167 = vector.extract_strided_slice %8 {offsets = [10, 128], sizes = [2, 128], strides = [1, 1]} : vector<16x256xf32> to vector<2x128xf32>
    %cst_37 = arith.constant dense<0.000000e+00> : vector<2x128xf32>
    %168 = tpu.matmul %128, %12, %cst_37 {dimension_numbers = #tpu.dot_dimension_numbers<[1], [0], [0], [1], [0, 0, 1, 1], [], []>} : vector<2x32xf32>, vector<32x128xf32>, vector<2x128xf32> -> vector<2x128xf32>
    %169 = arith.addf %167, %168 : vector<2x128xf32>
    %170 = arith.negf %169 : vector<2x128xf32>
    %171 = math.exp %170 : vector<2x128xf32>
    %cst_38 = arith.constant 1.000000e+00 : f32
    %172 = vector.broadcast %cst_38 : f32 to vector<2x128xf32>
    %173 = arith.addf %172, %171 : vector<2x128xf32>
    %174 = arith.divf %172, %173 : vector<2x128xf32>
    %175 = math.tanh %169 : vector<2x128xf32>
    %176 = vector.extract_strided_slice %174 {offsets = [0, 0], sizes = [2, 32], strides = [1, 1]} : vector<2x128xf32> to vector<2x32xf32>
    %177 = vector.extract_strided_slice %174 {offsets = [0, 32], sizes = [2, 32], strides = [1, 1]} : vector<2x128xf32> to vector<2x32xf32>
    %178 = vector.extract_strided_slice %175 {offsets = [0, 64], sizes = [2, 32], strides = [1, 1]} : vector<2x128xf32> to vector<2x32xf32>
    %179 = vector.extract_strided_slice %174 {offsets = [0, 96], sizes = [2, 32], strides = [1, 1]} : vector<2x128xf32> to vector<2x32xf32>
    %180 = arith.mulf %177, %131 : vector<2x32xf32>
    %181 = arith.mulf %176, %178 : vector<2x32xf32>
    %182 = arith.addf %180, %181 : vector<2x32xf32>
    %183 = math.tanh %182 : vector<2x32xf32>
    %184 = arith.mulf %179, %183 : vector<2x32xf32>
    %185 = vector.extract_strided_slice %2 {offsets = [10, 0], sizes = [2, 1], strides = [1, 1]} : vector<16x1xi1> to vector<2x1xi1>
    %186 = vector.shape_cast %185 : vector<2x1xi1> to vector<2x1xi1>
    %187 = vector.broadcast %186 : vector<2x1xi1> to vector<2x32xi1>
    %188 = arith.select %187, %184, %128 : vector<2x32xi1>, vector<2x32xf32>
    %189 = vector.shape_cast %185 : vector<2x1xi1> to vector<2x1xi1>
    %190 = vector.broadcast %189 : vector<2x1xi1> to vector<2x32xi1>
    %191 = arith.select %190, %182, %131 : vector<2x32xi1>, vector<2x32xf32>
    %cst_39 = arith.constant 0.000000e+00 : f32
    %192 = vector.shape_cast %185 : vector<2x1xi1> to vector<2x1xi1>
    %193 = vector.broadcast %192 : vector<2x1xi1> to vector<2x32xi1>
    %194 = vector.broadcast %cst_39 : f32 to vector<2x32xf32>
    %195 = arith.select %193, %184, %194 : vector<2x32xi1>, vector<2x32xf32>
    %c10 = arith.constant 10 : index
    %c32_40 = arith.constant 32 : index
    %196 = vector.load %arg11[%c10, %c32_40] : memref<16x64xf32, #tpu.memory_space<vmem>>, vector<2x32xf32>
    tpu.vector_store %arg11[%c10, %c32_40], %195 {strides = array<i32>} : memref<16x64xf32, #tpu.memory_space<vmem>>, vector<2x32xf32>,
    %197 = vector.extract_strided_slice %8 {offsets = [6, 0], sizes = [2, 128], strides = [1, 1]} : vector<16x256xf32> to vector<2x128xf32>
    %cst_41 = arith.constant dense<0.000000e+00> : vector<2x128xf32>
    %198 = tpu.matmul %158, %10, %cst_41 {dimension_numbers = #tpu.dot_dimension_numbers<[1], [0], [0], [1], [0, 0, 1, 1], [], []>} : vector<2x32xf32>, vector<32x128xf32>, vector<2x128xf32> -> vector<2x128xf32>
    %199 = arith.addf %197, %198 : vector<2x128xf32>
    %200 = arith.negf %199 : vector<2x128xf32>
    %201 = math.exp %200 : vector<2x128xf32>
    %cst_42 = arith.constant 1.000000e+00 : f32
    %202 = vector.broadcast %cst_42 : f32 to vector<2x128xf32>
    %203 = arith.addf %202, %201 : vector<2x128xf32>
    %204 = arith.divf %202, %203 : vector<2x128xf32>
    %205 = math.tanh %199 : vector<2x128xf32>
    %206 = vector.extract_strided_slice %204 {offsets = [0, 0], sizes = [2, 32], strides = [1, 1]} : vector<2x128xf32> to vector<2x32xf32>
    %207 = vector.extract_strided_slice %204 {offsets = [0, 32], sizes = [2, 32], strides = [1, 1]} : vector<2x128xf32> to vector<2x32xf32>
    %208 = vector.extract_strided_slice %205 {offsets = [0, 64], sizes = [2, 32], strides = [1, 1]} : vector<2x128xf32> to vector<2x32xf32>
    %209 = vector.extract_strided_slice %204 {offsets = [0, 96], sizes = [2, 32], strides = [1, 1]} : vector<2x128xf32> to vector<2x32xf32>
    %210 = arith.mulf %207, %161 : vector<2x32xf32>
    %211 = arith.mulf %206, %208 : vector<2x32xf32>
    %212 = arith.addf %210, %211 : vector<2x32xf32>
    %213 = math.tanh %212 : vector<2x32xf32>
    %214 = arith.mulf %209, %213 : vector<2x32xf32>
    %215 = vector.extract_strided_slice %2 {offsets = [6, 0], sizes = [2, 1], strides = [1, 1]} : vector<16x1xi1> to vector<2x1xi1>
    %216 = vector.shape_cast %215 : vector<2x1xi1> to vector<2x1xi1>
    %217 = vector.broadcast %216 : vector<2x1xi1> to vector<2x32xi1>
    %218 = arith.select %217, %214, %158 : vector<2x32xi1>, vector<2x32xf32>
    %219 = vector.shape_cast %215 : vector<2x1xi1> to vector<2x1xi1>
    %220 = vector.broadcast %219 : vector<2x1xi1> to vector<2x32xi1>
    %221 = arith.select %220, %212, %161 : vector<2x32xi1>, vector<2x32xf32>
    %cst_43 = arith.constant 0.000000e+00 : f32
    %222 = vector.shape_cast %215 : vector<2x1xi1> to vector<2x1xi1>
    %223 = vector.broadcast %222 : vector<2x1xi1> to vector<2x32xi1>
    %224 = vector.broadcast %cst_43 : f32 to vector<2x32xf32>
    %225 = arith.select %223, %214, %224 : vector<2x32xi1>, vector<2x32xf32>
    %c6 = arith.constant 6 : index
    %c0_44 = arith.constant 0 : index
    %226 = vector.load %arg11[%c6, %c0_44] : memref<16x64xf32, #tpu.memory_space<vmem>>, vector<2x32xf32>
    tpu.vector_store %arg11[%c6, %c0_44], %225 {strides = array<i32>} : memref<16x64xf32, #tpu.memory_space<vmem>>, vector<2x32xf32>,
    %227 = vector.extract_strided_slice %8 {offsets = [8, 128], sizes = [2, 128], strides = [1, 1]} : vector<16x256xf32> to vector<2x128xf32>
    %cst_45 = arith.constant dense<0.000000e+00> : vector<2x128xf32>
    %228 = tpu.matmul %188, %12, %cst_45 {dimension_numbers = #tpu.dot_dimension_numbers<[1], [0], [0], [1], [0, 0, 1, 1], [], []>} : vector<2x32xf32>, vector<32x128xf32>, vector<2x128xf32> -> vector<2x128xf32>
    %229 = arith.addf %227, %228 : vector<2x128xf32>
    %230 = arith.negf %229 : vector<2x128xf32>
    %231 = math.exp %230 : vector<2x128xf32>
    %cst_46 = arith.constant 1.000000e+00 : f32
    %232 = vector.broadcast %cst_46 : f32 to vector<2x128xf32>
    %233 = arith.addf %232, %231 : vector<2x128xf32>
    %234 = arith.divf %232, %233 : vector<2x128xf32>
    %235 = math.tanh %229 : vector<2x128xf32>
    %236 = vector.extract_strided_slice %234 {offsets = [0, 0], sizes = [2, 32], strides = [1, 1]} : vector<2x128xf32> to vector<2x32xf32>
    %237 = vector.extract_strided_slice %234 {offsets = [0, 32], sizes = [2, 32], strides = [1, 1]} : vector<2x128xf32> to vector<2x32xf32>
    %238 = vector.extract_strided_slice %235 {offsets = [0, 64], sizes = [2, 32], strides = [1, 1]} : vector<2x128xf32> to vector<2x32xf32>
    %239 = vector.extract_strided_slice %234 {offsets = [0, 96], sizes = [2, 32], strides = [1, 1]} : vector<2x128xf32> to vector<2x32xf32>
    %240 = arith.mulf %237, %191 : vector<2x32xf32>
    %241 = arith.mulf %236, %238 : vector<2x32xf32>
    %242 = arith.addf %240, %241 : vector<2x32xf32>
    %243 = math.tanh %242 : vector<2x32xf32>
    %244 = arith.mulf %239, %243 : vector<2x32xf32>
    %245 = vector.extract_strided_slice %2 {offsets = [8, 0], sizes = [2, 1], strides = [1, 1]} : vector<16x1xi1> to vector<2x1xi1>
    %246 = vector.shape_cast %245 : vector<2x1xi1> to vector<2x1xi1>
    %247 = vector.broadcast %246 : vector<2x1xi1> to vector<2x32xi1>
    %248 = arith.select %247, %244, %188 : vector<2x32xi1>, vector<2x32xf32>
    %249 = vector.shape_cast %245 : vector<2x1xi1> to vector<2x1xi1>
    %250 = vector.broadcast %249 : vector<2x1xi1> to vector<2x32xi1>
    %251 = arith.select %250, %242, %191 : vector<2x32xi1>, vector<2x32xf32>
    %cst_47 = arith.constant 0.000000e+00 : f32
    %252 = vector.shape_cast %245 : vector<2x1xi1> to vector<2x1xi1>
    %253 = vector.broadcast %252 : vector<2x1xi1> to vector<2x32xi1>
    %254 = vector.broadcast %cst_47 : f32 to vector<2x32xf32>
    %255 = arith.select %253, %244, %254 : vector<2x32xi1>, vector<2x32xf32>
    %c8 = arith.constant 8 : index
    %c32_48 = arith.constant 32 : index
    %256 = vector.load %arg11[%c8, %c32_48] : memref<16x64xf32, #tpu.memory_space<vmem>>, vector<2x32xf32>
    tpu.vector_store %arg11[%c8, %c32_48], %255 {strides = array<i32>} : memref<16x64xf32, #tpu.memory_space<vmem>>, vector<2x32xf32>,
    %257 = vector.extract_strided_slice %8 {offsets = [8, 0], sizes = [2, 128], strides = [1, 1]} : vector<16x256xf32> to vector<2x128xf32>
    %cst_49 = arith.constant dense<0.000000e+00> : vector<2x128xf32>
    %258 = tpu.matmul %218, %10, %cst_49 {dimension_numbers = #tpu.dot_dimension_numbers<[1], [0], [0], [1], [0, 0, 1, 1], [], []>} : vector<2x32xf32>, vector<32x128xf32>, vector<2x128xf32> -> vector<2x128xf32>
    %259 = arith.addf %257, %258 : vector<2x128xf32>
    %260 = arith.negf %259 : vector<2x128xf32>
    %261 = math.exp %260 : vector<2x128xf32>
    %cst_50 = arith.constant 1.000000e+00 : f32
    %262 = vector.broadcast %cst_50 : f32 to vector<2x128xf32>
    %263 = arith.addf %262, %261 : vector<2x128xf32>
    %264 = arith.divf %262, %263 : vector<2x128xf32>
    %265 = math.tanh %259 : vector<2x128xf32>
    %266 = vector.extract_strided_slice %264 {offsets = [0, 0], sizes = [2, 32], strides = [1, 1]} : vector<2x128xf32> to vector<2x32xf32>
    %267 = vector.extract_strided_slice %264 {offsets = [0, 32], sizes = [2, 32], strides = [1, 1]} : vector<2x128xf32> to vector<2x32xf32>
    %268 = vector.extract_strided_slice %265 {offsets = [0, 64], sizes = [2, 32], strides = [1, 1]} : vector<2x128xf32> to vector<2x32xf32>
    %269 = vector.extract_strided_slice %264 {offsets = [0, 96], sizes = [2, 32], strides = [1, 1]} : vector<2x128xf32> to vector<2x32xf32>
    %270 = arith.mulf %267, %221 : vector<2x32xf32>
    %271 = arith.mulf %266, %268 : vector<2x32xf32>
    %272 = arith.addf %270, %271 : vector<2x32xf32>
    %273 = math.tanh %272 : vector<2x32xf32>
    %274 = arith.mulf %269, %273 : vector<2x32xf32>
    %275 = vector.extract_strided_slice %2 {offsets = [8, 0], sizes = [2, 1], strides = [1, 1]} : vector<16x1xi1> to vector<2x1xi1>
    %276 = vector.shape_cast %275 : vector<2x1xi1> to vector<2x1xi1>
    %277 = vector.broadcast %276 : vector<2x1xi1> to vector<2x32xi1>
    %278 = arith.select %277, %274, %218 : vector<2x32xi1>, vector<2x32xf32>
    %279 = vector.shape_cast %275 : vector<2x1xi1> to vector<2x1xi1>
    %280 = vector.broadcast %279 : vector<2x1xi1> to vector<2x32xi1>
    %281 = arith.select %280, %272, %221 : vector<2x32xi1>, vector<2x32xf32>
    %cst_51 = arith.constant 0.000000e+00 : f32
    %282 = vector.shape_cast %275 : vector<2x1xi1> to vector<2x1xi1>
    %283 = vector.broadcast %282 : vector<2x1xi1> to vector<2x32xi1>
    %284 = vector.broadcast %cst_51 : f32 to vector<2x32xf32>
    %285 = arith.select %283, %274, %284 : vector<2x32xi1>, vector<2x32xf32>
    %c8_52 = arith.constant 8 : index
    %c0_53 = arith.constant 0 : index
    %286 = vector.load %arg11[%c8_52, %c0_53] : memref<16x64xf32, #tpu.memory_space<vmem>>, vector<2x32xf32>
    tpu.vector_store %arg11[%c8_52, %c0_53], %285 {strides = array<i32>} : memref<16x64xf32, #tpu.memory_space<vmem>>, vector<2x32xf32>,
    %287 = vector.extract_strided_slice %8 {offsets = [6, 128], sizes = [2, 128], strides = [1, 1]} : vector<16x256xf32> to vector<2x128xf32>
    %cst_54 = arith.constant dense<0.000000e+00> : vector<2x128xf32>
    %288 = tpu.matmul %248, %12, %cst_54 {dimension_numbers = #tpu.dot_dimension_numbers<[1], [0], [0], [1], [0, 0, 1, 1], [], []>} : vector<2x32xf32>, vector<32x128xf32>, vector<2x128xf32> -> vector<2x128xf32>
    %289 = arith.addf %287, %288 : vector<2x128xf32>
    %290 = arith.negf %289 : vector<2x128xf32>
    %291 = math.exp %290 : vector<2x128xf32>
    %cst_55 = arith.constant 1.000000e+00 : f32
    %292 = vector.broadcast %cst_55 : f32 to vector<2x128xf32>
    %293 = arith.addf %292, %291 : vector<2x128xf32>
    %294 = arith.divf %292, %293 : vector<2x128xf32>
    %295 = math.tanh %289 : vector<2x128xf32>
    %296 = vector.extract_strided_slice %294 {offsets = [0, 0], sizes = [2, 32], strides = [1, 1]} : vector<2x128xf32> to vector<2x32xf32>
    %297 = vector.extract_strided_slice %294 {offsets = [0, 32], sizes = [2, 32], strides = [1, 1]} : vector<2x128xf32> to vector<2x32xf32>
    %298 = vector.extract_strided_slice %295 {offsets = [0, 64], sizes = [2, 32], strides = [1, 1]} : vector<2x128xf32> to vector<2x32xf32>
    %299 = vector.extract_strided_slice %294 {offsets = [0, 96], sizes = [2, 32], strides = [1, 1]} : vector<2x128xf32> to vector<2x32xf32>
    %300 = arith.mulf %297, %251 : vector<2x32xf32>
    %301 = arith.mulf %296, %298 : vector<2x32xf32>
    %302 = arith.addf %300, %301 : vector<2x32xf32>
    %303 = math.tanh %302 : vector<2x32xf32>
    %304 = arith.mulf %299, %303 : vector<2x32xf32>
    %305 = vector.extract_strided_slice %2 {offsets = [6, 0], sizes = [2, 1], strides = [1, 1]} : vector<16x1xi1> to vector<2x1xi1>
    %306 = vector.shape_cast %305 : vector<2x1xi1> to vector<2x1xi1>
    %307 = vector.broadcast %306 : vector<2x1xi1> to vector<2x32xi1>
    %308 = arith.select %307, %304, %248 : vector<2x32xi1>, vector<2x32xf32>
    %309 = vector.shape_cast %305 : vector<2x1xi1> to vector<2x1xi1>
    %310 = vector.broadcast %309 : vector<2x1xi1> to vector<2x32xi1>
    %311 = arith.select %310, %302, %251 : vector<2x32xi1>, vector<2x32xf32>
    %cst_56 = arith.constant 0.000000e+00 : f32
    %312 = vector.shape_cast %305 : vector<2x1xi1> to vector<2x1xi1>
    %313 = vector.broadcast %312 : vector<2x1xi1> to vector<2x32xi1>
    %314 = vector.broadcast %cst_56 : f32 to vector<2x32xf32>
    %315 = arith.select %313, %304, %314 : vector<2x32xi1>, vector<2x32xf32>
    %c6_57 = arith.constant 6 : index
    %c32_58 = arith.constant 32 : index
    %316 = vector.load %arg11[%c6_57, %c32_58] : memref<16x64xf32, #tpu.memory_space<vmem>>, vector<2x32xf32>
    tpu.vector_store %arg11[%c6_57, %c32_58], %315 {strides = array<i32>} : memref<16x64xf32, #tpu.memory_space<vmem>>, vector<2x32xf32>,
    %317 = vector.extract_strided_slice %8 {offsets = [10, 0], sizes = [2, 128], strides = [1, 1]} : vector<16x256xf32> to vector<2x128xf32>
    %cst_59 = arith.constant dense<0.000000e+00> : vector<2x128xf32>
    %318 = tpu.matmul %278, %10, %cst_59 {dimension_numbers = #tpu.dot_dimension_numbers<[1], [0], [0], [1], [0, 0, 1, 1], [], []>} : vector<2x32xf32>, vector<32x128xf32>, vector<2x128xf32> -> vector<2x128xf32>
    %319 = arith.addf %317, %318 : vector<2x128xf32>
    %320 = arith.negf %319 : vector<2x128xf32>
    %321 = math.exp %320 : vector<2x128xf32>
    %cst_60 = arith.constant 1.000000e+00 : f32
    %322 = vector.broadcast %cst_60 : f32 to vector<2x128xf32>
    %323 = arith.addf %322, %321 : vector<2x128xf32>
    %324 = arith.divf %322, %323 : vector<2x128xf32>
    %325 = math.tanh %319 : vector<2x128xf32>
    %326 = vector.extract_strided_slice %324 {offsets = [0, 0], sizes = [2, 32], strides = [1, 1]} : vector<2x128xf32> to vector<2x32xf32>
    %327 = vector.extract_strided_slice %324 {offsets = [0, 32], sizes = [2, 32], strides = [1, 1]} : vector<2x128xf32> to vector<2x32xf32>
    %328 = vector.extract_strided_slice %325 {offsets = [0, 64], sizes = [2, 32], strides = [1, 1]} : vector<2x128xf32> to vector<2x32xf32>
    %329 = vector.extract_strided_slice %324 {offsets = [0, 96], sizes = [2, 32], strides = [1, 1]} : vector<2x128xf32> to vector<2x32xf32>
    %330 = arith.mulf %327, %281 : vector<2x32xf32>
    %331 = arith.mulf %326, %328 : vector<2x32xf32>
    %332 = arith.addf %330, %331 : vector<2x32xf32>
    %333 = math.tanh %332 : vector<2x32xf32>
    %334 = arith.mulf %329, %333 : vector<2x32xf32>
    %335 = vector.extract_strided_slice %2 {offsets = [10, 0], sizes = [2, 1], strides = [1, 1]} : vector<16x1xi1> to vector<2x1xi1>
    %336 = vector.shape_cast %335 : vector<2x1xi1> to vector<2x1xi1>
    %337 = vector.broadcast %336 : vector<2x1xi1> to vector<2x32xi1>
    %338 = arith.select %337, %334, %278 : vector<2x32xi1>, vector<2x32xf32>
    %339 = vector.shape_cast %335 : vector<2x1xi1> to vector<2x1xi1>
    %340 = vector.broadcast %339 : vector<2x1xi1> to vector<2x32xi1>
    %341 = arith.select %340, %332, %281 : vector<2x32xi1>, vector<2x32xf32>
    %cst_61 = arith.constant 0.000000e+00 : f32
    %342 = vector.shape_cast %335 : vector<2x1xi1> to vector<2x1xi1>
    %343 = vector.broadcast %342 : vector<2x1xi1> to vector<2x32xi1>
    %344 = vector.broadcast %cst_61 : f32 to vector<2x32xf32>
    %345 = arith.select %343, %334, %344 : vector<2x32xi1>, vector<2x32xf32>
    %c10_62 = arith.constant 10 : index
    %c0_63 = arith.constant 0 : index
    %346 = vector.load %arg11[%c10_62, %c0_63] : memref<16x64xf32, #tpu.memory_space<vmem>>, vector<2x32xf32>
    tpu.vector_store %arg11[%c10_62, %c0_63], %345 {strides = array<i32>} : memref<16x64xf32, #tpu.memory_space<vmem>>, vector<2x32xf32>,
    %347 = vector.extract_strided_slice %8 {offsets = [4, 128], sizes = [2, 128], strides = [1, 1]} : vector<16x256xf32> to vector<2x128xf32>
    %cst_64 = arith.constant dense<0.000000e+00> : vector<2x128xf32>
    %348 = tpu.matmul %308, %12, %cst_64 {dimension_numbers = #tpu.dot_dimension_numbers<[1], [0], [0], [1], [0, 0, 1, 1], [], []>} : vector<2x32xf32>, vector<32x128xf32>, vector<2x128xf32> -> vector<2x128xf32>
    %349 = arith.addf %347, %348 : vector<2x128xf32>
    %350 = arith.negf %349 : vector<2x128xf32>
    %351 = math.exp %350 : vector<2x128xf32>
    %cst_65 = arith.constant 1.000000e+00 : f32
    %352 = vector.broadcast %cst_65 : f32 to vector<2x128xf32>
    %353 = arith.addf %352, %351 : vector<2x128xf32>
    %354 = arith.divf %352, %353 : vector<2x128xf32>
    %355 = math.tanh %349 : vector<2x128xf32>
    %356 = vector.extract_strided_slice %354 {offsets = [0, 0], sizes = [2, 32], strides = [1, 1]} : vector<2x128xf32> to vector<2x32xf32>
    %357 = vector.extract_strided_slice %354 {offsets = [0, 32], sizes = [2, 32], strides = [1, 1]} : vector<2x128xf32> to vector<2x32xf32>
    %358 = vector.extract_strided_slice %355 {offsets = [0, 64], sizes = [2, 32], strides = [1, 1]} : vector<2x128xf32> to vector<2x32xf32>
    %359 = vector.extract_strided_slice %354 {offsets = [0, 96], sizes = [2, 32], strides = [1, 1]} : vector<2x128xf32> to vector<2x32xf32>
    %360 = arith.mulf %357, %311 : vector<2x32xf32>
    %361 = arith.mulf %356, %358 : vector<2x32xf32>
    %362 = arith.addf %360, %361 : vector<2x32xf32>
    %363 = math.tanh %362 : vector<2x32xf32>
    %364 = arith.mulf %359, %363 : vector<2x32xf32>
    %365 = vector.extract_strided_slice %2 {offsets = [4, 0], sizes = [2, 1], strides = [1, 1]} : vector<16x1xi1> to vector<2x1xi1>
    %366 = vector.shape_cast %365 : vector<2x1xi1> to vector<2x1xi1>
    %367 = vector.broadcast %366 : vector<2x1xi1> to vector<2x32xi1>
    %368 = arith.select %367, %364, %308 : vector<2x32xi1>, vector<2x32xf32>
    %369 = vector.shape_cast %365 : vector<2x1xi1> to vector<2x1xi1>
    %370 = vector.broadcast %369 : vector<2x1xi1> to vector<2x32xi1>
    %371 = arith.select %370, %362, %311 : vector<2x32xi1>, vector<2x32xf32>
    %cst_66 = arith.constant 0.000000e+00 : f32
    %372 = vector.shape_cast %365 : vector<2x1xi1> to vector<2x1xi1>
    %373 = vector.broadcast %372 : vector<2x1xi1> to vector<2x32xi1>
    %374 = vector.broadcast %cst_66 : f32 to vector<2x32xf32>
    %375 = arith.select %373, %364, %374 : vector<2x32xi1>, vector<2x32xf32>
    %c4_67 = arith.constant 4 : index
    %c32_68 = arith.constant 32 : index
    %376 = vector.load %arg11[%c4_67, %c32_68] : memref<16x64xf32, #tpu.memory_space<vmem>>, vector<2x32xf32>
    tpu.vector_store %arg11[%c4_67, %c32_68], %375 {strides = array<i32>} : memref<16x64xf32, #tpu.memory_space<vmem>>, vector<2x32xf32>,
    %377 = vector.extract_strided_slice %8 {offsets = [12, 0], sizes = [2, 128], strides = [1, 1]} : vector<16x256xf32> to vector<2x128xf32>
    %cst_69 = arith.constant dense<0.000000e+00> : vector<2x128xf32>
    %378 = tpu.matmul %338, %10, %cst_69 {dimension_numbers = #tpu.dot_dimension_numbers<[1], [0], [0], [1], [0, 0, 1, 1], [], []>} : vector<2x32xf32>, vector<32x128xf32>, vector<2x128xf32> -> vector<2x128xf32>
    %379 = arith.addf %377, %378 : vector<2x128xf32>
    %380 = arith.negf %379 : vector<2x128xf32>
    %381 = math.exp %380 : vector<2x128xf32>
    %cst_70 = arith.constant 1.000000e+00 : f32
    %382 = vector.broadcast %cst_70 : f32 to vector<2x128xf32>
    %383 = arith.addf %382, %381 : vector<2x128xf32>
    %384 = arith.divf %382, %383 : vector<2x128xf32>
    %385 = math.tanh %379 : vector<2x128xf32>
    %386 = vector.extract_strided_slice %384 {offsets = [0, 0], sizes = [2, 32], strides = [1, 1]} : vector<2x128xf32> to vector<2x32xf32>
    %387 = vector.extract_strided_slice %384 {offsets = [0, 32], sizes = [2, 32], strides = [1, 1]} : vector<2x128xf32> to vector<2x32xf32>
    %388 = vector.extract_strided_slice %385 {offsets = [0, 64], sizes = [2, 32], strides = [1, 1]} : vector<2x128xf32> to vector<2x32xf32>
    %389 = vector.extract_strided_slice %384 {offsets = [0, 96], sizes = [2, 32], strides = [1, 1]} : vector<2x128xf32> to vector<2x32xf32>
    %390 = arith.mulf %387, %341 : vector<2x32xf32>
    %391 = arith.mulf %386, %388 : vector<2x32xf32>
    %392 = arith.addf %390, %391 : vector<2x32xf32>
    %393 = math.tanh %392 : vector<2x32xf32>
    %394 = arith.mulf %389, %393 : vector<2x32xf32>
    %395 = vector.extract_strided_slice %2 {offsets = [12, 0], sizes = [2, 1], strides = [1, 1]} : vector<16x1xi1> to vector<2x1xi1>
    %396 = vector.shape_cast %395 : vector<2x1xi1> to vector<2x1xi1>
    %397 = vector.broadcast %396 : vector<2x1xi1> to vector<2x32xi1>
    %398 = arith.select %397, %394, %338 : vector<2x32xi1>, vector<2x32xf32>
    %399 = vector.shape_cast %395 : vector<2x1xi1> to vector<2x1xi1>
    %400 = vector.broadcast %399 : vector<2x1xi1> to vector<2x32xi1>
    %401 = arith.select %400, %392, %341 : vector<2x32xi1>, vector<2x32xf32>
    %cst_71 = arith.constant 0.000000e+00 : f32
    %402 = vector.shape_cast %395 : vector<2x1xi1> to vector<2x1xi1>
    %403 = vector.broadcast %402 : vector<2x1xi1> to vector<2x32xi1>
    %404 = vector.broadcast %cst_71 : f32 to vector<2x32xf32>
    %405 = arith.select %403, %394, %404 : vector<2x32xi1>, vector<2x32xf32>
    %c12_72 = arith.constant 12 : index
    %c0_73 = arith.constant 0 : index
    %406 = vector.load %arg11[%c12_72, %c0_73] : memref<16x64xf32, #tpu.memory_space<vmem>>, vector<2x32xf32>
    tpu.vector_store %arg11[%c12_72, %c0_73], %405 {strides = array<i32>} : memref<16x64xf32, #tpu.memory_space<vmem>>, vector<2x32xf32>,
    %407 = vector.extract_strided_slice %8 {offsets = [2, 128], sizes = [2, 128], strides = [1, 1]} : vector<16x256xf32> to vector<2x128xf32>
    %cst_74 = arith.constant dense<0.000000e+00> : vector<2x128xf32>
    %408 = tpu.matmul %368, %12, %cst_74 {dimension_numbers = #tpu.dot_dimension_numbers<[1], [0], [0], [1], [0, 0, 1, 1], [], []>} : vector<2x32xf32>, vector<32x128xf32>, vector<2x128xf32> -> vector<2x128xf32>
    %409 = arith.addf %407, %408 : vector<2x128xf32>
    %410 = arith.negf %409 : vector<2x128xf32>
    %411 = math.exp %410 : vector<2x128xf32>
    %cst_75 = arith.constant 1.000000e+00 : f32
    %412 = vector.broadcast %cst_75 : f32 to vector<2x128xf32>
    %413 = arith.addf %412, %411 : vector<2x128xf32>
    %414 = arith.divf %412, %413 : vector<2x128xf32>
    %415 = math.tanh %409 : vector<2x128xf32>
    %416 = vector.extract_strided_slice %414 {offsets = [0, 0], sizes = [2, 32], strides = [1, 1]} : vector<2x128xf32> to vector<2x32xf32>
    %417 = vector.extract_strided_slice %414 {offsets = [0, 32], sizes = [2, 32], strides = [1, 1]} : vector<2x128xf32> to vector<2x32xf32>
    %418 = vector.extract_strided_slice %415 {offsets = [0, 64], sizes = [2, 32], strides = [1, 1]} : vector<2x128xf32> to vector<2x32xf32>
    %419 = vector.extract_strided_slice %414 {offsets = [0, 96], sizes = [2, 32], strides = [1, 1]} : vector<2x128xf32> to vector<2x32xf32>
    %420 = arith.mulf %417, %371 : vector<2x32xf32>
    %421 = arith.mulf %416, %418 : vector<2x32xf32>
    %422 = arith.addf %420, %421 : vector<2x32xf32>
    %423 = math.tanh %422 : vector<2x32xf32>
    %424 = arith.mulf %419, %423 : vector<2x32xf32>
    %425 = vector.extract_strided_slice %2 {offsets = [2, 0], sizes = [2, 1], strides = [1, 1]} : vector<16x1xi1> to vector<2x1xi1>
    %426 = vector.shape_cast %425 : vector<2x1xi1> to vector<2x1xi1>
    %427 = vector.broadcast %426 : vector<2x1xi1> to vector<2x32xi1>
    %428 = arith.select %427, %424, %368 : vector<2x32xi1>, vector<2x32xf32>
    %429 = vector.shape_cast %425 : vector<2x1xi1> to vector<2x1xi1>
    %430 = vector.broadcast %429 : vector<2x1xi1> to vector<2x32xi1>
    %431 = arith.select %430, %422, %371 : vector<2x32xi1>, vector<2x32xf32>
    %cst_76 = arith.constant 0.000000e+00 : f32
    %432 = vector.shape_cast %425 : vector<2x1xi1> to vector<2x1xi1>
    %433 = vector.broadcast %432 : vector<2x1xi1> to vector<2x32xi1>
    %434 = vector.broadcast %cst_76 : f32 to vector<2x32xf32>
    %435 = arith.select %433, %424, %434 : vector<2x32xi1>, vector<2x32xf32>
    %c2_77 = arith.constant 2 : index
    %c32_78 = arith.constant 32 : index
    %436 = vector.load %arg11[%c2_77, %c32_78] : memref<16x64xf32, #tpu.memory_space<vmem>>, vector<2x32xf32>
    tpu.vector_store %arg11[%c2_77, %c32_78], %435 {strides = array<i32>} : memref<16x64xf32, #tpu.memory_space<vmem>>, vector<2x32xf32>,
    %437 = vector.extract_strided_slice %8 {offsets = [14, 0], sizes = [2, 128], strides = [1, 1]} : vector<16x256xf32> to vector<2x128xf32>
    %cst_79 = arith.constant dense<0.000000e+00> : vector<2x128xf32>
    %438 = tpu.matmul %398, %10, %cst_79 {dimension_numbers = #tpu.dot_dimension_numbers<[1], [0], [0], [1], [0, 0, 1, 1], [], []>} : vector<2x32xf32>, vector<32x128xf32>, vector<2x128xf32> -> vector<2x128xf32>
    %439 = arith.addf %437, %438 : vector<2x128xf32>
    %440 = arith.negf %439 : vector<2x128xf32>
    %441 = math.exp %440 : vector<2x128xf32>
    %cst_80 = arith.constant 1.000000e+00 : f32
    %442 = vector.broadcast %cst_80 : f32 to vector<2x128xf32>
    %443 = arith.addf %442, %441 : vector<2x128xf32>
    %444 = arith.divf %442, %443 : vector<2x128xf32>
    %445 = math.tanh %439 : vector<2x128xf32>
    %446 = vector.extract_strided_slice %444 {offsets = [0, 0], sizes = [2, 32], strides = [1, 1]} : vector<2x128xf32> to vector<2x32xf32>
    %447 = vector.extract_strided_slice %444 {offsets = [0, 32], sizes = [2, 32], strides = [1, 1]} : vector<2x128xf32> to vector<2x32xf32>
    %448 = vector.extract_strided_slice %445 {offsets = [0, 64], sizes = [2, 32], strides = [1, 1]} : vector<2x128xf32> to vector<2x32xf32>
    %449 = vector.extract_strided_slice %444 {offsets = [0, 96], sizes = [2, 32], strides = [1, 1]} : vector<2x128xf32> to vector<2x32xf32>
    %450 = arith.mulf %447, %401 : vector<2x32xf32>
    %451 = arith.mulf %446, %448 : vector<2x32xf32>
    %452 = arith.addf %450, %451 : vector<2x32xf32>
    %453 = math.tanh %452 : vector<2x32xf32>
    %454 = arith.mulf %449, %453 : vector<2x32xf32>
    %455 = vector.extract_strided_slice %2 {offsets = [14, 0], sizes = [2, 1], strides = [1, 1]} : vector<16x1xi1> to vector<2x1xi1>
    %456 = vector.shape_cast %455 : vector<2x1xi1> to vector<2x1xi1>
    %457 = vector.broadcast %456 : vector<2x1xi1> to vector<2x32xi1>
    %458 = arith.select %457, %454, %398 : vector<2x32xi1>, vector<2x32xf32>
    %cst_81 = arith.constant 0.000000e+00 : f32
    %459 = vector.shape_cast %455 : vector<2x1xi1> to vector<2x1xi1>
    %460 = vector.broadcast %459 : vector<2x1xi1> to vector<2x32xi1>
    %461 = vector.broadcast %cst_81 : f32 to vector<2x32xf32>
    %462 = arith.select %460, %454, %461 : vector<2x32xi1>, vector<2x32xf32>
    %c14_82 = arith.constant 14 : index
    %c0_83 = arith.constant 0 : index
    %463 = vector.load %arg11[%c14_82, %c0_83] : memref<16x64xf32, #tpu.memory_space<vmem>>, vector<2x32xf32>
    tpu.vector_store %arg11[%c14_82, %c0_83], %462 {strides = array<i32>} : memref<16x64xf32, #tpu.memory_space<vmem>>, vector<2x32xf32>,
    %464 = vector.extract_strided_slice %8 {offsets = [0, 128], sizes = [2, 128], strides = [1, 1]} : vector<16x256xf32> to vector<2x128xf32>
    %cst_84 = arith.constant dense<0.000000e+00> : vector<2x128xf32>
    %465 = tpu.matmul %428, %12, %cst_84 {dimension_numbers = #tpu.dot_dimension_numbers<[1], [0], [0], [1], [0, 0, 1, 1], [], []>} : vector<2x32xf32>, vector<32x128xf32>, vector<2x128xf32> -> vector<2x128xf32>
    %466 = arith.addf %464, %465 : vector<2x128xf32>
    %467 = arith.negf %466 : vector<2x128xf32>
    %468 = math.exp %467 : vector<2x128xf32>
    %cst_85 = arith.constant 1.000000e+00 : f32
    %469 = vector.broadcast %cst_85 : f32 to vector<2x128xf32>
    %470 = arith.addf %469, %468 : vector<2x128xf32>
    %471 = arith.divf %469, %470 : vector<2x128xf32>
    %472 = math.tanh %466 : vector<2x128xf32>
    %473 = vector.extract_strided_slice %471 {offsets = [0, 0], sizes = [2, 32], strides = [1, 1]} : vector<2x128xf32> to vector<2x32xf32>
    %474 = vector.extract_strided_slice %471 {offsets = [0, 32], sizes = [2, 32], strides = [1, 1]} : vector<2x128xf32> to vector<2x32xf32>
    %475 = vector.extract_strided_slice %472 {offsets = [0, 64], sizes = [2, 32], strides = [1, 1]} : vector<2x128xf32> to vector<2x32xf32>
    %476 = vector.extract_strided_slice %471 {offsets = [0, 96], sizes = [2, 32], strides = [1, 1]} : vector<2x128xf32> to vector<2x32xf32>
    %477 = arith.mulf %474, %431 : vector<2x32xf32>
    %478 = arith.mulf %473, %475 : vector<2x32xf32>
    %479 = arith.addf %477, %478 : vector<2x32xf32>
    %480 = math.tanh %479 : vector<2x32xf32>
    %481 = arith.mulf %476, %480 : vector<2x32xf32>
    %482 = vector.extract_strided_slice %2 {offsets = [0, 0], sizes = [2, 1], strides = [1, 1]} : vector<16x1xi1> to vector<2x1xi1>
    %483 = vector.shape_cast %482 : vector<2x1xi1> to vector<2x1xi1>
    %484 = vector.broadcast %483 : vector<2x1xi1> to vector<2x32xi1>
    %485 = arith.select %484, %481, %428 : vector<2x32xi1>, vector<2x32xf32>
    %cst_86 = arith.constant 0.000000e+00 : f32
    %486 = vector.shape_cast %482 : vector<2x1xi1> to vector<2x1xi1>
    %487 = vector.broadcast %486 : vector<2x1xi1> to vector<2x32xi1>
    %488 = vector.broadcast %cst_86 : f32 to vector<2x32xf32>
    %489 = arith.select %487, %481, %488 : vector<2x32xi1>, vector<2x32xf32>
    %c0_87 = arith.constant 0 : index
    %c32_88 = arith.constant 32 : index
    %490 = vector.load %arg11[%c0_87, %c32_88] : memref<16x64xf32, #tpu.memory_space<vmem>>, vector<2x32xf32>
    tpu.vector_store %arg11[%c0_87, %c32_88], %489 {strides = array<i32>} : memref<16x64xf32, #tpu.memory_space<vmem>>, vector<2x32xf32>,
    %c0_89 = arith.constant 0 : index
    %c0_90 = arith.constant 0 : index
    %491 = vector.load %arg11[%c0_89, %c0_90] : memref<16x64xf32, #tpu.memory_space<vmem>>, vector<16x64xf32>
    %c0_91 = arith.constant 0 : index
    %c0_92 = arith.constant 0 : index
    %492 = vector.load %arg5[%c0_91, %c0_92] : memref<64x256xf32, #tpu.memory_space<vmem>>, vector<64x256xf32>
    %cst_93 = arith.constant dense<0.000000e+00> : vector<16x256xf32>
    %493 = tpu.matmul %491, %492, %cst_93 {dimension_numbers = #tpu.dot_dimension_numbers<[1], [0], [0], [1], [0, 0, 1, 1], [], []>} : vector<16x64xf32>, vector<64x256xf32>, vector<16x256xf32> -> vector<16x256xf32>
    %c0_94 = arith.constant 0 : index
    %c0_95 = arith.constant 0 : index
    %494 = vector.load %arg7[%c0_94, %c0_95] : memref<1x256xf32, #tpu.memory_space<vmem>>, vector<1x256xf32>
    %495 = vector.broadcast %494 : vector<1x256xf32> to vector<16x256xf32>
    %496 = arith.addf %493, %495 : vector<16x256xf32>
    %c0_96 = arith.constant 0 : index
    %c0_97 = arith.constant 0 : index
    %c0_98 = arith.constant 0 : index
    %497 = vector.load %arg6[%c0_96, %c0_97, %c0_98] : memref<2x32x128xf32, #tpu.memory_space<vmem>>, vector<1x32x128xf32>
    %498 = vector.shape_cast %497 : vector<1x32x128xf32> to vector<32x128xf32>
    %c1_99 = arith.constant 1 : index
    %c0_100 = arith.constant 0 : index
    %c0_101 = arith.constant 0 : index
    %499 = vector.load %arg6[%c1_99, %c0_100, %c0_101] : memref<2x32x128xf32, #tpu.memory_space<vmem>>, vector<1x32x128xf32>
    %500 = vector.shape_cast %499 : vector<1x32x128xf32> to vector<32x128xf32>
    %cst_102 = arith.constant 0.000000e+00 : f32
    %501 = vector.broadcast %cst_102 : f32 to vector<2x32xf32>
    %cst_103 = arith.constant 0.000000e+00 : f32
    %502 = vector.broadcast %cst_103 : f32 to vector<2x32xf32>
    %cst_104 = arith.constant 0.000000e+00 : f32
    %503 = vector.broadcast %cst_104 : f32 to vector<2x32xf32>
    %cst_105 = arith.constant 0.000000e+00 : f32
    %504 = vector.broadcast %cst_105 : f32 to vector<2x32xf32>
    %505 = vector.extract_strided_slice %496 {offsets = [0, 0], sizes = [2, 128], strides = [1, 1]} : vector<16x256xf32> to vector<2x128xf32>
    %cst_106 = arith.constant dense<0.000000e+00> : vector<2x128xf32>
    %506 = tpu.matmul %501, %498, %cst_106 {dimension_numbers = #tpu.dot_dimension_numbers<[1], [0], [0], [1], [0, 0, 1, 1], [], []>} : vector<2x32xf32>, vector<32x128xf32>, vector<2x128xf32> -> vector<2x128xf32>
    %507 = arith.addf %505, %506 : vector<2x128xf32>
    %508 = arith.negf %507 : vector<2x128xf32>
    %509 = math.exp %508 : vector<2x128xf32>
    %cst_107 = arith.constant 1.000000e+00 : f32
    %510 = vector.broadcast %cst_107 : f32 to vector<2x128xf32>
    %511 = arith.addf %510, %509 : vector<2x128xf32>
    %512 = arith.divf %510, %511 : vector<2x128xf32>
    %513 = math.tanh %507 : vector<2x128xf32>
    %514 = vector.extract_strided_slice %512 {offsets = [0, 0], sizes = [2, 32], strides = [1, 1]} : vector<2x128xf32> to vector<2x32xf32>
    %515 = vector.extract_strided_slice %512 {offsets = [0, 32], sizes = [2, 32], strides = [1, 1]} : vector<2x128xf32> to vector<2x32xf32>
    %516 = vector.extract_strided_slice %513 {offsets = [0, 64], sizes = [2, 32], strides = [1, 1]} : vector<2x128xf32> to vector<2x32xf32>
    %517 = vector.extract_strided_slice %512 {offsets = [0, 96], sizes = [2, 32], strides = [1, 1]} : vector<2x128xf32> to vector<2x32xf32>
    %518 = arith.mulf %515, %503 : vector<2x32xf32>
    %519 = arith.mulf %514, %516 : vector<2x32xf32>
    %520 = arith.addf %518, %519 : vector<2x32xf32>
    %521 = math.tanh %520 : vector<2x32xf32>
    %522 = arith.mulf %517, %521 : vector<2x32xf32>
    %523 = vector.extract_strided_slice %2 {offsets = [0, 0], sizes = [2, 1], strides = [1, 1]} : vector<16x1xi1> to vector<2x1xi1>
    %524 = vector.shape_cast %523 : vector<2x1xi1> to vector<2x1xi1>
    %525 = vector.broadcast %524 : vector<2x1xi1> to vector<2x32xi1>
    %526 = arith.select %525, %522, %501 : vector<2x32xi1>, vector<2x32xf32>
    %527 = vector.shape_cast %523 : vector<2x1xi1> to vector<2x1xi1>
    %528 = vector.broadcast %527 : vector<2x1xi1> to vector<2x32xi1>
    %529 = arith.select %528, %520, %503 : vector<2x32xi1>, vector<2x32xf32>
    %530 = vector.extract_strided_slice %496 {offsets = [14, 128], sizes = [2, 128], strides = [1, 1]} : vector<16x256xf32> to vector<2x128xf32>
    %cst_108 = arith.constant dense<0.000000e+00> : vector<2x128xf32>
    %531 = tpu.matmul %502, %500, %cst_108 {dimension_numbers = #tpu.dot_dimension_numbers<[1], [0], [0], [1], [0, 0, 1, 1], [], []>} : vector<2x32xf32>, vector<32x128xf32>, vector<2x128xf32> -> vector<2x128xf32>
    %532 = arith.addf %530, %531 : vector<2x128xf32>
    %533 = arith.negf %532 : vector<2x128xf32>
    %534 = math.exp %533 : vector<2x128xf32>
    %cst_109 = arith.constant 1.000000e+00 : f32
    %535 = vector.broadcast %cst_109 : f32 to vector<2x128xf32>
    %536 = arith.addf %535, %534 : vector<2x128xf32>
    %537 = arith.divf %535, %536 : vector<2x128xf32>
    %538 = math.tanh %532 : vector<2x128xf32>
    %539 = vector.extract_strided_slice %537 {offsets = [0, 0], sizes = [2, 32], strides = [1, 1]} : vector<2x128xf32> to vector<2x32xf32>
    %540 = vector.extract_strided_slice %537 {offsets = [0, 32], sizes = [2, 32], strides = [1, 1]} : vector<2x128xf32> to vector<2x32xf32>
    %541 = vector.extract_strided_slice %538 {offsets = [0, 64], sizes = [2, 32], strides = [1, 1]} : vector<2x128xf32> to vector<2x32xf32>
    %542 = vector.extract_strided_slice %537 {offsets = [0, 96], sizes = [2, 32], strides = [1, 1]} : vector<2x128xf32> to vector<2x32xf32>
    %543 = arith.mulf %540, %504 : vector<2x32xf32>
    %544 = arith.mulf %539, %541 : vector<2x32xf32>
    %545 = arith.addf %543, %544 : vector<2x32xf32>
    %546 = math.tanh %545 : vector<2x32xf32>
    %547 = arith.mulf %542, %546 : vector<2x32xf32>
    %548 = vector.extract_strided_slice %2 {offsets = [14, 0], sizes = [2, 1], strides = [1, 1]} : vector<16x1xi1> to vector<2x1xi1>
    %549 = vector.shape_cast %548 : vector<2x1xi1> to vector<2x1xi1>
    %550 = vector.broadcast %549 : vector<2x1xi1> to vector<2x32xi1>
    %551 = arith.select %550, %547, %502 : vector<2x32xi1>, vector<2x32xf32>
    %552 = vector.shape_cast %548 : vector<2x1xi1> to vector<2x1xi1>
    %553 = vector.broadcast %552 : vector<2x1xi1> to vector<2x32xi1>
    %554 = arith.select %553, %545, %504 : vector<2x32xi1>, vector<2x32xf32>
    %555 = vector.extract_strided_slice %496 {offsets = [2, 0], sizes = [2, 128], strides = [1, 1]} : vector<16x256xf32> to vector<2x128xf32>
    %cst_110 = arith.constant dense<0.000000e+00> : vector<2x128xf32>
    %556 = tpu.matmul %526, %498, %cst_110 {dimension_numbers = #tpu.dot_dimension_numbers<[1], [0], [0], [1], [0, 0, 1, 1], [], []>} : vector<2x32xf32>, vector<32x128xf32>, vector<2x128xf32> -> vector<2x128xf32>
    %557 = arith.addf %555, %556 : vector<2x128xf32>
    %558 = arith.negf %557 : vector<2x128xf32>
    %559 = math.exp %558 : vector<2x128xf32>
    %cst_111 = arith.constant 1.000000e+00 : f32
    %560 = vector.broadcast %cst_111 : f32 to vector<2x128xf32>
    %561 = arith.addf %560, %559 : vector<2x128xf32>
    %562 = arith.divf %560, %561 : vector<2x128xf32>
    %563 = math.tanh %557 : vector<2x128xf32>
    %564 = vector.extract_strided_slice %562 {offsets = [0, 0], sizes = [2, 32], strides = [1, 1]} : vector<2x128xf32> to vector<2x32xf32>
    %565 = vector.extract_strided_slice %562 {offsets = [0, 32], sizes = [2, 32], strides = [1, 1]} : vector<2x128xf32> to vector<2x32xf32>
    %566 = vector.extract_strided_slice %563 {offsets = [0, 64], sizes = [2, 32], strides = [1, 1]} : vector<2x128xf32> to vector<2x32xf32>
    %567 = vector.extract_strided_slice %562 {offsets = [0, 96], sizes = [2, 32], strides = [1, 1]} : vector<2x128xf32> to vector<2x32xf32>
    %568 = arith.mulf %565, %529 : vector<2x32xf32>
    %569 = arith.mulf %564, %566 : vector<2x32xf32>
    %570 = arith.addf %568, %569 : vector<2x32xf32>
    %571 = math.tanh %570 : vector<2x32xf32>
    %572 = arith.mulf %567, %571 : vector<2x32xf32>
    %573 = vector.extract_strided_slice %2 {offsets = [2, 0], sizes = [2, 1], strides = [1, 1]} : vector<16x1xi1> to vector<2x1xi1>
    %574 = vector.shape_cast %573 : vector<2x1xi1> to vector<2x1xi1>
    %575 = vector.broadcast %574 : vector<2x1xi1> to vector<2x32xi1>
    %576 = arith.select %575, %572, %526 : vector<2x32xi1>, vector<2x32xf32>
    %577 = vector.shape_cast %573 : vector<2x1xi1> to vector<2x1xi1>
    %578 = vector.broadcast %577 : vector<2x1xi1> to vector<2x32xi1>
    %579 = arith.select %578, %570, %529 : vector<2x32xi1>, vector<2x32xf32>
    %580 = vector.extract_strided_slice %496 {offsets = [12, 128], sizes = [2, 128], strides = [1, 1]} : vector<16x256xf32> to vector<2x128xf32>
    %cst_112 = arith.constant dense<0.000000e+00> : vector<2x128xf32>
    %581 = tpu.matmul %551, %500, %cst_112 {dimension_numbers = #tpu.dot_dimension_numbers<[1], [0], [0], [1], [0, 0, 1, 1], [], []>} : vector<2x32xf32>, vector<32x128xf32>, vector<2x128xf32> -> vector<2x128xf32>
    %582 = arith.addf %580, %581 : vector<2x128xf32>
    %583 = arith.negf %582 : vector<2x128xf32>
    %584 = math.exp %583 : vector<2x128xf32>
    %cst_113 = arith.constant 1.000000e+00 : f32
    %585 = vector.broadcast %cst_113 : f32 to vector<2x128xf32>
    %586 = arith.addf %585, %584 : vector<2x128xf32>
    %587 = arith.divf %585, %586 : vector<2x128xf32>
    %588 = math.tanh %582 : vector<2x128xf32>
    %589 = vector.extract_strided_slice %587 {offsets = [0, 0], sizes = [2, 32], strides = [1, 1]} : vector<2x128xf32> to vector<2x32xf32>
    %590 = vector.extract_strided_slice %587 {offsets = [0, 32], sizes = [2, 32], strides = [1, 1]} : vector<2x128xf32> to vector<2x32xf32>
    %591 = vector.extract_strided_slice %588 {offsets = [0, 64], sizes = [2, 32], strides = [1, 1]} : vector<2x128xf32> to vector<2x32xf32>
    %592 = vector.extract_strided_slice %587 {offsets = [0, 96], sizes = [2, 32], strides = [1, 1]} : vector<2x128xf32> to vector<2x32xf32>
    %593 = arith.mulf %590, %554 : vector<2x32xf32>
    %594 = arith.mulf %589, %591 : vector<2x32xf32>
    %595 = arith.addf %593, %594 : vector<2x32xf32>
    %596 = math.tanh %595 : vector<2x32xf32>
    %597 = arith.mulf %592, %596 : vector<2x32xf32>
    %598 = vector.extract_strided_slice %2 {offsets = [12, 0], sizes = [2, 1], strides = [1, 1]} : vector<16x1xi1> to vector<2x1xi1>
    %599 = vector.shape_cast %598 : vector<2x1xi1> to vector<2x1xi1>
    %600 = vector.broadcast %599 : vector<2x1xi1> to vector<2x32xi1>
    %601 = arith.select %600, %597, %551 : vector<2x32xi1>, vector<2x32xf32>
    %602 = vector.shape_cast %598 : vector<2x1xi1> to vector<2x1xi1>
    %603 = vector.broadcast %602 : vector<2x1xi1> to vector<2x32xi1>
    %604 = arith.select %603, %595, %554 : vector<2x32xi1>, vector<2x32xf32>
    %605 = vector.extract_strided_slice %496 {offsets = [4, 0], sizes = [2, 128], strides = [1, 1]} : vector<16x256xf32> to vector<2x128xf32>
    %cst_114 = arith.constant dense<0.000000e+00> : vector<2x128xf32>
    %606 = tpu.matmul %576, %498, %cst_114 {dimension_numbers = #tpu.dot_dimension_numbers<[1], [0], [0], [1], [0, 0, 1, 1], [], []>} : vector<2x32xf32>, vector<32x128xf32>, vector<2x128xf32> -> vector<2x128xf32>
    %607 = arith.addf %605, %606 : vector<2x128xf32>
    %608 = arith.negf %607 : vector<2x128xf32>
    %609 = math.exp %608 : vector<2x128xf32>
    %cst_115 = arith.constant 1.000000e+00 : f32
    %610 = vector.broadcast %cst_115 : f32 to vector<2x128xf32>
    %611 = arith.addf %610, %609 : vector<2x128xf32>
    %612 = arith.divf %610, %611 : vector<2x128xf32>
    %613 = math.tanh %607 : vector<2x128xf32>
    %614 = vector.extract_strided_slice %612 {offsets = [0, 0], sizes = [2, 32], strides = [1, 1]} : vector<2x128xf32> to vector<2x32xf32>
    %615 = vector.extract_strided_slice %612 {offsets = [0, 32], sizes = [2, 32], strides = [1, 1]} : vector<2x128xf32> to vector<2x32xf32>
    %616 = vector.extract_strided_slice %613 {offsets = [0, 64], sizes = [2, 32], strides = [1, 1]} : vector<2x128xf32> to vector<2x32xf32>
    %617 = vector.extract_strided_slice %612 {offsets = [0, 96], sizes = [2, 32], strides = [1, 1]} : vector<2x128xf32> to vector<2x32xf32>
    %618 = arith.mulf %615, %579 : vector<2x32xf32>
    %619 = arith.mulf %614, %616 : vector<2x32xf32>
    %620 = arith.addf %618, %619 : vector<2x32xf32>
    %621 = math.tanh %620 : vector<2x32xf32>
    %622 = arith.mulf %617, %621 : vector<2x32xf32>
    %623 = vector.extract_strided_slice %2 {offsets = [4, 0], sizes = [2, 1], strides = [1, 1]} : vector<16x1xi1> to vector<2x1xi1>
    %624 = vector.shape_cast %623 : vector<2x1xi1> to vector<2x1xi1>
    %625 = vector.broadcast %624 : vector<2x1xi1> to vector<2x32xi1>
    %626 = arith.select %625, %622, %576 : vector<2x32xi1>, vector<2x32xf32>
    %627 = vector.shape_cast %623 : vector<2x1xi1> to vector<2x1xi1>
    %628 = vector.broadcast %627 : vector<2x1xi1> to vector<2x32xi1>
    %629 = arith.select %628, %620, %579 : vector<2x32xi1>, vector<2x32xf32>
    %630 = vector.extract_strided_slice %496 {offsets = [10, 128], sizes = [2, 128], strides = [1, 1]} : vector<16x256xf32> to vector<2x128xf32>
    %cst_116 = arith.constant dense<0.000000e+00> : vector<2x128xf32>
    %631 = tpu.matmul %601, %500, %cst_116 {dimension_numbers = #tpu.dot_dimension_numbers<[1], [0], [0], [1], [0, 0, 1, 1], [], []>} : vector<2x32xf32>, vector<32x128xf32>, vector<2x128xf32> -> vector<2x128xf32>
    %632 = arith.addf %630, %631 : vector<2x128xf32>
    %633 = arith.negf %632 : vector<2x128xf32>
    %634 = math.exp %633 : vector<2x128xf32>
    %cst_117 = arith.constant 1.000000e+00 : f32
    %635 = vector.broadcast %cst_117 : f32 to vector<2x128xf32>
    %636 = arith.addf %635, %634 : vector<2x128xf32>
    %637 = arith.divf %635, %636 : vector<2x128xf32>
    %638 = math.tanh %632 : vector<2x128xf32>
    %639 = vector.extract_strided_slice %637 {offsets = [0, 0], sizes = [2, 32], strides = [1, 1]} : vector<2x128xf32> to vector<2x32xf32>
    %640 = vector.extract_strided_slice %637 {offsets = [0, 32], sizes = [2, 32], strides = [1, 1]} : vector<2x128xf32> to vector<2x32xf32>
    %641 = vector.extract_strided_slice %638 {offsets = [0, 64], sizes = [2, 32], strides = [1, 1]} : vector<2x128xf32> to vector<2x32xf32>
    %642 = vector.extract_strided_slice %637 {offsets = [0, 96], sizes = [2, 32], strides = [1, 1]} : vector<2x128xf32> to vector<2x32xf32>
    %643 = arith.mulf %640, %604 : vector<2x32xf32>
    %644 = arith.mulf %639, %641 : vector<2x32xf32>
    %645 = arith.addf %643, %644 : vector<2x32xf32>
    %646 = math.tanh %645 : vector<2x32xf32>
    %647 = arith.mulf %642, %646 : vector<2x32xf32>
    %648 = vector.extract_strided_slice %2 {offsets = [10, 0], sizes = [2, 1], strides = [1, 1]} : vector<16x1xi1> to vector<2x1xi1>
    %649 = vector.shape_cast %648 : vector<2x1xi1> to vector<2x1xi1>
    %650 = vector.broadcast %649 : vector<2x1xi1> to vector<2x32xi1>
    %651 = arith.select %650, %647, %601 : vector<2x32xi1>, vector<2x32xf32>
    %652 = vector.shape_cast %648 : vector<2x1xi1> to vector<2x1xi1>
    %653 = vector.broadcast %652 : vector<2x1xi1> to vector<2x32xi1>
    %654 = arith.select %653, %645, %604 : vector<2x32xi1>, vector<2x32xf32>
    %655 = vector.extract_strided_slice %496 {offsets = [6, 0], sizes = [2, 128], strides = [1, 1]} : vector<16x256xf32> to vector<2x128xf32>
    %cst_118 = arith.constant dense<0.000000e+00> : vector<2x128xf32>
    %656 = tpu.matmul %626, %498, %cst_118 {dimension_numbers = #tpu.dot_dimension_numbers<[1], [0], [0], [1], [0, 0, 1, 1], [], []>} : vector<2x32xf32>, vector<32x128xf32>, vector<2x128xf32> -> vector<2x128xf32>
    %657 = arith.addf %655, %656 : vector<2x128xf32>
    %658 = arith.negf %657 : vector<2x128xf32>
    %659 = math.exp %658 : vector<2x128xf32>
    %cst_119 = arith.constant 1.000000e+00 : f32
    %660 = vector.broadcast %cst_119 : f32 to vector<2x128xf32>
    %661 = arith.addf %660, %659 : vector<2x128xf32>
    %662 = arith.divf %660, %661 : vector<2x128xf32>
    %663 = math.tanh %657 : vector<2x128xf32>
    %664 = vector.extract_strided_slice %662 {offsets = [0, 0], sizes = [2, 32], strides = [1, 1]} : vector<2x128xf32> to vector<2x32xf32>
    %665 = vector.extract_strided_slice %662 {offsets = [0, 32], sizes = [2, 32], strides = [1, 1]} : vector<2x128xf32> to vector<2x32xf32>
    %666 = vector.extract_strided_slice %663 {offsets = [0, 64], sizes = [2, 32], strides = [1, 1]} : vector<2x128xf32> to vector<2x32xf32>
    %667 = vector.extract_strided_slice %662 {offsets = [0, 96], sizes = [2, 32], strides = [1, 1]} : vector<2x128xf32> to vector<2x32xf32>
    %668 = arith.mulf %665, %629 : vector<2x32xf32>
    %669 = arith.mulf %664, %666 : vector<2x32xf32>
    %670 = arith.addf %668, %669 : vector<2x32xf32>
    %671 = math.tanh %670 : vector<2x32xf32>
    %672 = arith.mulf %667, %671 : vector<2x32xf32>
    %673 = vector.extract_strided_slice %2 {offsets = [6, 0], sizes = [2, 1], strides = [1, 1]} : vector<16x1xi1> to vector<2x1xi1>
    %674 = vector.shape_cast %673 : vector<2x1xi1> to vector<2x1xi1>
    %675 = vector.broadcast %674 : vector<2x1xi1> to vector<2x32xi1>
    %676 = arith.select %675, %672, %626 : vector<2x32xi1>, vector<2x32xf32>
    %677 = vector.shape_cast %673 : vector<2x1xi1> to vector<2x1xi1>
    %678 = vector.broadcast %677 : vector<2x1xi1> to vector<2x32xi1>
    %679 = arith.select %678, %670, %629 : vector<2x32xi1>, vector<2x32xf32>
    %680 = vector.extract_strided_slice %496 {offsets = [8, 128], sizes = [2, 128], strides = [1, 1]} : vector<16x256xf32> to vector<2x128xf32>
    %cst_120 = arith.constant dense<0.000000e+00> : vector<2x128xf32>
    %681 = tpu.matmul %651, %500, %cst_120 {dimension_numbers = #tpu.dot_dimension_numbers<[1], [0], [0], [1], [0, 0, 1, 1], [], []>} : vector<2x32xf32>, vector<32x128xf32>, vector<2x128xf32> -> vector<2x128xf32>
    %682 = arith.addf %680, %681 : vector<2x128xf32>
    %683 = arith.negf %682 : vector<2x128xf32>
    %684 = math.exp %683 : vector<2x128xf32>
    %cst_121 = arith.constant 1.000000e+00 : f32
    %685 = vector.broadcast %cst_121 : f32 to vector<2x128xf32>
    %686 = arith.addf %685, %684 : vector<2x128xf32>
    %687 = arith.divf %685, %686 : vector<2x128xf32>
    %688 = math.tanh %682 : vector<2x128xf32>
    %689 = vector.extract_strided_slice %687 {offsets = [0, 0], sizes = [2, 32], strides = [1, 1]} : vector<2x128xf32> to vector<2x32xf32>
    %690 = vector.extract_strided_slice %687 {offsets = [0, 32], sizes = [2, 32], strides = [1, 1]} : vector<2x128xf32> to vector<2x32xf32>
    %691 = vector.extract_strided_slice %688 {offsets = [0, 64], sizes = [2, 32], strides = [1, 1]} : vector<2x128xf32> to vector<2x32xf32>
    %692 = vector.extract_strided_slice %687 {offsets = [0, 96], sizes = [2, 32], strides = [1, 1]} : vector<2x128xf32> to vector<2x32xf32>
    %693 = arith.mulf %690, %654 : vector<2x32xf32>
    %694 = arith.mulf %689, %691 : vector<2x32xf32>
    %695 = arith.addf %693, %694 : vector<2x32xf32>
    %696 = math.tanh %695 : vector<2x32xf32>
    %697 = arith.mulf %692, %696 : vector<2x32xf32>
    %698 = vector.extract_strided_slice %2 {offsets = [8, 0], sizes = [2, 1], strides = [1, 1]} : vector<16x1xi1> to vector<2x1xi1>
    %699 = vector.shape_cast %698 : vector<2x1xi1> to vector<2x1xi1>
    %700 = vector.broadcast %699 : vector<2x1xi1> to vector<2x32xi1>
    %701 = arith.select %700, %697, %651 : vector<2x32xi1>, vector<2x32xf32>
    %702 = vector.shape_cast %698 : vector<2x1xi1> to vector<2x1xi1>
    %703 = vector.broadcast %702 : vector<2x1xi1> to vector<2x32xi1>
    %704 = arith.select %703, %695, %654 : vector<2x32xi1>, vector<2x32xf32>
    %705 = vector.extract_strided_slice %496 {offsets = [8, 0], sizes = [2, 128], strides = [1, 1]} : vector<16x256xf32> to vector<2x128xf32>
    %cst_122 = arith.constant dense<0.000000e+00> : vector<2x128xf32>
    %706 = tpu.matmul %676, %498, %cst_122 {dimension_numbers = #tpu.dot_dimension_numbers<[1], [0], [0], [1], [0, 0, 1, 1], [], []>} : vector<2x32xf32>, vector<32x128xf32>, vector<2x128xf32> -> vector<2x128xf32>
    %707 = arith.addf %705, %706 : vector<2x128xf32>
    %708 = arith.negf %707 : vector<2x128xf32>
    %709 = math.exp %708 : vector<2x128xf32>
    %cst_123 = arith.constant 1.000000e+00 : f32
    %710 = vector.broadcast %cst_123 : f32 to vector<2x128xf32>
    %711 = arith.addf %710, %709 : vector<2x128xf32>
    %712 = arith.divf %710, %711 : vector<2x128xf32>
    %713 = math.tanh %707 : vector<2x128xf32>
    %714 = vector.extract_strided_slice %712 {offsets = [0, 0], sizes = [2, 32], strides = [1, 1]} : vector<2x128xf32> to vector<2x32xf32>
    %715 = vector.extract_strided_slice %712 {offsets = [0, 32], sizes = [2, 32], strides = [1, 1]} : vector<2x128xf32> to vector<2x32xf32>
    %716 = vector.extract_strided_slice %713 {offsets = [0, 64], sizes = [2, 32], strides = [1, 1]} : vector<2x128xf32> to vector<2x32xf32>
    %717 = vector.extract_strided_slice %712 {offsets = [0, 96], sizes = [2, 32], strides = [1, 1]} : vector<2x128xf32> to vector<2x32xf32>
    %718 = arith.mulf %715, %679 : vector<2x32xf32>
    %719 = arith.mulf %714, %716 : vector<2x32xf32>
    %720 = arith.addf %718, %719 : vector<2x32xf32>
    %721 = math.tanh %720 : vector<2x32xf32>
    %722 = arith.mulf %717, %721 : vector<2x32xf32>
    %723 = vector.extract_strided_slice %2 {offsets = [8, 0], sizes = [2, 1], strides = [1, 1]} : vector<16x1xi1> to vector<2x1xi1>
    %724 = vector.shape_cast %723 : vector<2x1xi1> to vector<2x1xi1>
    %725 = vector.broadcast %724 : vector<2x1xi1> to vector<2x32xi1>
    %726 = arith.select %725, %722, %676 : vector<2x32xi1>, vector<2x32xf32>
    %727 = vector.shape_cast %723 : vector<2x1xi1> to vector<2x1xi1>
    %728 = vector.broadcast %727 : vector<2x1xi1> to vector<2x32xi1>
    %729 = arith.select %728, %720, %679 : vector<2x32xi1>, vector<2x32xf32>
    %730 = vector.extract_strided_slice %496 {offsets = [6, 128], sizes = [2, 128], strides = [1, 1]} : vector<16x256xf32> to vector<2x128xf32>
    %cst_124 = arith.constant dense<0.000000e+00> : vector<2x128xf32>
    %731 = tpu.matmul %701, %500, %cst_124 {dimension_numbers = #tpu.dot_dimension_numbers<[1], [0], [0], [1], [0, 0, 1, 1], [], []>} : vector<2x32xf32>, vector<32x128xf32>, vector<2x128xf32> -> vector<2x128xf32>
    %732 = arith.addf %730, %731 : vector<2x128xf32>
    %733 = arith.negf %732 : vector<2x128xf32>
    %734 = math.exp %733 : vector<2x128xf32>
    %cst_125 = arith.constant 1.000000e+00 : f32
    %735 = vector.broadcast %cst_125 : f32 to vector<2x128xf32>
    %736 = arith.addf %735, %734 : vector<2x128xf32>
    %737 = arith.divf %735, %736 : vector<2x128xf32>
    %738 = math.tanh %732 : vector<2x128xf32>
    %739 = vector.extract_strided_slice %737 {offsets = [0, 0], sizes = [2, 32], strides = [1, 1]} : vector<2x128xf32> to vector<2x32xf32>
    %740 = vector.extract_strided_slice %737 {offsets = [0, 32], sizes = [2, 32], strides = [1, 1]} : vector<2x128xf32> to vector<2x32xf32>
    %741 = vector.extract_strided_slice %738 {offsets = [0, 64], sizes = [2, 32], strides = [1, 1]} : vector<2x128xf32> to vector<2x32xf32>
    %742 = vector.extract_strided_slice %737 {offsets = [0, 96], sizes = [2, 32], strides = [1, 1]} : vector<2x128xf32> to vector<2x32xf32>
    %743 = arith.mulf %740, %704 : vector<2x32xf32>
    %744 = arith.mulf %739, %741 : vector<2x32xf32>
    %745 = arith.addf %743, %744 : vector<2x32xf32>
    %746 = math.tanh %745 : vector<2x32xf32>
    %747 = arith.mulf %742, %746 : vector<2x32xf32>
    %748 = vector.extract_strided_slice %2 {offsets = [6, 0], sizes = [2, 1], strides = [1, 1]} : vector<16x1xi1> to vector<2x1xi1>
    %749 = vector.shape_cast %748 : vector<2x1xi1> to vector<2x1xi1>
    %750 = vector.broadcast %749 : vector<2x1xi1> to vector<2x32xi1>
    %751 = arith.select %750, %747, %701 : vector<2x32xi1>, vector<2x32xf32>
    %752 = vector.shape_cast %748 : vector<2x1xi1> to vector<2x1xi1>
    %753 = vector.broadcast %752 : vector<2x1xi1> to vector<2x32xi1>
    %754 = arith.select %753, %745, %704 : vector<2x32xi1>, vector<2x32xf32>
    %755 = vector.extract_strided_slice %496 {offsets = [10, 0], sizes = [2, 128], strides = [1, 1]} : vector<16x256xf32> to vector<2x128xf32>
    %cst_126 = arith.constant dense<0.000000e+00> : vector<2x128xf32>
    %756 = tpu.matmul %726, %498, %cst_126 {dimension_numbers = #tpu.dot_dimension_numbers<[1], [0], [0], [1], [0, 0, 1, 1], [], []>} : vector<2x32xf32>, vector<32x128xf32>, vector<2x128xf32> -> vector<2x128xf32>
    %757 = arith.addf %755, %756 : vector<2x128xf32>
    %758 = arith.negf %757 : vector<2x128xf32>
    %759 = math.exp %758 : vector<2x128xf32>
    %cst_127 = arith.constant 1.000000e+00 : f32
    %760 = vector.broadcast %cst_127 : f32 to vector<2x128xf32>
    %761 = arith.addf %760, %759 : vector<2x128xf32>
    %762 = arith.divf %760, %761 : vector<2x128xf32>
    %763 = math.tanh %757 : vector<2x128xf32>
    %764 = vector.extract_strided_slice %762 {offsets = [0, 0], sizes = [2, 32], strides = [1, 1]} : vector<2x128xf32> to vector<2x32xf32>
    %765 = vector.extract_strided_slice %762 {offsets = [0, 32], sizes = [2, 32], strides = [1, 1]} : vector<2x128xf32> to vector<2x32xf32>
    %766 = vector.extract_strided_slice %763 {offsets = [0, 64], sizes = [2, 32], strides = [1, 1]} : vector<2x128xf32> to vector<2x32xf32>
    %767 = vector.extract_strided_slice %762 {offsets = [0, 96], sizes = [2, 32], strides = [1, 1]} : vector<2x128xf32> to vector<2x32xf32>
    %768 = arith.mulf %765, %729 : vector<2x32xf32>
    %769 = arith.mulf %764, %766 : vector<2x32xf32>
    %770 = arith.addf %768, %769 : vector<2x32xf32>
    %771 = math.tanh %770 : vector<2x32xf32>
    %772 = arith.mulf %767, %771 : vector<2x32xf32>
    %773 = vector.extract_strided_slice %2 {offsets = [10, 0], sizes = [2, 1], strides = [1, 1]} : vector<16x1xi1> to vector<2x1xi1>
    %774 = vector.shape_cast %773 : vector<2x1xi1> to vector<2x1xi1>
    %775 = vector.broadcast %774 : vector<2x1xi1> to vector<2x32xi1>
    %776 = arith.select %775, %772, %726 : vector<2x32xi1>, vector<2x32xf32>
    %777 = vector.shape_cast %773 : vector<2x1xi1> to vector<2x1xi1>
    %778 = vector.broadcast %777 : vector<2x1xi1> to vector<2x32xi1>
    %779 = arith.select %778, %770, %729 : vector<2x32xi1>, vector<2x32xf32>
    %780 = vector.extract_strided_slice %496 {offsets = [4, 128], sizes = [2, 128], strides = [1, 1]} : vector<16x256xf32> to vector<2x128xf32>
    %cst_128 = arith.constant dense<0.000000e+00> : vector<2x128xf32>
    %781 = tpu.matmul %751, %500, %cst_128 {dimension_numbers = #tpu.dot_dimension_numbers<[1], [0], [0], [1], [0, 0, 1, 1], [], []>} : vector<2x32xf32>, vector<32x128xf32>, vector<2x128xf32> -> vector<2x128xf32>
    %782 = arith.addf %780, %781 : vector<2x128xf32>
    %783 = arith.negf %782 : vector<2x128xf32>
    %784 = math.exp %783 : vector<2x128xf32>
    %cst_129 = arith.constant 1.000000e+00 : f32
    %785 = vector.broadcast %cst_129 : f32 to vector<2x128xf32>
    %786 = arith.addf %785, %784 : vector<2x128xf32>
    %787 = arith.divf %785, %786 : vector<2x128xf32>
    %788 = math.tanh %782 : vector<2x128xf32>
    %789 = vector.extract_strided_slice %787 {offsets = [0, 0], sizes = [2, 32], strides = [1, 1]} : vector<2x128xf32> to vector<2x32xf32>
    %790 = vector.extract_strided_slice %787 {offsets = [0, 32], sizes = [2, 32], strides = [1, 1]} : vector<2x128xf32> to vector<2x32xf32>
    %791 = vector.extract_strided_slice %788 {offsets = [0, 64], sizes = [2, 32], strides = [1, 1]} : vector<2x128xf32> to vector<2x32xf32>
    %792 = vector.extract_strided_slice %787 {offsets = [0, 96], sizes = [2, 32], strides = [1, 1]} : vector<2x128xf32> to vector<2x32xf32>
    %793 = arith.mulf %790, %754 : vector<2x32xf32>
    %794 = arith.mulf %789, %791 : vector<2x32xf32>
    %795 = arith.addf %793, %794 : vector<2x32xf32>
    %796 = math.tanh %795 : vector<2x32xf32>
    %797 = arith.mulf %792, %796 : vector<2x32xf32>
    %798 = vector.extract_strided_slice %2 {offsets = [4, 0], sizes = [2, 1], strides = [1, 1]} : vector<16x1xi1> to vector<2x1xi1>
    %799 = vector.shape_cast %798 : vector<2x1xi1> to vector<2x1xi1>
    %800 = vector.broadcast %799 : vector<2x1xi1> to vector<2x32xi1>
    %801 = arith.select %800, %797, %751 : vector<2x32xi1>, vector<2x32xf32>
    %802 = vector.shape_cast %798 : vector<2x1xi1> to vector<2x1xi1>
    %803 = vector.broadcast %802 : vector<2x1xi1> to vector<2x32xi1>
    %804 = arith.select %803, %795, %754 : vector<2x32xi1>, vector<2x32xf32>
    %805 = vector.extract_strided_slice %496 {offsets = [12, 0], sizes = [2, 128], strides = [1, 1]} : vector<16x256xf32> to vector<2x128xf32>
    %cst_130 = arith.constant dense<0.000000e+00> : vector<2x128xf32>
    %806 = tpu.matmul %776, %498, %cst_130 {dimension_numbers = #tpu.dot_dimension_numbers<[1], [0], [0], [1], [0, 0, 1, 1], [], []>} : vector<2x32xf32>, vector<32x128xf32>, vector<2x128xf32> -> vector<2x128xf32>
    %807 = arith.addf %805, %806 : vector<2x128xf32>
    %808 = arith.negf %807 : vector<2x128xf32>
    %809 = math.exp %808 : vector<2x128xf32>
    %cst_131 = arith.constant 1.000000e+00 : f32
    %810 = vector.broadcast %cst_131 : f32 to vector<2x128xf32>
    %811 = arith.addf %810, %809 : vector<2x128xf32>
    %812 = arith.divf %810, %811 : vector<2x128xf32>
    %813 = math.tanh %807 : vector<2x128xf32>
    %814 = vector.extract_strided_slice %812 {offsets = [0, 0], sizes = [2, 32], strides = [1, 1]} : vector<2x128xf32> to vector<2x32xf32>
    %815 = vector.extract_strided_slice %812 {offsets = [0, 32], sizes = [2, 32], strides = [1, 1]} : vector<2x128xf32> to vector<2x32xf32>
    %816 = vector.extract_strided_slice %813 {offsets = [0, 64], sizes = [2, 32], strides = [1, 1]} : vector<2x128xf32> to vector<2x32xf32>
    %817 = vector.extract_strided_slice %812 {offsets = [0, 96], sizes = [2, 32], strides = [1, 1]} : vector<2x128xf32> to vector<2x32xf32>
    %818 = arith.mulf %815, %779 : vector<2x32xf32>
    %819 = arith.mulf %814, %816 : vector<2x32xf32>
    %820 = arith.addf %818, %819 : vector<2x32xf32>
    %821 = math.tanh %820 : vector<2x32xf32>
    %822 = arith.mulf %817, %821 : vector<2x32xf32>
    %823 = vector.extract_strided_slice %2 {offsets = [12, 0], sizes = [2, 1], strides = [1, 1]} : vector<16x1xi1> to vector<2x1xi1>
    %824 = vector.shape_cast %823 : vector<2x1xi1> to vector<2x1xi1>
    %825 = vector.broadcast %824 : vector<2x1xi1> to vector<2x32xi1>
    %826 = arith.select %825, %822, %776 : vector<2x32xi1>, vector<2x32xf32>
    %827 = vector.shape_cast %823 : vector<2x1xi1> to vector<2x1xi1>
    %828 = vector.broadcast %827 : vector<2x1xi1> to vector<2x32xi1>
    %829 = arith.select %828, %820, %779 : vector<2x32xi1>, vector<2x32xf32>
    %830 = vector.extract_strided_slice %496 {offsets = [2, 128], sizes = [2, 128], strides = [1, 1]} : vector<16x256xf32> to vector<2x128xf32>
    %cst_132 = arith.constant dense<0.000000e+00> : vector<2x128xf32>
    %831 = tpu.matmul %801, %500, %cst_132 {dimension_numbers = #tpu.dot_dimension_numbers<[1], [0], [0], [1], [0, 0, 1, 1], [], []>} : vector<2x32xf32>, vector<32x128xf32>, vector<2x128xf32> -> vector<2x128xf32>
    %832 = arith.addf %830, %831 : vector<2x128xf32>
    %833 = arith.negf %832 : vector<2x128xf32>
    %834 = math.exp %833 : vector<2x128xf32>
    %cst_133 = arith.constant 1.000000e+00 : f32
    %835 = vector.broadcast %cst_133 : f32 to vector<2x128xf32>
    %836 = arith.addf %835, %834 : vector<2x128xf32>
    %837 = arith.divf %835, %836 : vector<2x128xf32>
    %838 = math.tanh %832 : vector<2x128xf32>
    %839 = vector.extract_strided_slice %837 {offsets = [0, 0], sizes = [2, 32], strides = [1, 1]} : vector<2x128xf32> to vector<2x32xf32>
    %840 = vector.extract_strided_slice %837 {offsets = [0, 32], sizes = [2, 32], strides = [1, 1]} : vector<2x128xf32> to vector<2x32xf32>
    %841 = vector.extract_strided_slice %838 {offsets = [0, 64], sizes = [2, 32], strides = [1, 1]} : vector<2x128xf32> to vector<2x32xf32>
    %842 = vector.extract_strided_slice %837 {offsets = [0, 96], sizes = [2, 32], strides = [1, 1]} : vector<2x128xf32> to vector<2x32xf32>
    %843 = arith.mulf %840, %804 : vector<2x32xf32>
    %844 = arith.mulf %839, %841 : vector<2x32xf32>
    %845 = arith.addf %843, %844 : vector<2x32xf32>
    %846 = math.tanh %845 : vector<2x32xf32>
    %847 = arith.mulf %842, %846 : vector<2x32xf32>
    %848 = vector.extract_strided_slice %2 {offsets = [2, 0], sizes = [2, 1], strides = [1, 1]} : vector<16x1xi1> to vector<2x1xi1>
    %849 = vector.shape_cast %848 : vector<2x1xi1> to vector<2x1xi1>
    %850 = vector.broadcast %849 : vector<2x1xi1> to vector<2x32xi1>
    %851 = arith.select %850, %847, %801 : vector<2x32xi1>, vector<2x32xf32>
    %852 = vector.shape_cast %848 : vector<2x1xi1> to vector<2x1xi1>
    %853 = vector.broadcast %852 : vector<2x1xi1> to vector<2x32xi1>
    %854 = arith.select %853, %845, %804 : vector<2x32xi1>, vector<2x32xf32>
    %855 = vector.extract_strided_slice %496 {offsets = [14, 0], sizes = [2, 128], strides = [1, 1]} : vector<16x256xf32> to vector<2x128xf32>
    %cst_134 = arith.constant dense<0.000000e+00> : vector<2x128xf32>
    %856 = tpu.matmul %826, %498, %cst_134 {dimension_numbers = #tpu.dot_dimension_numbers<[1], [0], [0], [1], [0, 0, 1, 1], [], []>} : vector<2x32xf32>, vector<32x128xf32>, vector<2x128xf32> -> vector<2x128xf32>
    %857 = arith.addf %855, %856 : vector<2x128xf32>
    %858 = arith.negf %857 : vector<2x128xf32>
    %859 = math.exp %858 : vector<2x128xf32>
    %cst_135 = arith.constant 1.000000e+00 : f32
    %860 = vector.broadcast %cst_135 : f32 to vector<2x128xf32>
    %861 = arith.addf %860, %859 : vector<2x128xf32>
    %862 = arith.divf %860, %861 : vector<2x128xf32>
    %863 = math.tanh %857 : vector<2x128xf32>
    %864 = vector.extract_strided_slice %862 {offsets = [0, 0], sizes = [2, 32], strides = [1, 1]} : vector<2x128xf32> to vector<2x32xf32>
    %865 = vector.extract_strided_slice %862 {offsets = [0, 32], sizes = [2, 32], strides = [1, 1]} : vector<2x128xf32> to vector<2x32xf32>
    %866 = vector.extract_strided_slice %863 {offsets = [0, 64], sizes = [2, 32], strides = [1, 1]} : vector<2x128xf32> to vector<2x32xf32>
    %867 = vector.extract_strided_slice %862 {offsets = [0, 96], sizes = [2, 32], strides = [1, 1]} : vector<2x128xf32> to vector<2x32xf32>
    %868 = arith.mulf %865, %829 : vector<2x32xf32>
    %869 = arith.mulf %864, %866 : vector<2x32xf32>
    %870 = arith.addf %868, %869 : vector<2x32xf32>
    %871 = math.tanh %870 : vector<2x32xf32>
    %872 = arith.mulf %867, %871 : vector<2x32xf32>
    %873 = vector.extract_strided_slice %2 {offsets = [14, 0], sizes = [2, 1], strides = [1, 1]} : vector<16x1xi1> to vector<2x1xi1>
    %874 = vector.shape_cast %873 : vector<2x1xi1> to vector<2x1xi1>
    %875 = vector.broadcast %874 : vector<2x1xi1> to vector<2x32xi1>
    %876 = arith.select %875, %872, %826 : vector<2x32xi1>, vector<2x32xf32>
    %877 = vector.extract_strided_slice %496 {offsets = [0, 128], sizes = [2, 128], strides = [1, 1]} : vector<16x256xf32> to vector<2x128xf32>
    %cst_136 = arith.constant dense<0.000000e+00> : vector<2x128xf32>
    %878 = tpu.matmul %851, %500, %cst_136 {dimension_numbers = #tpu.dot_dimension_numbers<[1], [0], [0], [1], [0, 0, 1, 1], [], []>} : vector<2x32xf32>, vector<32x128xf32>, vector<2x128xf32> -> vector<2x128xf32>
    %879 = arith.addf %877, %878 : vector<2x128xf32>
    %880 = arith.negf %879 : vector<2x128xf32>
    %881 = math.exp %880 : vector<2x128xf32>
    %cst_137 = arith.constant 1.000000e+00 : f32
    %882 = vector.broadcast %cst_137 : f32 to vector<2x128xf32>
    %883 = arith.addf %882, %881 : vector<2x128xf32>
    %884 = arith.divf %882, %883 : vector<2x128xf32>
    %885 = math.tanh %879 : vector<2x128xf32>
    %886 = vector.extract_strided_slice %884 {offsets = [0, 0], sizes = [2, 32], strides = [1, 1]} : vector<2x128xf32> to vector<2x32xf32>
    %887 = vector.extract_strided_slice %884 {offsets = [0, 32], sizes = [2, 32], strides = [1, 1]} : vector<2x128xf32> to vector<2x32xf32>
    %888 = vector.extract_strided_slice %885 {offsets = [0, 64], sizes = [2, 32], strides = [1, 1]} : vector<2x128xf32> to vector<2x32xf32>
    %889 = vector.extract_strided_slice %884 {offsets = [0, 96], sizes = [2, 32], strides = [1, 1]} : vector<2x128xf32> to vector<2x32xf32>
    %890 = arith.mulf %887, %854 : vector<2x32xf32>
    %891 = arith.mulf %886, %888 : vector<2x32xf32>
    %892 = arith.addf %890, %891 : vector<2x32xf32>
    %893 = math.tanh %892 : vector<2x32xf32>
    %894 = arith.mulf %889, %893 : vector<2x32xf32>
    %895 = vector.extract_strided_slice %2 {offsets = [0, 0], sizes = [2, 1], strides = [1, 1]} : vector<16x1xi1> to vector<2x1xi1>
    %896 = vector.shape_cast %895 : vector<2x1xi1> to vector<2x1xi1>
    %897 = vector.broadcast %896 : vector<2x1xi1> to vector<2x32xi1>
    %898 = arith.select %897, %894, %851 : vector<2x32xi1>, vector<2x32xf32>
    %899 = arith.maximumf %458, %485 : vector<2x32xf32>
    %900 = arith.maximumf %899, %876 : vector<2x32xf32>
    %901 = arith.maximumf %900, %898 : vector<2x32xf32>
    %c0_138 = arith.constant 0 : index
    %c0_139 = arith.constant 0 : index
    %902 = vector.load %arg8[%c0_138, %c0_139] : memref<32x4xf32, #tpu.memory_space<vmem>>, vector<32x4xf32>
    %cst_140 = arith.constant dense<0.000000e+00> : vector<2x4xf32>
    %903 = tpu.matmul %901, %902, %cst_140 {dimension_numbers = #tpu.dot_dimension_numbers<[1], [0], [0], [1], [0, 0, 1, 1], [], []>} : vector<2x32xf32>, vector<32x4xf32>, vector<2x4xf32> -> vector<2x4xf32>
    %c0_141 = arith.constant 0 : index
    %c0_142 = arith.constant 0 : index
    %904 = vector.load %arg9[%c0_141, %c0_142] : memref<1x4xf32, #tpu.memory_space<vmem>>, vector<1x4xf32>
    %905 = vector.broadcast %904 : vector<1x4xf32> to vector<2x4xf32>
    %906 = arith.addf %903, %905 : vector<2x4xf32>
    %c0_143 = arith.constant 0 : index
    %c0_144 = arith.constant 0 : index
    %907 = vector.load %arg10[%c0_143, %c0_144] : memref<2x4xf32, #tpu.memory_space<vmem>>, vector<2x4xf32>
    tpu.vector_store %arg10[%c0_143, %c0_144], %906 {strides = array<i32>} : memref<2x4xf32, #tpu.memory_space<vmem>>, vector<2x4xf32>,
    return
  }
}

</mosaic_0001>

<bundles_post_ra>
// kernel: tpu_custom_call.1
= control target key start
LH: loop header
LB: loop body
LE: loop exit
PB: predicated region body
PF: predicated region fallthrough
CT: control target
= control target key end

     0   :  { %15 = vsyncpa [#allocation5], 0  ;;  %s4368_s0 = inlined_call_operand.vmem [shape: f32[16,32], index: 0, kind: input, shape index: {}]   ;;  %s4369_s1 = inlined_call_operand.vmem [shape: f32[16,1], index: 1, kind: input, shape index: {}]   ;;  %s4370_s2 = inlined_call_operand.hbm [shape: f32[32,256], index: 2, kind: input, shape index: {}]   ;;  %s4371_s3 = inlined_call_operand.hbm [shape: f32[2,32,128], index: 3, kind: input, shape index: {}]   ;;  %s4372_s4 = inlined_call_operand.vmem [shape: f32[1,256], index: 4, kind: input, shape index: {}]   ;;  %s4373_s5 = inlined_call_operand.hbm [shape: f32[64,256], index: 5, kind: input, shape index: {}]   ;;  %s4374_s6 = inlined_call_operand.hbm [shape: f32[2,32,128], index: 6, kind: input, shape index: {}]   ;;  %s4375_s7 = inlined_call_operand.vmem [shape: f32[1,256], index: 7, kind: input, shape index: {}]   ;;  %s4376_s8 = inlined_call_operand.vmem [shape: f32[32,4], index: 8, kind: input, shape index: {}]   ;;  %s4377_s9 = inlined_call_operand.vmem [shape: f32[1,4], index: 9, kind: input, shape index: {}]   ;;  %s4378_s10 = inlined_call_operand.hbm [shape: f32[2,4], index: 10, kind: output, shape index: {}]  }
   0x1   :  { %16 = vsyncpa [#allocation8], 0 }
   0x2   :  { %17 = vsyncpa [#allocation11], 0  ;;  %s40_s15 = sshll.u32 %s4371_s3, 4  ;;  %s41_s15 = int_to_ptr.hbm [resolvable:$true] %s40_s15 }
   0x3   :  { %18 = vsyncpa [#allocation6], 0  ;;  %s3196_s16 = smov [#allocation7]   ;;  %s27_s20 = sshll.u32 %s4370_s2, 4  ;;  %s28_s20 = int_to_ptr.hbm [resolvable:$true] %s27_s20 }
   0x4   :  { %s42_s17 = sshll.u32 %s3196_s16, 4  ;;  %s3197_s21 = smov 128   ;;  %s43_s17 = int_to_ptr.vmem [resolvable:$true] %s42_s17 }
   0x5   :  { %s3198_s22 = smov 8   ;;  %s3199_s23 = smov [#allocation4]  }
   0x6   :  { %48 = dma.hbm_to_vmem [thread:$0]  %s41_s15, 1024, %s43_s17, [#allocation8], %s3197_s21, %s3197_s21, %s3198_s22  }
   0x7   :  { %s29_s24 = sshll.u32 %s3199_s23, 4  ;;  %s3200_s25 = smov 256   ;;  %s30_s24 = int_to_ptr.vmem [resolvable:$true] %s29_s24 }
   0x8   :  { %s3201_s26 = smov 16   ;;  %s55_s28 = sshll.u32 %s4373_s5, 4  ;;  %s56_s28 = int_to_ptr.hbm [resolvable:$true] %s55_s28 }
   0x9   :  { %35 = dma.hbm_to_vmem [thread:$0]  %s28_s20, 1024, %s30_s24, [#allocation5], %s3200_s25, %s3200_s25, %s3201_s26  }
   0xa   :  { %s3202_s29 = smov [#allocation9]   ;;  %s68_s12 = sshll.u32 %s4374_s6, 4  ;;  %s69_s12 = int_to_ptr.hbm [resolvable:$true] %s68_s12 }
   0xb   :  { %s57_s30 = sshll.u32 %s3202_s29, 4  ;;  %s3203_s13 = smov [#allocation10]   ;;  %s58_s30 = int_to_ptr.vmem [resolvable:$true] %s57_s30 }
   0xc   :  { %63 = dma.hbm_to_vmem [thread:$0]  %s56_s28, 2048, %s58_s30, [#allocation8], %s3200_s25, %s3200_s25, %s3201_s26  }
   0xd   :  { %s70_s14 = sshll.u32 %s3203_s13, 4  ;;  %s71_s14 = int_to_ptr.vmem [resolvable:$true] %s70_s14 }
   0xe   :  { %76 = dma.hbm_to_vmem [thread:$0]  %s69_s12, 1024, %s71_s14, [#allocation11], %s3197_s21, %s3197_s21, %s3198_s22  }
   0xf   :  { %3188 = dma.done.wait [#allocation5], 1024  }
  0x10   :  { %3189 = vsyncadd [#allocation5], 4294966272 }
  0x11   :  { %3190 = dma.done.wait [#allocation8], 3072  }
  0x12   :  { %3191 = vsyncadd [#allocation8], 4294964224 }
  0x13   :  { %3192 = dma.done.wait [#allocation11], 1024  }
  0x14   :  { %3193 = vsyncadd [#allocation11], 4294966272  ;;  %v112_v0 = vld [vmem:[#allocation4 + $0x38] sm:$0xff]  ;;  %v110_v2 = vld [vmem:[#allocation4 + $0x28] sm:$0xff]  ;;  %vm119_vm0 = vcmask 261120   ;;  %v3204_v17 = vmov 0.0  }
  0x15   :  { %v3276_v1 = vld [vmem:[#allocation7 + $0x18] sm:$0xff]  ;;  %161 = vmatpush.msra.mxu1 %v112_v0  ;;  %v3279_v3 = vld [vmem:[#allocation7 + $0x10] sm:$0xff]  ;;  %v3284_v7 = vld [vmem:[#allocation7 + $0x8] sm:$0xff]  ;;  %v3206_v42 = vmov 0   ;;  %s3207_s18 = smov 32   ;;  %vm253_vm13 = vcmask 254976  }
  0x16   :  { %196 = vmatpush.msra.mxu2 %v3276_v1  ;;  %v3281_v4 = vld [vmem:[#allocation7 + $0x38] sm:$0xff]  ;;  %v111_v5 = vld [vmem:[#allocation4 + $0x30] sm:$0xff]  ;;  %v109_v9 = vld [vmem:[#allocation4 + $0x20] sm:$0xff]  ;;  %2809 = vset.pattern.permute.xlu1 %v3206_v42  ;;  %s2714_s14 = sshll.u32 %s4378_s10, 4  ;;  %s2715_s14 = int_to_ptr.hbm [resolvable:$true] %s2714_s14 }
  0x17   :  { %267 = vmatpush.msra.mxu3 %v3281_v4  ;;  %138 = vmatpush.msra.mxu0 %v111_v5  ;;  %v108_v6 = vld [vmem:[#allocation4 + $0x18] sm:$0xff]  ;;  %v3286_v8 = vld [vmem:[#allocation7 + $0x30] sm:$0xff]  ;;  %v106_v10 = vld [vmem:[#allocation4 + $0x8] sm:$0xff] }
  0x18   :  { %162 = vmatpush.msra.mxu1 %v110_v2  ;;  %197 = vmatpush.msra.mxu2 %v3279_v3  ;;  %v3290_v11 = vld [vmem:[#allocation7] sm:$0xff]  ;;  %v3292_v12 = vld [vmem:[#allocation7 + $0x28] sm:$0xff]  ;;  %v107_v13 = vld [vmem:[#allocation4 + $0x10] sm:$0xff] }
  0x19   :  { %268 = vmatpush.msra.mxu3 %v3286_v8  ;;  %139 = vmatpush.msra.mxu0 %v109_v9  ;;  %v103_v14 = vld [vmem:[%s4368_s0] sm:$0xff]  ;;  %v3299_v15 = vld [vmem:[#allocation7 + $0x20] sm:$0xff]  ;;  %v104_v18 = vld [vmem:[%s4368_s0 + $0x8] sm:$0xff] }
  0x1a   :  { %163 = vmatpush.msra.mxu1 %v108_v6  ;;  %198 = vmatpush.msra.mxu2 %v3284_v7  ;;  %v105_v16 = vld [vmem:[#allocation4] sm:$0xff]  ;;  %v3347_v19 = vld [vmem:[%s4372_s4] sm:$0x3]  ;;  %s3205_s4 = smov 64  }
  0x1b   :  { %269 = vmatpush.msra.mxu3 %v3292_v12  ;;  %140 = vmatpush.msra.mxu0 %v107_v13  ;;  %v116_v20 = vperm.slane %v3347_v19, 1  ;;  %v115_v25 = vperm.slane %v3347_v19, 0  ;;  %v99_v5 = vld [vmem:[%s4369_s1] sm:$0xff] }
  0x1c   :  { %164 = vmatpush.msra.mxu1 %v106_v10  ;;  %199 = vmatpush.msra.mxu2 %v3290_v11  ;;  %vm101_vm9 = vcmp.ne.f32.partialorder %v99_v5, 0.0 }
  0x1d   :  { %2728 = vmatmul.msk.f32.vlgmr.msra.gmra.mxu1 %vm119_vm0, %v103_v14  ;;  %200 = vmatmul.f32.vlgmr.msra.gmra.mxu2 %v3204_v17  ;;  %v242_v6 = vsel %vm101_vm9, 1, %v3206_v42 }
  0x1e   :  { %270 = vmatpush.msra.mxu3 %v3299_v15  ;;  %141 = vmatpush.msra.mxu0 %v105_v16 }
  0x1f   :  { %271 = vmatmul.f32.vlgmr.msra.gmra.mxu3 %v3204_v17  ;;  %2726 = vmatmul.msk.f32.vlgmr.msra.gmra.mxu0 %vm119_vm0, %v103_v14 }
  0x20   :  { %423 = vmatpush.msrb.mxu3 %v3281_v4  ;;  %343 = vmatpush.msrb.mxu2 %v3276_v1 }
  0x21   :  { %585 = vmatpush.msrb.mxu1 %v3281_v4  ;;  %504 = vmatpush.msrb.mxu0 %v3276_v1 }
  0x22   :  { %424 = vmatpush.msrb.mxu3 %v3286_v8  ;;  %344 = vmatpush.msrb.mxu2 %v3279_v3 }
  0x23   :  { %586 = vmatpush.msrb.mxu1 %v3286_v8  ;;  %505 = vmatpush.msrb.mxu0 %v3279_v3 }
  0x24   :  { %425 = vmatpush.msrb.mxu3 %v3292_v12  ;;  %345 = vmatpush.msrb.mxu2 %v3284_v7 }
  0x25   :  { %2729 = vmatmul.msk.f32.gmra.mxu1 %vm119_vm0, %v104_v18  ;;  %506 = vmatpush.msrb.mxu0 %v3284_v7 }
  0x26   :  { %426 = vmatpush.msrb.mxu3 %v3299_v15  ;;  %346 = vmatpush.msrb.mxu2 %v3290_v11 }
  0x27   :  { %587 = vmatpush.msrb.mxu1 %v3292_v12  ;;  %2727 = vmatmul.msk.f32.gmra.mxu0 %vm119_vm0, %v104_v18 }
  0x28   :  { %507 = vmatpush.msrb.mxu0 %v3290_v11  ;;  %747 = vmatpush.msra.mxu3 %v3281_v4 }
  0x29   :  { %588 = vmatpush.msrb.mxu1 %v3299_v15  ;;  %666 = vmatpush.msra.mxu2 %v3276_v1 }
  0x2a   :  { %748 = vmatpush.msra.mxu3 %v3286_v8  ;;  %824 = vmatpush.msra.mxu0 %v3276_v1 }
  0x2b   :  { %899 = vmatpush.msra.mxu1 %v3281_v4  ;;  %667 = vmatpush.msra.mxu2 %v3279_v3 }
  0x2c   :  { %749 = vmatpush.msra.mxu3 %v3292_v12  ;;  %825 = vmatpush.msra.mxu0 %v3279_v3 }
  0x2d   :  { %900 = vmatpush.msra.mxu1 %v3286_v8  ;;  %668 = vmatpush.msra.mxu2 %v3284_v7 }
  0x2e   :  { %750 = vmatpush.msra.mxu3 %v3299_v15  ;;  %826 = vmatpush.msra.mxu0 %v3284_v7 }
  0x2f   :  { %901 = vmatpush.msra.mxu1 %v3292_v12  ;;  %669 = vmatpush.msra.mxu2 %v3290_v11 }
  0x30   :  { %827 = vmatpush.msra.mxu0 %v3290_v11  ;;  %2808 = vset.pattern.permute.xlu2 %v3206_v42 }
  0x31   :  { %902 = vmatpush.msra.mxu1 %v3299_v15  ;;  %2810 = vset.pattern.permute.xlu0 %v3206_v42 }
  0x9a   :  { %v166_v21 = vpop.f32.mrf.mxu1 }
  0x9b   :  { %v3350_v22 = vadd.f32 %v166_v21, %v116_v20  ;;  %v100_v21 = vld [vmem:[%s4369_s1 + $0x8] sm:$0xff] }
  0x9c   :  { %v143_v28 = vpop.f32.mrf.mxu0  ;;  %vm102_vm10 = vcmp.ne.f32.partialorder %v100_v21, 0.0 }
  0x9d   :  { %v3358_v30 = vadd.f32 %v143_v28, %v115_v25 }
  0xa0   :  { %v201_v31 = vpop.f32.mrf.mxu2 }
  0xa1   :  { %v204_v32 = vadd.f32 %v201_v31, %v3358_v30 }
  0xa2   :  { %v169_v23 = vpop.f32.mrf.mxu1  ;;  %v272_v24 = vpop.f32.mrf.mxu3 }
  0xa3   :  { %v3353_v26 = vadd.f32 %v169_v23, %v116_v20  ;;  %v276_v27 = vrot.slane %v272_v24, 2  ;;  %v2730_v36 = vmul.f32 -1.442695, %v204_v32  ;;  %v316_v23 = vsel %vm102_vm10, 1, %v3206_v42 }
  0xa5   :  { %v278_v29 = vadd.f32 %v276_v27, %v3353_v26 }
  0xa7   :  { %2812 = vtanh.f32 %v278_v29  ;;  %v2731_v35 = vmul.f32 -1.442695, %v278_v29 }
  0xa8   :  { %2814 = vtanh.f32 %v204_v32 }
  0xa9   :  { %2816 = vpow2.f32 %v2731_v35 }
  0xaa   :  { %2818 = vpow2.f32 %v2730_v36 }
  0xad   :  { %v2813_v33 = vpop.eup %2812 }
  0xae   :  { %301 = vrot.lane.b32.xlu0 %v2813_v33, %s3205_s4  ;;  %v2815_v34 = vpop.eup %2814 }
  0xaf   :  { %v2817_v37 = vpop.eup %2816 }
  0xb0   :  { %v282_v38 = vadd.f32 1.0, %v2817_v37  ;;  %v2819_v39 = vpop.eup %2818 }
  0xb1   :  { %v208_v40 = vadd.f32 1.0, %v2819_v39 }
  0xb2   :  { %2820 = vrcp.f32 %v282_v38  ;;  %v294_v50 = vand.u32 2147483648, %v282_v38  ;;  %vm288_vm2 = vweird.f32 %v282_v38  ;;  %v292_v51 = vand.u32 2147483647, %v282_v38 }
  0xb3   :  { %2822 = vrcp.f32 %v208_v40  ;;  %vm214_vm5 = vweird.f32 %v208_v40  ;;  %v220_v57 = vand.u32 2147483648, %v208_v40  ;;  %v218_v60 = vand.u32 2147483647, %v208_v40 }
  0xb4   :  { %v295_v54 = vor.u32 1.1754944e-38, %v294_v50  ;;  %vm293_vm4 = vcmp.eq.f32.partialorder %v292_v51, 8.507059e+37 }
  0xb5   :  { %v221_v61 = vor.u32 1.1754944e-38, %v220_v57  ;;  %vm219_vm8 = vcmp.eq.f32.partialorder %v218_v60, 8.507059e+37 }
  0xb6   :  { %227 = vrot.lane.b32.xlu0 %v2815_v34, %s3205_s4 }
  0xb8   :  { %v2821_v41 = vpop.eup %2820 }
  0xb9   :  { %v284_v43 = vmul.f32 %v2821_v41, %v282_v38  ;;  %v2823_v45 = vpop.eup %2822  ;;  %vm289_vm1 = vweird.f32 %v2821_v41 }
  0xba   :  { %v210_v47 = vmul.f32 %v2823_v45, %v208_v40  ;;  %vm290_vm3 = vmor %vm288_vm2, %vm289_vm1  ;;  %vm215_vm6 = vweird.f32 %v2823_v45 }
  0xbb   :  { %v285_v44 = vsub.f32 1.0, %v284_v43  ;;  %vm216_vm7 = vmor %vm214_vm5, %vm215_vm6 }
  0xbc   :  { %v211_v49 = vsub.f32 1.0, %v210_v47 }
  0xbd   :  { %v286_v46 = vmul.f32 %v2821_v41, %v285_v44 }
  0xbe   :  { %v212_v53 = vmul.f32 %v2823_v45, %v211_v49 }
  0xbf   :  { %v287_v48 = vadd.f32 %v2821_v41, %v286_v46 }
  0xc0   :  { %v213_v59 = vadd.f32 %v2823_v45, %v212_v53 }
  0xc1   :  { %v291_v52 = vsel %vm290_vm3, %v2821_v41, %v287_v48 }
  0xc2   :  { %v296_v56 = vsel %vm293_vm4, %v295_v54, %v291_v52  ;;  %v217_v62 = vsel %vm216_vm7, %v2823_v45, %v213_v59 }
  0xc3   :  { %v222_v0 = vsel %vm219_vm8, %v221_v61, %v217_v62  ;;  %v299_v9 = vmul.f32 0.0, %v296_v56 }
  0xc4   :  { %v225_v14 = vmul.f32 0.0, %v222_v0 }
 0x120   :  { %v302_v55 = vpop.permute.xlu0 %301 }
 0x121   :  { %v304_v58 = vmul.f32 %v302_v55, %v296_v56 }
 0x123   :  { %306 = vrot.lane.b32.xlu1 %v304_v58, %s3207_s18 }
 0x128   :  { %v228_v63 = vpop.permute.xlu0 %227 }
 0x129   :  { %v230_v2 = vmul.f32 %v228_v63, %v222_v0 }
 0x12b   :  { %232 = vrot.lane.b32.xlu1 %v230_v2, %s3207_s18 }
 0x133   :  { %244 = vperm.xlu1 %2809, %v242_v6  }
 0x195   :  { %v307_v10 = vpop.permute.xlu1 %306 }
 0x196   :  { %v3368_v13 = vadd.f32 %v307_v10, %v299_v9 }
 0x198   :  { %2824 = vtanh.f32 %v3368_v13 }
 0x19d   :  { %v233_v16 = vpop.permute.xlu1 %232 }
 0x19e   :  { %v2825_v18 = vpop.eup %2824  ;;  %v3371_v20 = vadd.f32 %v233_v16, %v225_v14 }
 0x19f   :  { %312 = vrot.lane.b32.xlu2 %v2825_v18, %s3205_s4 }
 0x1a0   :  { %2826 = vtanh.f32 %v3371_v20 }
 0x1a5   :  { %v3388_v33 = vpop.permute.xlu1 %244 }
 0x1a6   :  { %v2827_v24 = vpop.eup %2826  ;;  %vm246_vm12 = vcmp.eq.s32.totalorder %v3388_v33, 1 }
 0x1a7   :  { %238 = vrot.lane.b32.xlu0 %v2827_v24, %s3205_s4  ;;  %318 = vperm.xlu2 %2808, %v316_v23  }
 0x1f9   :  { %v313_v27 = vpop.permute.xlu2 %312 }
 0x1fa   :  { %v315_v28 = vmul.f32 %v313_v27, %v296_v56 }
 0x201   :  { %v3379_v29 = vpop.permute.xlu2 %318 }
 0x202   :  { %vm320_vm11 = vcmp.eq.s32.totalorder %v3379_v29, 1  ;;  %v2671_v29 = vld [vmem:[%s4376_s8] sm:$0xff] }
 0x203   :  { %v3384_v31 = vsel %vm320_vm11, %v315_v28, 0.0  ;;  %v3417_v28 = vsel %vm320_vm11, %v3368_v13, 0.0 }
 0x204   :  { %v406_v32 = vrot.slane %v3384_v31, 6 }
 0x206   :  { %407 = vrot.lane.b32.xlu2 %v406_v32, %s3207_s18  ;;  %v456_v32 = vrot.slane %v3417_v28, 2 }
 0x219   :  { %v239_v34 = vpop.permute.xlu0 %238 }
 0x21a   :  { %v241_v35 = vmul.f32 %v239_v34, %v222_v0 }
 0x21c   :  { %v3393_v36 = vsel %vm246_vm12, %v241_v35, 0.0 }
 0x21d   :  { %250 = vrot.lane.b32.xlu0 %v3393_v36, %s3207_s18 }
 0x260   :  { %v408_v37 = vpop.permute.xlu2 %407 }
 0x261   :  { %2734 = vmatmul.msk.f32.vlgmr.msrb.gmra.mxu3 %vm119_vm0, %v408_v37 }
 0x262   :  { %1058 = vmatpush.msrb.mxu3 %v3281_v4 }
 0x264   :  { %1059 = vmatpush.msrb.mxu3 %v3286_v8 }
 0x266   :  { %1060 = vmatpush.msrb.mxu3 %v3292_v12 }
 0x268   :  { %1061 = vmatpush.msrb.mxu3 %v3299_v15 }
 0x28f   :  { %v251_v38 = vpop.permute.xlu0 %250 }
 0x290   :  { %254 = vst.msk [vmem:[#allocation2] sm:$0x3] %vm253_vm13, %v251_v38  ;;  %2732 = vmatmul.msk.f32.vlgmr.msrb.gmra.mxu2 %vm119_vm0, %v251_v38 }
 0x291   :  { %978 = vmatpush.msrb.mxu2 %v3276_v1 }
 0x293   :  { %979 = vmatpush.msrb.mxu2 %v3279_v3 }
 0x295   :  { %980 = vmatpush.msrb.mxu2 %v3284_v7 }
 0x297   :  { %981 = vmatpush.msrb.mxu2 %v3290_v11 }
 0x2e4   :  { %v428_v39 = vpop.f32.mrf.mxu3 }
 0x2e5   :  { %v432_v40 = vrot.slane %v428_v39, 4  ;;  %v3429_v39 = vsel %vm246_vm12, %v3371_v20, 0.0 }
 0x2e6   :  { %v376_v13 = vrot.slane %v3429_v39, 6 }
 0x2e7   :  { %v434_v41 = vadd.f32 %v432_v40, %v3353_v26 }
 0x2e9   :  { %2828 = vtanh.f32 %v434_v41  ;;  %v2735_v47 = vmul.f32 -1.442695, %v434_v41 }
 0x2ef   :  { %v2829_v42 = vpop.eup %2828 }
 0x2f0   :  { %460 = vrot.lane.b32.xlu1 %v2829_v42, %s3205_s4 }
 0x313   :  { %v348_v43 = vpop.f32.mrf.mxu2 }
 0x314   :  { %v352_v44 = vrot.slane %v348_v43, 6 }
 0x316   :  { %v354_v45 = vadd.f32 %v352_v44, %v3358_v30 }
 0x318   :  { %2830 = vtanh.f32 %v354_v45  ;;  %v2733_v51 = vmul.f32 -1.442695, %v354_v45  ;;  %v475_v45 = vrot.slane %v3384_v31, 2 }
 0x319   :  { %2832 = vpow2.f32 %v2735_v47 }
 0x31e   :  { %v2831_v46 = vpop.eup %2830 }
 0x31f   :  { %380 = vrot.lane.b32.xlu2 %v2831_v46, %s3205_s4  ;;  %v2833_v48 = vpop.eup %2832 }
 0x320   :  { %v438_v49 = vadd.f32 1.0, %v2833_v48 }
 0x322   :  { %2834 = vrcp.f32 %v438_v49  ;;  %v450_v58 = vand.u32 2147483648, %v438_v49  ;;  %vm444_vm15 = vweird.f32 %v438_v49  ;;  %v448_v59 = vand.u32 2147483647, %v438_v49 }
 0x323   :  { %2836 = vpow2.f32 %v2733_v51 }
 0x324   :  { %v451_v61 = vor.u32 1.1754944e-38, %v450_v58  ;;  %vm449_vm2 = vcmp.eq.f32.partialorder %v448_v59, 8.507059e+37  ;;  %v3470_v58 = vpop.f32.mrf.mxu0 }
 0x328   :  { %v2835_v50 = vpop.eup %2834 }
 0x329   :  { %v440_v52 = vmul.f32 %v2835_v50, %v438_v49  ;;  %v2837_v54 = vpop.eup %2836  ;;  %vm445_vm14 = vweird.f32 %v2835_v50  ;;  %v395_v49 = vrot.slane %v3393_v36, 6 }
 0x32a   :  { %v358_v56 = vadd.f32 1.0, %v2837_v54  ;;  %vm446_vm1 = vmor %vm444_vm15, %vm445_vm14 }
 0x32b   :  { %v441_v53 = vsub.f32 1.0, %v440_v52 }
 0x32c   :  { %2838 = vrcp.f32 %v358_v56  ;;  %v370_v14 = vand.u32 2147483648, %v358_v56  ;;  %vm364_vm4 = vweird.f32 %v358_v56  ;;  %v368_v16 = vand.u32 2147483647, %v358_v56 }
 0x32d   :  { %v442_v55 = vmul.f32 %v2835_v50, %v441_v53 }
 0x32e   :  { %v371_v21 = vor.u32 1.1754944e-38, %v370_v14  ;;  %vm369_vm6 = vcmp.eq.f32.partialorder %v368_v16, 8.507059e+37 }
 0x32f   :  { %v443_v57 = vadd.f32 %v2835_v50, %v442_v55 }
 0x331   :  { %v447_v60 = vsel %vm446_vm1, %v2835_v50, %v443_v57 }
 0x332   :  { %v452_v62 = vsel %vm449_vm2, %v451_v61, %v447_v60  ;;  %v2839_v0 = vpop.eup %2838 }
 0x333   :  { %v360_v5 = vmul.f32 %v2839_v0, %v358_v56  ;;  %vm365_vm3 = vweird.f32 %v2839_v0  ;;  %v458_v34 = vmul.f32 %v456_v32, %v452_v62 }
 0x334   :  { %vm366_vm5 = vmor %vm364_vm4, %vm365_vm3 }
 0x335   :  { %v361_v6 = vsub.f32 1.0, %v360_v5 }
 0x337   :  { %v362_v9 = vmul.f32 %v2839_v0, %v361_v6 }
 0x339   :  { %v363_v10 = vadd.f32 %v2839_v0, %v362_v9 }
 0x33b   :  { %v367_v18 = vsel %vm366_vm5, %v2839_v0, %v363_v10 }
 0x33c   :  { %v372_v24 = vsel %vm369_vm6, %v371_v21, %v367_v18 }
 0x33d   :  { %v378_v40 = vmul.f32 %v376_v13, %v372_v24 }
 0x362   :  { %v461_v63 = vpop.permute.xlu1 %460 }
 0x363   :  { %v463_v2 = vmul.f32 %v461_v63, %v452_v62 }
 0x365   :  { %465 = vrot.lane.b32.xlu0 %v463_v2, %s3207_s18 }
 0x379   :  { %v381_v23 = vpop.permute.xlu2 %380 }
 0x37a   :  { %v383_v27 = vmul.f32 %v381_v23, %v372_v24 }
 0x37c   :  { %385 = vrot.lane.b32.xlu1 %v383_v27, %s3207_s18 }
 0x3d7   :  { %v466_v35 = vpop.permute.xlu0 %465 }
 0x3d8   :  { %v3422_v37 = vadd.f32 %v466_v35, %v458_v34 }
 0x3da   :  { %2840 = vtanh.f32 %v3422_v37 }
 0x3e0   :  { %v2841_v38 = vpop.eup %2840 }
 0x3e1   :  { %471 = vrot.lane.b32.xlu2 %v2841_v38, %s3205_s4 }
 0x3ee   :  { %v386_v41 = vpop.permute.xlu1 %385 }
 0x3ef   :  { %v3434_v42 = vadd.f32 %v386_v41, %v378_v40 }
 0x3f1   :  { %2842 = vtanh.f32 %v3434_v42  ;;  %v3495_v28 = vsel %vm246_vm12, %v3434_v42, %v376_v13 }
 0x3f7   :  { %v2843_v43 = vpop.eup %2842 }
 0x3f8   :  { %391 = vrot.lane.b32.xlu0 %v2843_v43, %s3205_s4 }
 0x43b   :  { %v472_v44 = vpop.permute.xlu2 %471 }
 0x43c   :  { %v3439_v46 = vmul.f32 %v472_v44, %v452_v62 }
 0x43e   :  { %v3444_v20 = vsel %vm320_vm11, %v3439_v46, %v475_v45 }
 0x43f   :  { %v568_v47 = vrot.slane %v3444_v20, 4  ;;  %v637_v39 = vrot.slane %v3444_v20, 2 }
 0x441   :  { %569 = vrot.lane.b32.xlu1 %v568_v47, %s3207_s18 }
 0x46a   :  { %v392_v48 = vpop.permute.xlu0 %391 }
 0x46b   :  { %v3449_v50 = vmul.f32 %v392_v48, %v372_v24 }
 0x46d   :  { %v3454_v51 = vsel %vm246_vm12, %v3449_v50, %v395_v49 }
 0x46e   :  { %v487_v52 = vrot.slane %v3454_v51, 2 }
 0x470   :  { %488 = vrot.lane.b32.xlu2 %v487_v52, %s3207_s18 }
 0x4b3   :  { %v570_v53 = vpop.permute.xlu1 %569 }
 0x4b4   :  { %2738 = vmatmul.msk.f32.vlgmr.msrb.gmra.mxu1 %vm119_vm0, %v570_v53 }
 0x4b5   :  { %1218 = vmatpush.msrb.mxu1 %v3281_v4 }
 0x4b7   :  { %1219 = vmatpush.msrb.mxu1 %v3286_v8 }
 0x4b9   :  { %1220 = vmatpush.msrb.mxu1 %v3292_v12 }
 0x4bb   :  { %1221 = vmatpush.msrb.mxu1 %v3299_v15 }
 0x4ca   :  { %v489_v36 = vpop.permute.xlu2 %488 }
 0x4cb   :  { %2736 = vmatmul.msk.f32.vlgmr.msrb.gmra.mxu0 %vm119_vm0, %v489_v36 }
 0x4cc   :  { %1138 = vmatpush.msrb.mxu0 %v3276_v1 }
 0x4ce   :  { %1139 = vmatpush.msrb.mxu0 %v3279_v3 }
 0x4d0   :  { %1140 = vmatpush.msrb.mxu0 %v3284_v7 }
 0x4d2   :  { %1141 = vmatpush.msrb.mxu0 %v3290_v11 }
 0x531   :  { %v590_v54 = vpop.f32.mrf.mxu1 }
 0x532   :  { %v594_v55 = vrot.slane %v590_v54, 6 }
 0x534   :  { %v596_v56 = vadd.f32 %v594_v55, %v3353_v26 }
 0x536   :  { %2844 = vtanh.f32 %v596_v56  ;;  %v2739_v63 = vmul.f32 -1.442695, %v596_v56  ;;  %v3481_v56 = vsel %vm320_vm11, %v3422_v37, %v456_v32  ;;  %v537_v32 = vrot.slane %v3495_v28, 6 }
 0x53c   :  { %v2845_v57 = vpop.eup %2844 }
 0x53d   :  { %622 = vrot.lane.b32.xlu0 %v2845_v57, %s3205_s4  ;;  %v618_v57 = vrot.slane %v3481_v56, 2 }
 0x548   :  { %v509_v59 = vpop.f32.mrf.mxu0 }
 0x549   :  { %v513_v60 = vrot.slane %v509_v59, 4 }
 0x54b   :  { %v515_v61 = vadd.f32 %v513_v60, %v3358_v30 }
 0x54d   :  { %2846 = vtanh.f32 %v515_v61  ;;  %v2737_v6 = vmul.f32 -1.442695, %v515_v61 }
 0x54e   :  { %2848 = vpow2.f32 %v2739_v63 }
 0x553   :  { %v2847_v62 = vpop.eup %2846 }
 0x554   :  { %541 = vrot.lane.b32.xlu1 %v2847_v62, %s3205_s4  ;;  %v2849_v0 = vpop.eup %2848 }
 0x555   :  { %v600_v2 = vadd.f32 1.0, %v2849_v0 }
 0x557   :  { %2850 = vrcp.f32 %v600_v2  ;;  %v612_v23 = vand.u32 2147483648, %v600_v2  ;;  %vm606_vm8 = vweird.f32 %v600_v2  ;;  %v610_v24 = vand.u32 2147483647, %v600_v2 }
 0x558   :  { %2852 = vpow2.f32 %v2737_v6 }
 0x559   :  { %v613_v34 = vor.u32 1.1754944e-38, %v612_v23  ;;  %vm611_vm10 = vcmp.eq.f32.partialorder %v610_v24, 8.507059e+37 }
 0x55d   :  { %v2851_v5 = vpop.eup %2850 }
 0x55e   :  { %v602_v9 = vmul.f32 %v2851_v5, %v600_v2  ;;  %v2853_v14 = vpop.eup %2852  ;;  %vm607_vm7 = vweird.f32 %v2851_v5 }
 0x55f   :  { %v519_v18 = vadd.f32 1.0, %v2853_v14  ;;  %vm608_vm9 = vmor %vm606_vm8, %vm607_vm7 }
 0x560   :  { %v603_v10 = vsub.f32 1.0, %v602_v9 }
 0x561   :  { %2854 = vrcp.f32 %v519_v18  ;;  %v531_v48 = vand.u32 2147483648, %v519_v18  ;;  %vm525_vm15 = vweird.f32 %v519_v18  ;;  %v529_v49 = vand.u32 2147483647, %v519_v18 }
 0x562   :  { %v604_v16 = vmul.f32 %v2851_v5, %v603_v10  ;;  %v556_v10 = vrot.slane %v3454_v51, 6 }
 0x563   :  { %v532_v53 = vor.u32 1.1754944e-38, %v531_v48  ;;  %vm530_vm2 = vcmp.eq.f32.partialorder %v529_v49, 8.507059e+37 }
 0x564   :  { %v605_v21 = vadd.f32 %v2851_v5, %v604_v16 }
 0x566   :  { %v609_v27 = vsel %vm608_vm9, %v2851_v5, %v605_v21 }
 0x567   :  { %v614_v38 = vsel %vm611_vm10, %v613_v34, %v609_v27  ;;  %v2855_v40 = vpop.eup %2854 }
 0x568   :  { %v521_v43 = vmul.f32 %v2855_v40, %v519_v18  ;;  %vm526_vm14 = vweird.f32 %v2855_v40  ;;  %v620_v59 = vmul.f32 %v618_v57, %v614_v38 }
 0x569   :  { %vm527_vm1 = vmor %vm525_vm15, %vm526_vm14 }
 0x56a   :  { %v522_v44 = vsub.f32 1.0, %v521_v43 }
 0x56c   :  { %v523_v45 = vmul.f32 %v2855_v40, %v522_v44 }
 0x56e   :  { %v524_v47 = vadd.f32 %v2855_v40, %v523_v45 }
 0x570   :  { %v528_v52 = vsel %vm527_vm1, %v2855_v40, %v524_v47 }
 0x571   :  { %v533_v36 = vsel %vm530_vm2, %v532_v53, %v528_v52 }
 0x572   :  { %v539_v37 = vmul.f32 %v537_v32, %v533_v36 }
 0x5af   :  { %v623_v35 = vpop.permute.xlu0 %622 }
 0x5b0   :  { %v625_v41 = vmul.f32 %v623_v35, %v614_v38 }
 0x5b2   :  { %627 = vrot.lane.b32.xlu2 %v625_v41, %s3207_s18 }
 0x5c6   :  { %v542_v54 = vpop.permute.xlu1 %541 }
 0x5c7   :  { %v544_v55 = vmul.f32 %v542_v54, %v533_v36 }
 0x5c9   :  { %546 = vrot.lane.b32.xlu0 %v544_v55, %s3207_s18 }
 0x60c   :  { %v628_v60 = vpop.permute.xlu2 %627 }
 0x60d   :  { %v3486_v61 = vadd.f32 %v628_v60, %v620_v59 }
 0x60f   :  { %2856 = vtanh.f32 %v3486_v61 }
 0x615   :  { %v2857_v62 = vpop.eup %2856 }
 0x616   :  { %633 = vrot.lane.b32.xlu1 %v2857_v62, %s3205_s4 }
 0x63b   :  { %v547_v63 = vpop.permute.xlu0 %546 }
 0x63c   :  { %v3500_v0 = vadd.f32 %v547_v63, %v539_v37 }
 0x63e   :  { %2858 = vtanh.f32 %v3500_v0  ;;  %v3561_v56 = vsel %vm246_vm12, %v3500_v0, %v537_v32 }
 0x644   :  { %v2859_v2 = vpop.eup %2858 }
 0x645   :  { %552 = vrot.lane.b32.xlu2 %v2859_v2, %s3205_s4 }
 0x688   :  { %v634_v5 = vpop.permute.xlu1 %633 }
 0x689   :  { %v3505_v6 = vmul.f32 %v634_v5, %v614_v38 }
 0x68b   :  { %v3510_v13 = vsel %vm320_vm11, %v3505_v6, %v637_v39  ;;  %v3547_v39 = vsel %vm320_vm11, %v3486_v61, %v618_v57  ;;  %v699_v57 = vrot.slane %v3561_v56, 6 }
 0x68c   :  { %v730_v42 = vrot.slane %v3510_v13, 2 }
 0x68e   :  { %731 = vrot.lane.b32.xlu0 %v730_v42, %s3207_s18 }
 0x69f   :  { %v553_v9 = vpop.permute.xlu2 %552 }
 0x6a0   :  { %v3517_v14 = vmul.f32 %v553_v9, %v533_v36  ;;  %v777_v9 = vrot.slane %v3547_v39, 2 }
 0x6a2   :  { %v3522_v20 = vsel %vm246_vm12, %v3517_v14, %v556_v10 }
 0x6a3   :  { %v649_v16 = vrot.slane %v3522_v20, 4 }
 0x6a5   :  { %650 = vrot.lane.b32.xlu1 %v649_v16, %s3207_s18 }
 0x700   :  { %v732_v18 = vpop.permute.xlu0 %731 }
 0x701   :  { %2742 = vmatmul.msk.f32.vlgmr.msra.gmra.mxu3 %vm119_vm0, %v732_v18 }
 0x702   :  { %1377 = vmatpush.msra.mxu3 %v3281_v4 }
 0x704   :  { %1378 = vmatpush.msra.mxu3 %v3286_v8 }
 0x706   :  { %1379 = vmatpush.msra.mxu3 %v3292_v12 }
 0x708   :  { %1380 = vmatpush.msra.mxu3 %v3299_v15 }
 0x717   :  { %v651_v51 = vpop.permute.xlu1 %650 }
 0x718   :  { %2740 = vmatmul.msk.f32.vlgmr.msra.gmra.mxu2 %vm119_vm0, %v651_v51 }
 0x719   :  { %1298 = vmatpush.msra.mxu2 %v3276_v1 }
 0x71b   :  { %1299 = vmatpush.msra.mxu2 %v3279_v3 }
 0x71d   :  { %1300 = vmatpush.msra.mxu2 %v3284_v7 }
 0x71f   :  { %1301 = vmatpush.msra.mxu2 %v3290_v11 }
 0x784   :  { %v752_v21 = vpop.f32.mrf.mxu3 }
 0x785   :  { %v755_v4 = vadd.f32 %v752_v21, %v3353_v26 }
 0x787   :  { %2860 = vtanh.f32 %v755_v4  ;;  %v2743_v1 = vmul.f32 -1.442695, %v755_v4 }
 0x78d   :  { %v2861_v8 = vpop.eup %2860 }
 0x78e   :  { %781 = vrot.lane.b32.xlu2 %v2861_v8, %s3205_s4 }
 0x79b   :  { %v671_v12 = vpop.f32.mrf.mxu2 }
 0x79c   :  { %v675_v15 = vrot.slane %v671_v12, 2 }
 0x79e   :  { %v677_v23 = vadd.f32 %v675_v15, %v3358_v30  ;;  %v718_v15 = vrot.slane %v3522_v20, 6 }
 0x7a0   :  { %2862 = vtanh.f32 %v677_v23  ;;  %v2741_v47 = vmul.f32 -1.442695, %v677_v23 }
 0x7a1   :  { %2864 = vpow2.f32 %v2743_v1 }
 0x7a6   :  { %v2863_v24 = vpop.eup %2862 }
 0x7a7   :  { %703 = vrot.lane.b32.xlu0 %v2863_v24, %s3205_s4  ;;  %v2865_v3 = vpop.eup %2864 }
 0x7a8   :  { %v759_v7 = vadd.f32 1.0, %v2865_v3 }
 0x7aa   :  { %2866 = vrcp.f32 %v759_v7  ;;  %v771_v38 = vand.u32 2147483648, %v759_v7  ;;  %vm765_vm4 = vweird.f32 %v759_v7  ;;  %v769_v40 = vand.u32 2147483647, %v759_v7 }
 0x7ab   :  { %2868 = vpow2.f32 %v2741_v47 }
 0x7ac   :  { %v772_v41 = vor.u32 1.1754944e-38, %v771_v38  ;;  %vm770_vm6 = vcmp.eq.f32.partialorder %v769_v40, 8.507059e+37 }
 0x7b0   :  { %v2867_v11 = vpop.eup %2866 }
 0x7b1   :  { %v761_v27 = vmul.f32 %v2867_v11, %v759_v7  ;;  %vm766_vm3 = vweird.f32 %v2867_v11  ;;  %v2869_v48 = vpop.eup %2868 }
 0x7b2   :  { %vm767_vm5 = vmor %vm765_vm4, %vm766_vm3  ;;  %v681_v49 = vadd.f32 1.0, %v2869_v48 }
 0x7b3   :  { %v762_v26 = vsub.f32 1.0, %v761_v27  ;;  %v3600_v27 = vadd.f32 %v3470_v58, %v115_v25 }
 0x7b4   :  { %2870 = vrcp.f32 %v681_v49  ;;  %v693_v59 = vand.u32 2147483648, %v681_v49  ;;  %vm687_vm8 = vweird.f32 %v681_v49  ;;  %v691_v60 = vand.u32 2147483647, %v681_v49 }
 0x7b5   :  { %v763_v34 = vmul.f32 %v2867_v11, %v762_v26 }
 0x7b6   :  { %v694_v37 = vor.u32 1.1754944e-38, %v693_v59  ;;  %vm692_vm10 = vcmp.eq.f32.partialorder %v691_v60, 8.507059e+37 }
 0x7b7   :  { %v764_v35 = vadd.f32 %v2867_v11, %v763_v34 }
 0x7b9   :  { %v768_v30 = vsel %vm767_vm5, %v2867_v11, %v764_v35 }
 0x7ba   :  { %v773_v44 = vsel %vm770_vm6, %v772_v41, %v768_v30  ;;  %v2871_v52 = vpop.eup %2870 }
 0x7bb   :  { %v683_v53 = vmul.f32 %v2871_v52, %v681_v49  ;;  %vm688_vm7 = vweird.f32 %v2871_v52  ;;  %v779_v10 = vmul.f32 %v777_v9, %v773_v44 }
 0x7bc   :  { %vm689_vm9 = vmor %vm687_vm8, %vm688_vm7 }
 0x7bd   :  { %v684_v36 = vsub.f32 1.0, %v683_v53 }
 0x7bf   :  { %v685_v54 = vmul.f32 %v2871_v52, %v684_v36 }
 0x7c1   :  { %v686_v55 = vadd.f32 %v2871_v52, %v685_v54 }
 0x7c3   :  { %v690_v62 = vsel %vm689_vm9, %v2871_v52, %v686_v55 }
 0x7c4   :  { %v695_v2 = vsel %vm692_vm10, %v694_v37, %v690_v62 }
 0x7c5   :  { %v701_v61 = vmul.f32 %v699_v57, %v695_v2 }
 0x7e8   :  { %v782_v43 = vpop.permute.xlu2 %781 }
 0x7e9   :  { %v784_v45 = vmul.f32 %v782_v43, %v773_v44 }
 0x7eb   :  { %786 = vrot.lane.b32.xlu1 %v784_v45, %s3207_s18 }
 0x819   :  { %v704_v63 = vpop.permute.xlu0 %703 }
 0x81a   :  { %v706_v5 = vmul.f32 %v704_v63, %v695_v2 }
 0x81c   :  { %708 = vrot.lane.b32.xlu2 %v706_v5, %s3207_s18 }
 0x85d   :  { %v787_v16 = vpop.permute.xlu1 %786 }
 0x85e   :  { %v3552_v18 = vadd.f32 %v787_v16, %v779_v10 }
 0x860   :  { %2872 = vtanh.f32 %v3552_v18 }
 0x866   :  { %v2873_v51 = vpop.eup %2872 }
 0x867   :  { %792 = vrot.lane.b32.xlu0 %v2873_v51, %s3205_s4 }
 0x876   :  { %v709_v21 = vpop.permute.xlu2 %708 }
 0x877   :  { %v3566_v4 = vadd.f32 %v709_v21, %v701_v61 }
 0x879   :  { %2874 = vtanh.f32 %v3566_v4  ;;  %v3625_v39 = vsel %vm246_vm12, %v3566_v4, %v699_v57 }
 0x87f   :  { %v2875_v8 = vpop.eup %2874 }
 0x880   :  { %714 = vrot.lane.b32.xlu1 %v2875_v8, %s3205_s4  ;;  %v3611_v8 = vsel %vm320_vm11, %v3552_v18, %v777_v9  ;;  %v854_v9 = vrot.slane %v3625_v39, 6 }
 0x8d9   :  { %v793_v12 = vpop.permute.xlu0 %792 }
 0x8da   :  { %v3570_v28 = vmul.f32 %v793_v12, %v773_v44  ;;  %v932_v12 = vrot.slane %v3611_v8, 2 }
 0x8dc   :  { %v3577_v32 = vsel %vm320_vm11, %v3570_v28, %v730_v42 }
 0x8dd   :  { %883 = vrot.lane.b32.xlu2 %v3577_v32, %s3207_s18  ;;  %v951_v56 = vrot.slane %v3577_v32, 2 }
 0x8f2   :  { %v715_v0 = vpop.permute.xlu1 %714 }
 0x8f3   :  { %v3582_v23 = vmul.f32 %v715_v0, %v695_v2 }
 0x8f5   :  { %v3587_v24 = vsel %vm246_vm12, %v3582_v23, %v718_v15 }
 0x8f6   :  { %v807_v13 = vrot.slane %v3587_v24, 6 }
 0x8f8   :  { %808 = vrot.lane.b32.xlu0 %v807_v13, %s3207_s18 }
 0x937   :  { %v884_v42 = vpop.permute.xlu2 %883 }
 0x938   :  { %2746 = vmatmul.msk.f32.vlgmr.msra.gmra.mxu1 %vm119_vm0, %v884_v42 }
 0x96a   :  { %v809_v1 = vpop.permute.xlu0 %808 }
 0x96b   :  { %2744 = vmatmul.msk.f32.vlgmr.msra.gmra.mxu0 %vm119_vm0, %v809_v1 }
 0x9b5   :  { %v904_v20 = vpop.f32.mrf.mxu1 }
 0x9b6   :  { %v908_v3 = vrot.slane %v904_v20, 2 }
 0x9b8   :  { %v910_v7 = vadd.f32 %v908_v3, %v3350_v22 }
 0x9ba   :  { %2876 = vtanh.f32 %v910_v7  ;;  %v2747_v38 = vmul.f32 -1.442695, %v910_v7 }
 0x9c0   :  { %v2877_v11 = vpop.eup %2876 }
 0x9c1   :  { %936 = vrot.lane.b32.xlu1 %v2877_v11, %s3205_s4 }
 0x9e8   :  { %v829_v26 = vpop.f32.mrf.mxu0 }
 0x9e9   :  { %v832_v34 = vadd.f32 %v829_v26, %v3600_v27 }
 0x9eb   :  { %2878 = vtanh.f32 %v832_v34  ;;  %v2745_v43 = vmul.f32 -1.442695, %v832_v34 }
 0x9ec   :  { %2880 = vpow2.f32 %v2747_v38 }
 0x9f1   :  { %v2879_v35 = vpop.eup %2878 }
 0x9f2   :  { %858 = vrot.lane.b32.xlu2 %v2879_v35, %s3205_s4  ;;  %v2881_v40 = vpop.eup %2880 }
 0x9f3   :  { %v914_v30 = vadd.f32 1.0, %v2881_v40 }
 0x9f5   :  { %2882 = vrcp.f32 %v914_v30  ;;  %v926_v48 = vand.u32 2147483648, %v914_v30  ;;  %vm920_vm15 = vweird.f32 %v914_v30  ;;  %v924_v49 = vand.u32 2147483647, %v914_v30 }
 0x9f6   :  { %2884 = vpow2.f32 %v2745_v43 }
 0x9f7   :  { %v927_v53 = vor.u32 1.1754944e-38, %v926_v48  ;;  %vm925_vm2 = vcmp.eq.f32.partialorder %v924_v49, 8.507059e+37 }
 0x9fb   :  { %v2883_v41 = vpop.eup %2882 }
 0x9fc   :  { %v916_v44 = vmul.f32 %v2883_v41, %v914_v30  ;;  %v2885_v25 = vpop.eup %2884  ;;  %vm921_vm14 = vweird.f32 %v2883_v41 }
 0x9fd   :  { %v836_v58 = vadd.f32 1.0, %v2885_v25  ;;  %vm922_vm1 = vmor %vm920_vm15, %vm921_vm14 }
 0x9fe   :  { %v917_v19 = vsub.f32 1.0, %v916_v44 }
 0x9ff   :  { %2886 = vrcp.f32 %v836_v58  ;;  %v848_v2 = vand.u32 2147483648, %v836_v58  ;;  %vm842_vm4 = vweird.f32 %v836_v58  ;;  %v846_v5 = vand.u32 2147483647, %v836_v58 }
 0xa00   :  { %v918_v45 = vmul.f32 %v2883_v41, %v917_v19 }
 0xa01   :  { %v849_v16 = vor.u32 1.1754944e-38, %v848_v2  ;;  %vm847_vm6 = vcmp.eq.f32.partialorder %v846_v5, 8.507059e+37 }
 0xa02   :  { %v919_v47 = vadd.f32 %v2883_v41, %v918_v45 }
 0xa04   :  { %v923_v52 = vsel %vm922_vm1, %v2883_v41, %v919_v47 }
 0xa05   :  { %v928_v36 = vsel %vm925_vm2, %v927_v53, %v923_v52  ;;  %v2887_v59 = vpop.eup %2886 }
 0xa06   :  { %v838_v60 = vmul.f32 %v2887_v59, %v836_v58  ;;  %vm843_vm3 = vweird.f32 %v2887_v59  ;;  %v934_v0 = vmul.f32 %v932_v12, %v928_v36 }
 0xa07   :  { %vm844_vm5 = vmor %vm842_vm4, %vm843_vm3 }
 0xa08   :  { %v839_v62 = vsub.f32 1.0, %v838_v60 }
 0xa0a   :  { %v840_v37 = vmul.f32 %v2887_v59, %v839_v62 }
 0xa0c   :  { %v841_v63 = vadd.f32 %v2887_v59, %v840_v37 }
 0xa0e   :  { %v845_v10 = vsel %vm844_vm5, %v2887_v59, %v841_v63 }
 0xa0f   :  { %v850_v61 = vsel %vm847_vm6, %v849_v16, %v845_v10 }
 0xa10   :  { %v856_v18 = vmul.f32 %v854_v9, %v850_v61 }
 0xa33   :  { %v937_v54 = vpop.permute.xlu1 %936 }
 0xa34   :  { %v939_v55 = vmul.f32 %v937_v54, %v928_v36 }
 0xa36   :  { %941 = vrot.lane.b32.xlu0 %v939_v55, %s3207_s18 }
 0xa4c   :  { %v859_v51 = vpop.permute.xlu2 %858 }
 0xa4d   :  { %v861_v21 = vmul.f32 %v859_v51, %v850_v61 }
 0xa4f   :  { %863 = vrot.lane.b32.xlu1 %v861_v21, %s3207_s18 }
 0xaa8   :  { %v942_v15 = vpop.permute.xlu0 %941 }
 0xaa9   :  { %v3616_v42 = vadd.f32 %v942_v15, %v934_v0 }
 0xaab   :  { %2888 = vtanh.f32 %v3616_v42 }
 0xab1   :  { %v2889_v1 = vpop.eup %2888 }
 0xab2   :  { %947 = vrot.lane.b32.xlu2 %v2889_v1, %s3205_s4 }
 0xac1   :  { %v864_v20 = vpop.permute.xlu1 %863 }
 0xac2   :  { %v3630_v3 = vadd.f32 %v864_v20, %v856_v18 }
 0xac4   :  { %2890 = vtanh.f32 %v3630_v3  ;;  %v3682_v8 = vsel %vm320_vm11, %v3630_v3, %v854_v9 }
 0xaca   :  { %v2891_v7 = vpop.eup %2890 }
 0xacb   :  { %869 = vrot.lane.b32.xlu0 %v2891_v7, %s3205_s4 }
 0xb0c   :  { %v948_v11 = vpop.permute.xlu2 %947 }
 0xb0d   :  { %v3635_v26 = vmul.f32 %v948_v11, %v928_v36 }
 0xb0f   :  { %v3640_v57 = vsel %vm246_vm12, %v3635_v26, %v951_v56 }
 0xb10   :  { %v1041_v4 = vrot.slane %v3640_v57, 6  ;;  %v1110_v39 = vrot.slane %v3640_v57, 2 }
 0xb12   :  { %1042 = vrot.lane.b32.xlu1 %v1041_v4, %s3207_s18  ;;  %v3668_v4 = vsel %vm246_vm12, %v3616_v42, %v932_v12  ;;  %v1011_v12 = vrot.slane %v3682_v8, 6 }
 0xb3d   :  { %v870_v34 = vpop.permute.xlu0 %869 }
 0xb3e   :  { %v3644_v35 = vmul.f32 %v870_v34, %v850_v61  ;;  %v1091_v34 = vrot.slane %v3668_v4, 2 }
 0xb40   :  { %v3651_v32 = vsel %vm320_vm11, %v3644_v35, %v807_v13 }
 0xb41   :  { %962 = vrot.lane.b32.xlu2 %v3651_v32, %s3207_s18 }
 0xb84   :  { %v1043_v38 = vpop.permute.xlu1 %1042 }
 0xb85   :  { %2750 = vmatmul.msk.f32.vlgmr.msrb.gmra.mxu3 %vm119_vm0, %v1043_v38 }
 0xb9b   :  { %v963_v40 = vpop.permute.xlu2 %962 }
 0xb9c   :  { %2748 = vmatmul.msk.f32.vlgmr.msrb.gmra.mxu2 %vm119_vm0, %v963_v40 }
 0xc08   :  { %v1063_v30 = vpop.f32.mrf.mxu3 }
 0xc09   :  { %v1067_v41 = vrot.slane %v1063_v30, 4 }
 0xc0b   :  { %v1069_v43 = vadd.f32 %v1067_v41, %v3350_v22 }
 0xc0d   :  { %2892 = vtanh.f32 %v1069_v43  ;;  %v2751_v25 = vmul.f32 -1.442695, %v1069_v43 }
 0xc13   :  { %v2893_v24 = vpop.eup %2892 }
 0xc14   :  { %1095 = vrot.lane.b32.xlu0 %v2893_v24, %s3205_s4 }
 0xc1f   :  { %v983_v44 = vpop.f32.mrf.mxu2 }
 0xc20   :  { %v987_v13 = vrot.slane %v983_v44, 6 }
 0xc22   :  { %v989_v19 = vadd.f32 %v987_v13, %v3600_v27 }
 0xc24   :  { %2894 = vtanh.f32 %v989_v19  ;;  %v2749_v49 = vmul.f32 -1.442695, %v989_v19 }
 0xc25   :  { %2896 = vpow2.f32 %v2751_v25  ;;  %v1030_v25 = vrot.slane %v3651_v32, 6 }
 0xc2a   :  { %v2895_v45 = vpop.eup %2894 }
 0xc2b   :  { %1015 = vrot.lane.b32.xlu1 %v2895_v45, %s3205_s4  ;;  %v2897_v58 = vpop.eup %2896 }
 0xc2c   :  { %v1073_v47 = vadd.f32 1.0, %v2897_v58 }
 0xc2e   :  { %2898 = vrcp.f32 %v1073_v47  ;;  %v1085_v60 = vand.u32 2147483648, %v1073_v47  ;;  %vm1079_vm8 = vweird.f32 %v1073_v47  ;;  %v1083_v62 = vand.u32 2147483647, %v1073_v47 }
 0xc2f   :  { %2900 = vpow2.f32 %v2749_v49 }
 0xc30   :  { %v1086_v63 = vor.u32 1.1754944e-38, %v1085_v60  ;;  %vm1084_vm10 = vcmp.eq.f32.partialorder %v1083_v62, 8.507059e+37 }
 0xc34   :  { %v2899_v48 = vpop.eup %2898 }
 0xc35   :  { %v1075_v52 = vmul.f32 %v2899_v48, %v1073_v47  ;;  %v2901_v36 = vpop.eup %2900  ;;  %vm1080_vm7 = vweird.f32 %v2899_v48 }
 0xc36   :  { %v993_v55 = vadd.f32 1.0, %v2901_v36  ;;  %vm1081_vm9 = vmor %vm1079_vm8, %vm1080_vm7 }
 0xc37   :  { %v1076_v53 = vsub.f32 1.0, %v1075_v52 }
 0xc38   :  { %2902 = vrcp.f32 %v993_v55  ;;  %v1005_v15 = vand.u32 2147483648, %v993_v55  ;;  %vm999_vm15 = vweird.f32 %v993_v55  ;;  %v1003_v1 = vand.u32 2147483647, %v993_v55 }
 0xc39   :  { %v1077_v54 = vmul.f32 %v2899_v48, %v1076_v53 }
 0xc3a   :  { %v1006_v20 = vor.u32 1.1754944e-38, %v1005_v15  ;;  %vm1004_vm2 = vcmp.eq.f32.partialorder %v1003_v1, 8.507059e+37 }
 0xc3b   :  { %v1078_v59 = vadd.f32 %v2899_v48, %v1077_v54 }
 0xc3d   :  { %v1082_v37 = vsel %vm1081_vm9, %v2899_v48, %v1078_v59 }
 0xc3e   :  { %v1087_v5 = vsel %vm1084_vm10, %v1086_v63, %v1082_v37  ;;  %v2903_v10 = vpop.eup %2902 }
 0xc3f   :  { %v995_v51 = vmul.f32 %v2903_v10, %v993_v55  ;;  %vm1000_vm14 = vweird.f32 %v2903_v10  ;;  %v1093_v38 = vmul.f32 %v1091_v34, %v1087_v5 }
 0xc40   :  { %vm1001_vm1 = vmor %vm999_vm15, %vm1000_vm14 }
 0xc41   :  { %v996_v61 = vsub.f32 1.0, %v995_v51 }
 0xc43   :  { %v997_v21 = vmul.f32 %v2903_v10, %v996_v61 }
 0xc45   :  { %v998_v0 = vadd.f32 %v2903_v10, %v997_v21 }
 0xc47   :  { %v1002_v18 = vsel %vm1001_vm1, %v2903_v10, %v998_v0 }
 0xc48   :  { %v1007_v7 = vsel %vm1004_vm2, %v1006_v20, %v1002_v18 }
 0xc49   :  { %v1013_v42 = vmul.f32 %v1011_v12, %v1007_v7 }
 0xc86   :  { %v1096_v2 = vpop.permute.xlu0 %1095 }
 0xc87   :  { %v1098_v16 = vmul.f32 %v1096_v2, %v1087_v5 }
 0xc89   :  { %1100 = vrot.lane.b32.xlu2 %v1098_v16, %s3207_s18 }
 0xc9d   :  { %v1016_v11 = vpop.permute.xlu1 %1015 }
 0xc9e   :  { %v1018_v56 = vmul.f32 %v1016_v11, %v1007_v7 }
 0xca0   :  { %1020 = vrot.lane.b32.xlu0 %v1018_v56, %s3207_s18 }
 0xce3   :  { %v1101_v40 = vpop.permute.xlu2 %1100 }
 0xce4   :  { %v3673_v30 = vadd.f32 %v1101_v40, %v1093_v38 }
 0xce6   :  { %2904 = vtanh.f32 %v3673_v30 }
 0xcec   :  { %v2905_v41 = vpop.eup %2904 }
 0xced   :  { %1106 = vrot.lane.b32.xlu1 %v2905_v41, %s3205_s4 }
 0xd12   :  { %v1021_v43 = vpop.permute.xlu0 %1020 }
 0xd13   :  { %v3687_v24 = vadd.f32 %v1021_v43, %v1013_v42 }
 0xd15   :  { %2906 = vtanh.f32 %v3687_v24  ;;  %v3738_v4 = vsel %vm320_vm11, %v3687_v24, %v1011_v12 }
 0xd1b   :  { %v2907_v44 = vpop.eup %2906 }
 0xd1c   :  { %1026 = vrot.lane.b32.xlu2 %v2907_v44, %s3205_s4 }
 0xd5f   :  { %v1107_v13 = vpop.permute.xlu1 %1106 }
 0xd60   :  { %v3692_v19 = vmul.f32 %v1107_v13, %v1087_v5 }
 0xd62   :  { %v3697_v9 = vsel %vm246_vm12, %v3692_v19, %v1110_v39 }
 0xd63   :  { %v1201_v3 = vrot.slane %v3697_v9, 4  ;;  %v1270_v8 = vrot.slane %v3697_v9, 2 }
 0xd65   :  { %1202 = vrot.lane.b32.xlu0 %v1201_v3, %s3207_s18 }
 0xd76   :  { %v1027_v45 = vpop.permute.xlu2 %1026 }
 0xd77   :  { %v3702_v58 = vmul.f32 %v1027_v45, %v1007_v7 }
 0xd79   :  { %v3707_v57 = vsel %vm320_vm11, %v3702_v58, %v1030_v25 }
 0xd7a   :  { %v1121_v47 = vrot.slane %v3707_v57, 2 }
 0xd7c   :  { %1122 = vrot.lane.b32.xlu1 %v1121_v47, %s3207_s18 }
 0xdd7   :  { %v1203_v48 = vpop.permute.xlu0 %1202 }
 0xdd8   :  { %2754 = vmatmul.msk.f32.vlgmr.msrb.gmra.mxu1 %vm119_vm0, %v1203_v48  ;;  %v3724_v48 = vsel %vm246_vm12, %v3673_v30, %v1091_v34  ;;  %v1171_v34 = vrot.slane %v3738_v4, 6 }
 0xdee   :  { %v1123_v49 = vpop.permute.xlu1 %1122 }
 0xdef   :  { %2752 = vmatmul.msk.f32.vlgmr.msrb.gmra.mxu0 %vm119_vm0, %v1123_v49  ;;  %v1251_v49 = vrot.slane %v3724_v48, 2 }
 0xe55   :  { %v1223_v52 = vpop.f32.mrf.mxu1 }
 0xe56   :  { %v1227_v53 = vrot.slane %v1223_v52, 6 }
 0xe58   :  { %v1229_v32 = vadd.f32 %v1227_v53, %v3350_v22 }
 0xe5a   :  { %2908 = vtanh.f32 %v1229_v32  ;;  %v2755_v62 = vmul.f32 -1.442695, %v1229_v32 }
 0xe60   :  { %v2909_v36 = vpop.eup %2908 }
 0xe61   :  { %1255 = vrot.lane.b32.xlu2 %v2909_v36, %s3205_s4 }
 0xe6c   :  { %v1143_v54 = vpop.f32.mrf.mxu0 }
 0xe6d   :  { %v1147_v55 = vrot.slane %v1143_v54, 4 }
 0xe6f   :  { %v1149_v59 = vadd.f32 %v1147_v55, %v3600_v27 }
 0xe71   :  { %2910 = vtanh.f32 %v1149_v59  ;;  %v2753_v7 = vmul.f32 -1.442695, %v1149_v59 }
 0xe72   :  { %2912 = vpow2.f32 %v2755_v62 }
 0xe77   :  { %v2911_v60 = vpop.eup %2910 }
 0xe78   :  { %1175 = vrot.lane.b32.xlu0 %v2911_v60, %s3205_s4  ;;  %v2913_v37 = vpop.eup %2912 }
 0xe79   :  { %v1233_v63 = vadd.f32 1.0, %v2913_v37 }
 0xe7b   :  { %2914 = vrcp.f32 %v1233_v63  ;;  %v1245_v61 = vand.u32 2147483648, %v1233_v63  ;;  %vm1239_vm4 = vweird.f32 %v1233_v63  ;;  %v1243_v21 = vand.u32 2147483647, %v1233_v63 }
 0xe7c   :  { %2916 = vpow2.f32 %v2753_v7 }
 0xe7d   :  { %v1246_v15 = vor.u32 1.1754944e-38, %v1245_v61  ;;  %vm1244_vm6 = vcmp.eq.f32.partialorder %v1243_v21, 8.507059e+37 }
 0xe81   :  { %v2915_v2 = vpop.eup %2914 }
 0xe82   :  { %v1235_v5 = vmul.f32 %v2915_v2, %v1233_v63  ;;  %vm1240_vm3 = vweird.f32 %v2915_v2  ;;  %v2917_v11 = vpop.eup %2916  ;;  %v1190_v63 = vrot.slane %v3707_v57, 6 }
 0xe83   :  { %vm1241_vm5 = vmor %vm1239_vm4, %vm1240_vm3  ;;  %v1153_v56 = vadd.f32 1.0, %v2917_v11 }
 0xe84   :  { %v1236_v10 = vsub.f32 1.0, %v1235_v5 }
 0xe85   :  { %2918 = vrcp.f32 %v1153_v56  ;;  %v1165_v44 = vand.u32 2147483648, %v1153_v56  ;;  %vm1159_vm8 = vweird.f32 %v1153_v56  ;;  %v1163_v13 = vand.u32 2147483647, %v1153_v56 }
 0xe86   :  { %v1237_v16 = vmul.f32 %v2915_v2, %v1236_v10 }
 0xe87   :  { %v1166_v3 = vor.u32 1.1754944e-38, %v1165_v44  ;;  %vm1164_vm10 = vcmp.eq.f32.partialorder %v1163_v13, 8.507059e+37 }
 0xe88   :  { %v1238_v51 = vadd.f32 %v2915_v2, %v1237_v16 }
 0xe8a   :  { %v1242_v0 = vsel %vm1241_vm5, %v2915_v2, %v1238_v51 }
 0xe8b   :  { %v1247_v18 = vsel %vm1244_vm6, %v1246_v15, %v1242_v0  ;;  %v2919_v38 = vpop.eup %2918 }
 0xe8c   :  { %v1155_v40 = vmul.f32 %v2919_v38, %v1153_v56  ;;  %vm1160_vm7 = vweird.f32 %v2919_v38  ;;  %v1253_v52 = vmul.f32 %v1251_v49, %v1247_v18 }
 0xe8d   :  { %vm1161_vm9 = vmor %vm1159_vm8, %vm1160_vm7  ;;  %vm404_vm7 = vcmask 257026   ;;  %vm646_vm8 = vcmask 519426  }
 0xe8e   :  { %v1156_v41 = vsub.f32 1.0, %v1155_v40 }
 0xe90   :  { %v1157_v42 = vmul.f32 %v2919_v38, %v1156_v41 }
 0xe92   :  { %v1158_v43 = vadd.f32 %v2919_v38, %v1157_v42 }
 0xe94   :  { %v1162_v39 = vsel %vm1161_vm9, %v2919_v38, %v1158_v43  ;;  %vm565_vm9 = vcmask 259076  }
 0xe95   :  { %v1167_v25 = vsel %vm1164_vm10, %v1166_v3, %v1162_v39  ;;  %vm484_vm10 = vcmask 521476  }
 0xe96   :  { %v1173_v30 = vmul.f32 %v1171_v34, %v1167_v25 }
 0xebb   :  { %v1256_v1 = vpop.permute.xlu2 %1255 }
 0xebc   :  { %v1258_v20 = vmul.f32 %v1256_v1, %v1247_v18 }
 0xebe   :  { %1260 = vrot.lane.b32.xlu1 %v1258_v20, %s3207_s18 }
 0xeea   :  { %v1176_v45 = vpop.permute.xlu0 %1175 }
 0xeeb   :  { %v1178_v47 = vmul.f32 %v1176_v45, %v1167_v25 }
 0xeed   :  { %1180 = vrot.lane.b32.xlu2 %v1178_v47, %s3207_s18 }
 0xf30   :  { %v1261_v53 = vpop.permute.xlu1 %1260 }
 0xf31   :  { %v3729_v32 = vadd.f32 %v1261_v53, %v1253_v52 }
 0xf33   :  { %2920 = vtanh.f32 %v3729_v32 }
 0xf39   :  { %v2921_v36 = vpop.eup %2920 }
 0xf3a   :  { %1266 = vrot.lane.b32.xlu0 %v2921_v36, %s3205_s4 }
 0xf47   :  { %v1181_v54 = vpop.permute.xlu2 %1180 }
 0xf48   :  { %v3743_v55 = vadd.f32 %v1181_v54, %v1173_v30 }
 0xf4a   :  { %2922 = vtanh.f32 %v3743_v55  ;;  %v1193_v48 = vsel %vm320_vm11, %v3743_v55, %v1171_v34  ;;  %v722_v34 = vsel %vm246_vm12, %v3582_v23, 0.0  ;;  %v479_v23 = vsel %vm320_vm11, %v3439_v46, 0.0 }
 0xf4b   :  { %v1034_v46 = vsel %vm320_vm11, %v3702_v58, 0.0 }
 0xf50   :  { %v2923_v59 = vpop.eup %2922 }
 0xf51   :  { %1186 = vrot.lane.b32.xlu1 %v2923_v59, %s3205_s4 }
 0xfac   :  { %v1267_v60 = vpop.permute.xlu0 %1266 }
 0xfad   :  { %v3748_v62 = vmul.f32 %v1267_v60, %v1247_v18 }
 0xfaf   :  { %v3753_v12 = vsel %vm246_vm12, %v3748_v62, %v1270_v8 }
 0xfb0   :  { %v1360_v24 = vrot.slane %v3753_v12, 2 }
 0xfb2   :  { %1361 = vrot.lane.b32.xlu2 %v1360_v24, %s3207_s18 }
 0xfc3   :  { %v1187_v37 = vpop.permute.xlu1 %1186 }
 0xfc4   :  { %v3760_v2 = vmul.f32 %v1187_v37, %v1167_v25 }
 0xfc6   :  { %v3765_v9 = vsel %vm320_vm11, %v3760_v2, %v1190_v63 }
 0xfc7   :  { %v1281_v5 = vrot.slane %v3765_v9, 4 }
 0xfc9   :  { %1282 = vrot.lane.b32.xlu0 %v1281_v5, %s3207_s18 }
0x100c   :  { %v1362_v10 = vpop.permute.xlu2 %1361 }
0x100d   :  { %2758 = vmatmul.msk.f32.vlgmr.msra.gmra.mxu3 %vm119_vm0, %v1362_v10  ;;  %v399_v10 = vsel %vm246_vm12, %v3449_v50, 0.0  ;;  %v1273_v50 = vsel %vm246_vm12, %v3729_v32, %v1251_v49  ;;  %v1331_v49 = vrot.slane %v1193_v48, 6 }
0x103b   :  { %v1283_v16 = vpop.permute.xlu0 %1282 }
0x103c   :  { %2756 = vmatmul.msk.f32.vlgmr.msra.gmra.mxu2 %vm119_vm0, %v1283_v16  ;;  %v955_v16 = vsel %vm246_vm12, %v3635_v26, 0.0 }
0x1090   :  { %v1382_v51 = vpop.f32.mrf.mxu3 }
0x1091   :  { %v1385_v57 = vadd.f32 %v1382_v51, %v3350_v22  ;;  %v641_v51 = vsel %vm320_vm11, %v3505_v6, 0.0  ;;  %v560_v6 = vsel %vm246_vm12, %v3517_v14, 0.0 }
0x1093   :  { %2924 = vtanh.f32 %v1385_v57  ;;  %v2759_v18 = vmul.f32 -1.442695, %v1385_v57  ;;  %v1407_v57 = vrot.slane %v1273_v50, 2  ;;  %v1439_v50 = vld [vmem:[#allocation9 + $0x18] sm:$0xff] }
0x1099   :  { %v2925_v61 = vpop.eup %2924 }
0x109a   :  { %1411 = vrot.lane.b32.xlu1 %v2925_v61, %s3205_s4 }
0x10bf   :  { %v1303_v21 = vpop.f32.mrf.mxu2 }
0x10c0   :  { %v1307_v0 = vrot.slane %v1303_v21, 2 }
0x10c2   :  { %v1309_v15 = vadd.f32 %v1307_v0, %v3600_v27 }
0x10c4   :  { %2926 = vtanh.f32 %v1309_v15  ;;  %v2757_v56 = vmul.f32 -1.442695, %v1309_v15 }
0x10c5   :  { %2928 = vpow2.f32 %v2759_v18 }
0x10ca   :  { %v2927_v1 = vpop.eup %2926 }
0x10cb   :  { %1335 = vrot.lane.b32.xlu2 %v2927_v1, %s3205_s4  ;;  %v2929_v20 = vpop.eup %2928  ;;  %v1114_v1 = vsel %vm246_vm12, %v3692_v19, 0.0  ;;  %v799_v19 = vsel %vm320_vm11, %v3570_v28, 0.0  ;;  %v1274_v28 = vsel %vm246_vm12, %v3748_v62, 0.0 }
0x10cc   :  { %v1389_v7 = vadd.f32 1.0, %v2929_v20 }
0x10ce   :  { %2930 = vrcp.f32 %v1389_v7  ;;  %v1401_v27 = vand.u32 2147483648, %v1389_v7  ;;  %vm1395_vm15 = vweird.f32 %v1389_v7  ;;  %v1399_v44 = vand.u32 2147483647, %v1389_v7 }
0x10cf   :  { %2932 = vpow2.f32 %v2757_v56 }
0x10d0   :  { %v1402_v39 = vor.u32 1.1754944e-38, %v1401_v27  ;;  %vm1400_vm2 = vcmp.eq.f32.partialorder %v1399_v44, 8.507059e+37  ;;  %v1451_v27 = vld [vmem:[#allocation9 + $0x78] sm:$0xff]  ;;  %v1448_v44 = vld [vmem:[#allocation9 + $0x60] sm:$0xff] }
0x10d1   :  { %1496 = vmatpush.msra.mxu1 %v1451_v27 }
0x10d4   :  { %v2931_v11 = vpop.eup %2930 }
0x10d5   :  { %v1391_v22 = vmul.f32 %v2931_v11, %v1389_v7  ;;  %v2933_v41 = vpop.eup %2932  ;;  %vm1396_vm14 = vweird.f32 %v2931_v11 }
0x10d6   :  { %v1313_v42 = vadd.f32 1.0, %v2933_v41  ;;  %vm1397_vm1 = vmor %vm1395_vm15, %vm1396_vm14  ;;  %vm327_vm14 = vcmask 523526   ;;  %vm804_vm15 = vcmask 517376   ;;  %v1350_v41 = vrot.slane %v3765_v9, 6  ;;  %v1447_v9 = vld [vmem:[#allocation9 + $0x58] sm:$0xff] }
0x10d7   :  { %v1392_v38 = vsub.f32 1.0, %v1391_v22 }
0x10d8   :  { %2934 = vrcp.f32 %v1313_v42  ;;  %v1325_v54 = vand.u32 2147483648, %v1313_v42  ;;  %vm1319_vm4 = vweird.f32 %v1313_v42  ;;  %v1323_v59 = vand.u32 2147483647, %v1313_v42 }
0x10d9   :  { %v1393_v40 = vmul.f32 %v2931_v11, %v1392_v38 }
0x10da   :  { %v1326_v8 = vor.u32 1.1754944e-38, %v1325_v54  ;;  %vm1324_vm6 = vcmp.eq.f32.partialorder %v1323_v59, 8.507059e+37 }
0x10db   :  { %v1394_v43 = vadd.f32 %v2931_v11, %v1393_v40 }
0x10dd   :  { %v1398_v13 = vsel %vm1397_vm1, %v2931_v11, %v1394_v43  ;;  %v1450_v43 = vld [vmem:[#allocation9 + $0x70] sm:$0xff]  ;;  %vm727_vm1 = vcmask 261126  }
0x10de   :  { %v3775_v3 = vsel %vm1400_vm2, %v1402_v39, %v1398_v13  ;;  %v2935_v47 = vpop.eup %2934  ;;  %1473 = vmatpush.msra.mxu0 %v1450_v43  ;;  %v1449_v39 = vld [vmem:[#allocation9 + $0x68] sm:$0xff] }
0x10df   :  { %v1315_v52 = vmul.f32 %v2935_v47, %v1313_v42  ;;  %vm1320_vm3 = vweird.f32 %v2935_v47  ;;  %v1409_v61 = vmul.f32 %v1407_v57, %v3775_v3  ;;  %1497 = vmatpush.msra.mxu1 %v1449_v39  ;;  %v1436_v57 = vld [vmem:[#allocation9] sm:$0xff] }
0x10e0   :  { %vm1321_vm5 = vmor %vm1319_vm4, %vm1320_vm3  ;;  %1474 = vmatpush.msra.mxu0 %v1448_v44 }
0x10e1   :  { %v1316_v53 = vsub.f32 1.0, %v1315_v52  ;;  %v1444_v52 = vld [vmem:[#allocation9 + $0x40] sm:$0xff]  ;;  %1498 = vmatpush.msra.mxu1 %v1447_v9 }
0x10e3   :  { %v1317_v36 = vmul.f32 %v2935_v47, %v1316_v53  ;;  %v1445_v53 = vld [vmem:[#allocation9 + $0x48] sm:$0xff] }
0x10e4   :  { %1499 = vmatpush.msra.mxu1 %v1445_v53 }
0x10e5   :  { %v1318_v30 = vadd.f32 %v2935_v47, %v1317_v36 }
0x10e7   :  { %v1322_v60 = vsel %vm1321_vm5, %v2935_v47, %v1318_v30  ;;  %v3874_v47 = vld [vmem:[#allocation10 + $0x10] sm:$0xff] }
0x10e8   :  { %v3779_v63 = vsel %vm1324_vm6, %v1326_v8, %v1322_v60  ;;  %v1442_v8 = vld [vmem:[#allocation9 + $0x30] sm:$0xff] }
0x10e9   :  { %v1333_v32 = vmul.f32 %v1331_v49, %v3779_v63 }
0x110c   :  { %v1412_v45 = vpop.permute.xlu1 %1411 }
0x110d   :  { %v1414_v25 = vmul.f32 %v1412_v45, %v3775_v3  ;;  %v1446_v45 = vld [vmem:[#allocation9 + $0x50] sm:$0xff] }
0x110e   :  { %1475 = vmatpush.msra.mxu0 %v1446_v45 }
0x110f   :  { %1416 = vrot.lane.b32.xlu0 %v1414_v25, %s3207_s18 }
0x1110   :  { %1476 = vmatpush.msra.mxu0 %v1444_v52 }
0x1112   :  { %1477 = vmatpush.msra.mxu0 %v1442_v8 }
0x1125   :  { %v1336_v37 = vpop.permute.xlu2 %1335 }
0x1126   :  { %v1338_v5 = vmul.f32 %v1336_v37, %v3779_v63  ;;  %v1443_v37 = vld [vmem:[#allocation9 + $0x38] sm:$0xff] }
0x1127   :  { %1500 = vmatpush.msra.mxu1 %v1443_v37 }
0x1128   :  { %1340 = vrot.lane.b32.xlu1 %v1338_v5, %s3207_s18  ;;  %v1440_v5 = vld [vmem:[#allocation9 + $0x20] sm:$0xff] }
0x1129   :  { %1478 = vmatpush.msra.mxu0 %v1440_v5 }
0x1130   :  { %401 = vrot.lane.b32.xlu1 %v399_v10, %s3207_s18  ;;  %v1441_v10 = vld [vmem:[#allocation9 + $0x28] sm:$0xff] }
0x1131   :  { %1501 = vmatpush.msra.mxu1 %v1441_v10 }
0x1133   :  { %1502 = vmatpush.msra.mxu1 %v1439_v50 }
0x1138   :  { %957 = vrot.lane.b32.xlu1 %v955_v16, %s3205_s4  ;;  %v3887_v16 = vld [vmem:[#allocation10] sm:$0xff] }
0x1140   :  { %643 = vrot.lane.b32.xlu1 %v641_v51, %s3205_s4  ;;  %v1438_v51 = vld [vmem:[#allocation9 + $0x10] sm:$0xff] }
0x1141   :  { %1479 = vmatpush.msra.mxu0 %v1438_v51 }
0x1143   :  { %1480 = vmatpush.msra.mxu0 %v1436_v57 }
0x1181   :  { %v1417_v21 = vpop.permute.xlu0 %1416 }
0x1182   :  { %v1419_v0 = vadd.f32 %v1417_v21, %v1409_v61  ;;  %v1437_v61 = vld [vmem:[#allocation9 + $0x8] sm:$0xff]  ;;  %v3893_v21 = vld [vmem:[#allocation10 + $0x38] sm:$0xff] }
0x1183   :  { %1503 = vmatpush.msra.mxu1 %v1437_v61  ;;  %1592 = vmatpush.msrb.mxu3 %v3893_v21 }
0x1184   :  { %2936 = vtanh.f32 %v1419_v0  ;;  %v3895_v0 = vld [vmem:[#allocation10 + $0x30] sm:$0xff] }
0x1185   :  { %2030 = vmatpush.msrb.mxu1 %v3893_v21  ;;  %1593 = vmatpush.msrb.mxu3 %v3895_v0 }
0x1187   :  { %2031 = vmatpush.msrb.mxu1 %v3895_v0 }
0x118a   :  { %v2937_v26 = vpop.eup %2936 }
0x118b   :  { %1422 = vrot.lane.b32.xlu2 %v2937_v26, %s3205_s4  ;;  %v3900_v26 = vld [vmem:[#allocation10 + $0x28] sm:$0xff] }
0x118c   :  { %1594 = vmatpush.msrb.mxu3 %v3900_v26  ;;  %2032 = vmatpush.msrb.mxu1 %v3900_v26 }
0x1193   :  { %562 = vrot.lane.b32.xlu2 %v560_v6, %s3207_s18 }
0x119a   :  { %v1341_v15 = vpop.permute.xlu1 %1340 }
0x119b   :  { %v1343_v18 = vadd.f32 %v1341_v15, %v1333_v32  ;;  %1116 = vrot.lane.b32.xlu2 %v1114_v1, %s3205_s4  ;;  %v3924_v32 = vld [vmem:[#allocation10 + $0x20] sm:$0xff]  ;;  %v3947_v1 = vld [vmem:[%s4375_s7] sm:$0x3] }
0x119c   :  { %1595 = vmatpush.msrb.mxu3 %v3924_v32  ;;  %2033 = vmatpush.msrb.mxu1 %v3924_v32 }
0x119d   :  { %2938 = vtanh.f32 %v1343_v18  ;;  %1596 = vmatmul.f32.vlgmr.msrb.gmra.mxu3 %v3204_v17  ;;  %v1454_v18 = vperm.slane %v3947_v1, 0 }
0x119e   :  { %1734 = vmatpush.msra.mxu3 %v3893_v21 }
0x11a0   :  { %1735 = vmatpush.msra.mxu3 %v3895_v0 }
0x11a2   :  { %v402_v14 = vpop.permute.xlu1 %401  ;;  %1736 = vmatpush.msra.mxu3 %v3900_v26 }
0x11a3   :  { %v2939_v20 = vpop.eup %2938  ;;  %405 = vst.msk [vmem:[#allocation2] sm:$0xc] %vm404_vm7, %v402_v14  ;;  %324 = vrot.lane.b32.xlu2 %v3384_v31, %s3205_s4  ;;  %v1194_v31 = vsel %vm320_vm11, %v3760_v2, 0.0  ;;  %v876_v2 = vsel %vm320_vm11, %v3644_v35, 0.0  ;;  %v1455_v14 = vperm.slane %v3947_v1, 1 }
0x11a4   :  { %1346 = vrot.lane.b32.xlu0 %v2939_v20, %s3205_s4  ;;  %1737 = vmatpush.msra.mxu3 %v3924_v32 }
0x11a6   :  { %1882 = vmatpush.msrb.mxu3 %v3893_v21 }
0x11a8   :  { %1883 = vmatpush.msrb.mxu3 %v3895_v0 }
0x11aa   :  { %v3820_v4 = vpop.permute.xlu1 %957  ;;  %1884 = vmatpush.msrb.mxu3 %v3900_v26 }
0x11ab   :  { %801 = vrot.lane.b32.xlu2 %v799_v19, %s3205_s4 }
0x11ac   :  { %724 = vrot.lane.b32.xlu0 %v722_v34, %s3207_s18  ;;  %1885 = vmatpush.msrb.mxu3 %v3924_v32 }
0x11b2   :  { %v644_v55 = vpop.permute.xlu1 %643 }
0x11b3   :  { %647 = vst.msk [vmem:[#allocation2 + $0x8] sm:$0xc] %vm646_vm8, %v644_v55  ;;  %1196 = vrot.lane.b32.xlu2 %v1194_v31, %s3207_s18 }
0x11b4   :  { %1276 = vrot.lane.b32.xlu0 %v1274_v28, %s3205_s4 }
0x11bc   :  { %481 = vrot.lane.b32.xlu0 %v479_v23, %s3205_s4 }
0x11c4   :  { %878 = vrot.lane.b32.xlu0 %v876_v2, %s3207_s18 }
0x11e5   :  { %v1423_v7 = vpop.permute.xlu2 %1422 }
0x11e6   :  { %v1425_v11 = vmul.f32 %v1423_v7, %v3775_v3 }
0x11e8   :  { %v1428_v62 = vsel %vm246_vm12, %v1425_v11, 0.0  ;;  %v1427_v40 = vsel %vm246_vm12, %v1425_v11, %v1360_v24  ;;  %v3869_v24 = vld [vmem:[#allocation10 + $0x18] sm:$0xff] }
0x11e9   :  { %1430 = vrot.lane.b32.xlu1 %v1428_v62, %s3205_s4  ;;  %v2663_v13 = vrot.slane %v1427_v40, 2  ;;  %1532 = vmatpush.msrb.mxu2 %v3869_v24 }
0x11ea   :  { %1956 = vmatpush.msrb.mxu0 %v3869_v24 }
0x11eb   :  { %1533 = vmatpush.msrb.mxu2 %v3874_v47 }
0x11ec   :  { %1957 = vmatpush.msrb.mxu0 %v3874_v47 }
0x11ed   :  { %v563_v56 = vpop.permute.xlu2 %562 }
0x11ee   :  { %566 = vst.msk [vmem:[#allocation2] sm:$0x30] %vm565_vm9, %v563_v56 }
0x11f1   :  { %1036 = vrot.lane.b32.xlu1 %v1034_v46, %s3207_s18 }
0x11f5   :  { %v1117_v35 = vpop.permute.xlu2 %1116 }
0x11f6   :  { %1119 = vst.msk [vmem:[#allocation2] sm:$0x30] %vm484_vm10, %v1117_v35 }
0x11fd   :  { %v325_v22 = vpop.permute.xlu2 %324 }
0x11fe   :  { %328 = vst.msk [vmem:[#allocation2 + $0x8] sm:$0xc0] %vm327_vm14, %v325_v22 }
0x1205   :  { %v802_v38 = vpop.permute.xlu2 %801 }
0x1206   :  { %805 = vst.msk [vmem:[#allocation2 + $0x8] sm:$0x3] %vm804_vm15, %v802_v38 }
0x120d   :  { %v1197_v59 = vpop.permute.xlu2 %1196 }
0x1216   :  { %v1347_v58 = vpop.permute.xlu0 %1346 }
0x1217   :  { %v1349_v42 = vmul.f32 %v1347_v58, %v3779_v63  ;;  %v3885_v63 = vld [vmem:[#allocation10 + $0x8] sm:$0xff] }
0x1218   :  { %1534 = vmatpush.msrb.mxu2 %v3885_v63  ;;  %1958 = vmatpush.msrb.mxu0 %v3885_v63 }
0x1219   :  { %v1352_v3 = vsel %vm320_vm11, %v1349_v42, %v1350_v41  ;;  %v1353_v12 = vsel %vm320_vm11, %v1349_v42, 0.0 }
0x121a   :  { %v3871_v25 = vmax.f32 %v1352_v3, %v2663_v13  ;;  %1355 = vrot.lane.b32.xlu0 %v1353_v12, %s3207_s18  ;;  %1535 = vmatpush.msrb.mxu2 %v3887_v16 }
0x121b   :  { %1536 = vmatmul.f32.vlgmr.msrb.gmra.mxu2 %v3204_v17  ;;  %1959 = vmatpush.msrb.mxu0 %v3887_v16 }
0x121c   :  { %1660 = vmatpush.msra.mxu2 %v3869_v24 }
0x121e   :  { %v725_v36 = vpop.permute.xlu0 %724  ;;  %1661 = vmatpush.msra.mxu2 %v3874_v47 }
0x121f   :  { %728 = vst.msk [vmem:[#allocation2] sm:$0xc0] %vm727_vm1, %v725_v36 }
0x1220   :  { %960 = vst.msk [vmem:[#allocation2] sm:$0xc0] %vm327_vm14, %v3820_v4  ;;  %1662 = vmatpush.msra.mxu2 %v3885_v63  ;;  %v1597_v23 = vpop.f32.mrf.mxu3 }
0x1221   :  { %v1601_v2 = vrot.slane %v1597_v23, 2 }
0x1222   :  { %1663 = vmatpush.msra.mxu2 %v3887_v16 }
0x1224   :  { %1808 = vmatpush.msrb.mxu2 %v3869_v24 }
0x1226   :  { %v1277_v30 = vpop.permute.xlu0 %1276  ;;  %1809 = vmatpush.msrb.mxu2 %v3874_v47 }
0x1227   :  { %1279 = vst.msk [vmem:[#allocation2] sm:$0xc] %vm646_vm8, %v1277_v30 }
0x1228   :  { %1810 = vmatpush.msrb.mxu2 %v3885_v63 }
0x122a   :  { %1811 = vmatpush.msrb.mxu2 %v3887_v16 }
0x122e   :  { %v482_v54 = vpop.permute.xlu0 %481 }
0x122f   :  { %485 = vst.msk [vmem:[#allocation2 + $0x8] sm:$0x30] %vm484_vm10, %v482_v54 }
0x1230   :  { %1199 = vst.msk [vmem:[#allocation2 + $0x8] sm:$0x30] %vm565_vm9, %v1197_v59 }
0x1236   :  { %v879_v60 = vpop.permute.xlu0 %878 }
0x1237   :  { %881 = vst.msk [vmem:[#allocation2 + $0x8] sm:$0x3] %vm253_vm13, %v879_v60  ;;  %vm1458_vm13 = vcmask 523264  }
0x125b   :  { %v1431_v6 = vpop.permute.xlu1 %1430 }
0x125c   :  { %1433 = vst.msk [vmem:[#allocation2] sm:$0x3] %vm804_vm15, %v1431_v6 }
0x1263   :  { %v1037_v48 = vpop.permute.xlu1 %1036  ;;  %v1434_v49 = vld [vmem:[#allocation2] sm:$0xff] }
0x1264   :  { %1039 = vst.msk [vmem:[#allocation2 + $0x8] sm:$0xc] %vm404_vm7, %v1037_v48  ;;  %2760 = vmatmul.msk.f32.vlgmr.msra.gmra.mxu0 %vm1458_vm13, %v1434_v49  ;;  %2762 = vmatmul.msk.f32.vlgmr.msra.gmra.mxu1 %vm1458_vm13, %v1434_v49 }
0x1265   :  { %2242 = vmatpush.msra.mxu0 %v3869_v24  ;;  %2316 = vmatpush.msra.mxu1 %v3893_v21 }
0x1267   :  { %2243 = vmatpush.msra.mxu0 %v3874_v47  ;;  %2317 = vmatpush.msra.mxu1 %v3895_v0 }
0x1269   :  { %2244 = vmatpush.msra.mxu0 %v3885_v63  ;;  %2318 = vmatpush.msra.mxu1 %v3900_v26 }
0x126b   :  { %2245 = vmatpush.msra.mxu0 %v3887_v16  ;;  %2319 = vmatpush.msra.mxu1 %v3924_v32 }
0x128c   :  { %v1356_v17 = vpop.permute.xlu0 %1355 }
0x128d   :  { %1358 = vst.msk [vmem:[#allocation2 + $0x8] sm:$0xc0] %vm727_vm1, %v1356_v17 }
0x1294   :  { %v1435_v15 = vld [vmem:[#allocation2 + $0x8] sm:$0xff] }
0x1295   :  { %2761 = vmatmul.msk.f32.gmra.mxu0 %vm1458_vm13, %v1435_v15  ;;  %2763 = vmatmul.msk.f32.gmra.mxu1 %vm1458_vm13, %v1435_v15 }
0x129e   :  { %v1537_v20 = vpop.f32.mrf.mxu2 }
0x12e1   :  { %v1482_v4 = vpop.f32.mrf.mxu0  ;;  %v1505_v19 = vpop.f32.mrf.mxu1 }
0x12e2   :  { %v3953_v34 = vadd.f32 %v1482_v4, %v1454_v18  ;;  %v3955_v55 = vadd.f32 %v1505_v19, %v1455_v14 }
0x12e4   :  { %v1540_v31 = vadd.f32 %v1537_v20, %v3953_v34 }
0x12e6   :  { %2940 = vtanh.f32 %v1540_v31  ;;  %v2764_v46 = vmul.f32 -1.442695, %v1540_v31 }
0x12ec   :  { %v2941_v28 = vpop.eup %2940 }
0x12ed   :  { %1563 = vrot.lane.b32.xlu1 %v2941_v28, %s3205_s4 }
0x1312   :  { %v1508_v7 = vpop.f32.mrf.mxu1 }
0x1313   :  { %v3959_v11 = vadd.f32 %v1508_v7, %v1455_v14 }
0x1315   :  { %v1603_v62 = vadd.f32 %v1601_v2, %v3959_v11 }
0x1317   :  { %2942 = vtanh.f32 %v1603_v62  ;;  %v2765_v40 = vmul.f32 -1.442695, %v1603_v62 }
0x1318   :  { %2944 = vpow2.f32 %v2764_v46 }
0x131d   :  { %v2943_v56 = vpop.eup %2942 }
0x131e   :  { %1626 = vrot.lane.b32.xlu2 %v2943_v56, %s3205_s4  ;;  %v2945_v35 = vpop.eup %2944 }
0x131f   :  { %v1544_v22 = vadd.f32 1.0, %v2945_v35 }
0x1321   :  { %2946 = vrcp.f32 %v1544_v22  ;;  %v1556_v13 = vand.u32 2147483648, %v1544_v22  ;;  %vm1550_vm3 = vweird.f32 %v1544_v22  ;;  %v1554_v39 = vand.u32 2147483647, %v1544_v22 }
0x1322   :  { %2948 = vpow2.f32 %v2765_v40 }
0x1323   :  { %v1557_v12 = vor.u32 1.1754944e-38, %v1556_v13  ;;  %vm1555_vm5 = vcmp.eq.f32.partialorder %v1554_v39, 8.507059e+37 }
0x1327   :  { %v2947_v38 = vpop.eup %2946 }
0x1328   :  { %v1546_v58 = vmul.f32 %v2947_v38, %v1544_v22  ;;  %v2949_v43 = vpop.eup %2948  ;;  %vm1551_vm2 = vweird.f32 %v2947_v38 }
0x1329   :  { %v1607_v27 = vadd.f32 1.0, %v2949_v43  ;;  %vm1552_vm4 = vmor %vm1550_vm3, %vm1551_vm2 }
0x132a   :  { %v1547_v41 = vsub.f32 1.0, %v1546_v58 }
0x132b   :  { %2950 = vrcp.f32 %v1607_v27  ;;  %v1619_v60 = vand.u32 2147483648, %v1607_v27  ;;  %vm1613_vm7 = vweird.f32 %v1607_v27  ;;  %v1617_v8 = vand.u32 2147483647, %v1607_v27 }
0x132c   :  { %v1548_v42 = vmul.f32 %v2947_v38, %v1547_v41 }
0x132d   :  { %v1620_v5 = vor.u32 1.1754944e-38, %v1619_v60  ;;  %vm1618_vm9 = vcmp.eq.f32.partialorder %v1617_v8, 8.507059e+37 }
0x132e   :  { %v1549_v44 = vadd.f32 %v2947_v38, %v1548_v42 }
0x1330   :  { %v1553_v3 = vsel %vm1552_vm4, %v2947_v38, %v1549_v44 }
0x1331   :  { %v1558_v45 = vsel %vm1555_vm5, %v1557_v12, %v1553_v3  ;;  %v2951_v53 = vpop.eup %2950 }
0x1332   :  { %v1609_v36 = vmul.f32 %v2951_v53, %v1607_v27  ;;  %vm1614_vm6 = vweird.f32 %v2951_v53  ;;  %v1561_v57 = vmul.f32 0.0, %v1558_v45 }
0x1333   :  { %vm1615_vm8 = vmor %vm1613_vm7, %vm1614_vm6 }
0x1334   :  { %v1610_v30 = vsub.f32 1.0, %v1609_v36 }
0x1336   :  { %v1611_v54 = vmul.f32 %v2951_v53, %v1610_v30 }
0x1338   :  { %v1612_v59 = vadd.f32 %v2951_v53, %v1611_v54 }
0x133a   :  { %v1616_v37 = vsel %vm1615_vm8, %v2951_v53, %v1612_v59 }
0x133b   :  { %v1621_v51 = vsel %vm1618_vm9, %v1620_v5, %v1616_v37 }
0x133c   :  { %v1624_v49 = vmul.f32 0.0, %v1621_v51 }
0x135f   :  { %v1564_v9 = vpop.permute.xlu1 %1563 }
0x1360   :  { %v1566_v52 = vmul.f32 %v1564_v9, %v1558_v45 }
0x1362   :  { %1568 = vrot.lane.b32.xlu0 %v1566_v52, %s3207_s18 }
0x1378   :  { %v1627_v10 = vpop.permute.xlu2 %1626 }
0x1379   :  { %v1629_v50 = vmul.f32 %v1627_v10, %v1621_v51 }
0x137b   :  { %1631 = vrot.lane.b32.xlu1 %v1629_v50, %s3207_s18 }
0x13d4   :  { %v1569_v61 = vpop.permute.xlu0 %1568 }
0x13d5   :  { %v3965_v6 = vadd.f32 %v1569_v61, %v1561_v57 }
0x13d7   :  { %2952 = vtanh.f32 %v3965_v6 }
0x13dd   :  { %v2953_v48 = vpop.eup %2952 }
0x13de   :  { %1574 = vrot.lane.b32.xlu2 %v2953_v48, %s3205_s4 }
0x13ed   :  { %v1632_v17 = vpop.permute.xlu1 %1631 }
0x13ee   :  { %v3969_v15 = vadd.f32 %v1632_v17, %v1624_v49 }
0x13f0   :  { %2954 = vtanh.f32 %v3969_v15 }
0x13f6   :  { %v2955_v14 = vpop.eup %2954 }
0x13f7   :  { %1637 = vrot.lane.b32.xlu0 %v2955_v14, %s3205_s4 }
0x1438   :  { %v1575_v20 = vpop.permute.xlu2 %1574 }
0x1439   :  { %v1577_v4 = vmul.f32 %v1575_v20, %v1558_v45 }
0x143b   :  { %v3975_v19 = vsel %vm246_vm12, %v1577_v4, 0.0  ;;  %v4004_v4 = vsel %vm246_vm12, %v3965_v6, 0.0 }
0x143c   :  { %1644 = vrot.lane.b32.xlu1 %v3975_v19, %s3207_s18 }
0x1469   :  { %v1638_v31 = vpop.permute.xlu0 %1637 }
0x146a   :  { %v1640_v28 = vmul.f32 %v1638_v31, %v1621_v51  ;;  %v1693_v31 = vrot.slane %v4004_v4, 6 }
0x146c   :  { %v3981_v23 = vsel %vm320_vm11, %v1640_v28, 0.0 }
0x146d   :  { %v1717_v2 = vrot.slane %v3981_v23, 6 }
0x146f   :  { %1718 = vrot.lane.b32.xlu2 %v1717_v2, %s3207_s18 }
0x14ae   :  { %v1645_v7 = vpop.permute.xlu1 %1644 }
0x14af   :  { %2766 = vmatmul.msk.f32.vlgmr.msra.gmra.mxu2 %vm119_vm0, %v1645_v7 }
0x14b0   :  { %2100 = vmatpush.msra.mxu2 %v3869_v24 }
0x14b2   :  { %2101 = vmatpush.msra.mxu2 %v3874_v47 }
0x14b4   :  { %2102 = vmatpush.msra.mxu2 %v3885_v63 }
0x14b6   :  { %2103 = vmatpush.msra.mxu2 %v3887_v16 }
0x14c9   :  { %v1719_v62 = vpop.permute.xlu2 %1718 }
0x14ca   :  { %2768 = vmatmul.msk.f32.vlgmr.msra.gmra.mxu3 %vm119_vm0, %v1719_v62 }
0x14cb   :  { %2169 = vmatpush.msra.mxu3 %v3893_v21 }
0x14cd   :  { %2170 = vmatpush.msra.mxu3 %v3895_v0 }
0x14cf   :  { %2171 = vmatpush.msra.mxu3 %v3900_v26 }
0x14d1   :  { %2172 = vmatpush.msra.mxu3 %v3924_v32 }
0x1532   :  { %v1665_v56 = vpop.f32.mrf.mxu2 }
0x1533   :  { %v1669_v46 = vrot.slane %v1665_v56, 6  ;;  %v4016_v56 = vsel %vm320_vm11, %v3969_v15, 0.0 }
0x1534   :  { %v1767_v6 = vrot.slane %v4016_v56, 2 }
0x1535   :  { %v1671_v35 = vadd.f32 %v1669_v46, %v3953_v34 }
0x1537   :  { %2956 = vtanh.f32 %v1671_v35  ;;  %v2767_v42 = vmul.f32 -1.442695, %v1671_v35 }
0x153d   :  { %v2957_v22 = vpop.eup %2956 }
0x153e   :  { %1697 = vrot.lane.b32.xlu0 %v2957_v22, %s3205_s4 }
0x154d   :  { %v1739_v38 = vpop.f32.mrf.mxu3 }
0x154e   :  { %v1743_v40 = vrot.slane %v1739_v38, 4 }
0x1550   :  { %v1745_v58 = vadd.f32 %v1743_v40, %v3959_v11 }
0x1552   :  { %2958 = vtanh.f32 %v1745_v58  ;;  %v2769_v39 = vmul.f32 -1.442695, %v1745_v58  ;;  %v1712_v58 = vrot.slane %v3975_v19, 6 }
0x1553   :  { %2960 = vpow2.f32 %v2767_v42 }
0x1558   :  { %v2959_v41 = vpop.eup %2958 }
0x1559   :  { %1771 = vrot.lane.b32.xlu1 %v2959_v41, %s3205_s4  ;;  %v2961_v43 = vpop.eup %2960 }
0x155a   :  { %v1675_v27 = vadd.f32 1.0, %v2961_v43 }
0x155c   :  { %2962 = vrcp.f32 %v1675_v27  ;;  %v1687_v52 = vand.u32 2147483648, %v1675_v27  ;;  %vm1681_vm14 = vweird.f32 %v1675_v27  ;;  %v1685_v36 = vand.u32 2147483647, %v1675_v27 }
0x155d   :  { %2964 = vpow2.f32 %v2769_v39 }
0x155e   :  { %v1688_v54 = vor.u32 1.1754944e-38, %v1687_v52  ;;  %vm1686_vm1 = vcmp.eq.f32.partialorder %v1685_v36, 8.507059e+37 }
0x1562   :  { %v2963_v44 = vpop.eup %2962 }
0x1563   :  { %v1677_v13 = vmul.f32 %v2963_v44, %v1675_v27  ;;  %v2965_v45 = vpop.eup %2964  ;;  %vm1682_vm10 = vweird.f32 %v2963_v44  ;;  %v1786_v27 = vrot.slane %v3981_v23, 2 }
0x1564   :  { %v1749_v53 = vadd.f32 1.0, %v2965_v45  ;;  %vm1683_vm15 = vmor %vm1681_vm14, %vm1682_vm10 }
0x1565   :  { %v1678_v3 = vsub.f32 1.0, %v1677_v13 }
0x1566   :  { %2966 = vrcp.f32 %v1749_v53  ;;  %v1761_v57 = vand.u32 2147483648, %v1749_v53  ;;  %vm1755_vm2 = vweird.f32 %v1749_v53  ;;  %v1759_v61 = vand.u32 2147483647, %v1749_v53 }
0x1567   :  { %v1679_v12 = vmul.f32 %v2963_v44, %v1678_v3 }
0x1568   :  { %v1762_v49 = vor.u32 1.1754944e-38, %v1761_v57  ;;  %vm1760_vm4 = vcmp.eq.f32.partialorder %v1759_v61, 8.507059e+37 }
0x1569   :  { %v1680_v9 = vadd.f32 %v2963_v44, %v1679_v12 }
0x156b   :  { %v1684_v30 = vsel %vm1683_vm15, %v2963_v44, %v1680_v9 }
0x156c   :  { %v1689_v60 = vsel %vm1686_vm1, %v1688_v54, %v1684_v30  ;;  %v2967_v37 = vpop.eup %2966 }
0x156d   :  { %v1751_v5 = vmul.f32 %v2967_v37, %v1749_v53  ;;  %vm1756_vm13 = vweird.f32 %v2967_v37  ;;  %v1695_v28 = vmul.f32 %v1693_v31, %v1689_v60 }
0x156e   :  { %vm1757_vm3 = vmor %vm1755_vm2, %vm1756_vm13 }
0x156f   :  { %v1752_v10 = vsub.f32 1.0, %v1751_v5 }
0x1571   :  { %v1753_v51 = vmul.f32 %v2967_v37, %v1752_v10 }
0x1573   :  { %v1754_v50 = vadd.f32 %v2967_v37, %v1753_v51 }
0x1575   :  { %v1758_v48 = vsel %vm1757_vm3, %v2967_v37, %v1754_v50 }
0x1576   :  { %v1763_v17 = vsel %vm1760_vm4, %v1762_v49, %v1758_v48 }
0x1577   :  { %v1769_v46 = vmul.f32 %v1767_v6, %v1763_v17 }
0x15b0   :  { %v1698_v59 = vpop.permute.xlu0 %1697 }
0x15b1   :  { %v1700_v8 = vmul.f32 %v1698_v59, %v1689_v60 }
0x15b3   :  { %1702 = vrot.lane.b32.xlu2 %v1700_v8, %s3207_s18 }
0x15cb   :  { %v1772_v14 = vpop.permute.xlu1 %1771 }
0x15cc   :  { %v1774_v20 = vmul.f32 %v1772_v14, %v1763_v17 }
0x15ce   :  { %1776 = vrot.lane.b32.xlu0 %v1774_v20, %s3207_s18 }
0x160d   :  { %v1703_v2 = vpop.permute.xlu2 %1702 }
0x160e   :  { %v4009_v7 = vadd.f32 %v1703_v2, %v1695_v28 }
0x1610   :  { %2968 = vtanh.f32 %v4009_v7 }
0x1616   :  { %v2969_v62 = vpop.eup %2968 }
0x1617   :  { %1708 = vrot.lane.b32.xlu1 %v2969_v62, %s3205_s4 }
0x1640   :  { %v1777_v35 = vpop.permute.xlu0 %1776 }
0x1641   :  { %v4021_v22 = vadd.f32 %v1777_v35, %v1769_v46 }
0x1643   :  { %2970 = vtanh.f32 %v4021_v22  ;;  %v4074_v4 = vsel %vm320_vm11, %v4021_v22, %v1767_v6 }
0x1649   :  { %v2971_v38 = vpop.eup %2970 }
0x164a   :  { %1782 = vrot.lane.b32.xlu2 %v2971_v38, %s3205_s4 }
0x1689   :  { %v1709_v40 = vpop.permute.xlu1 %1708 }
0x168a   :  { %v1711_v41 = vmul.f32 %v1709_v40, %v1689_v60 }
0x168c   :  { %v4028_v15 = vsel %vm246_vm12, %v1711_v41, %v1712_v58 }
0x168d   :  { %v1791_v42 = vrot.slane %v4028_v15, 2  ;;  %v1860_v56 = vrot.slane %v4028_v15, 6 }
0x168f   :  { %1792 = vrot.lane.b32.xlu0 %v1791_v42, %s3207_s18 }
0x16a4   :  { %v1783_v43 = vpop.permute.xlu2 %1782 }
0x16a5   :  { %v1785_v44 = vmul.f32 %v1783_v43, %v1763_v17 }
0x16a7   :  { %v4035_v13 = vsel %vm320_vm11, %v1785_v44, %v1786_v27 }
0x16a8   :  { %v1865_v39 = vrot.slane %v4035_v13, 4 }
0x16aa   :  { %1866 = vrot.lane.b32.xlu1 %v1865_v39, %s3207_s18 }
0x1701   :  { %v1793_v19 = vpop.permute.xlu0 %1792 }
0x1702   :  { %2770 = vmatmul.msk.f32.vlgmr.msrb.gmra.mxu2 %vm119_vm0, %v1793_v19  ;;  %v4060_v19 = vsel %vm246_vm12, %v4009_v7, %v1693_v31  ;;  %v1915_v31 = vrot.slane %v4074_v4, 2 }
0x1703   :  { %2390 = vmatpush.msrb.mxu2 %v3869_v24 }
0x1705   :  { %2391 = vmatpush.msrb.mxu2 %v3874_v47 }
0x1707   :  { %2392 = vmatpush.msrb.mxu2 %v3885_v63 }
0x1709   :  { %2393 = vmatpush.msrb.mxu2 %v3887_v16 }
0x171c   :  { %v1867_v23 = vpop.permute.xlu1 %1866 }
0x171d   :  { %2772 = vmatmul.msk.f32.vlgmr.msrb.gmra.mxu3 %vm119_vm0, %v1867_v23  ;;  %v1841_v23 = vrot.slane %v4060_v19, 6 }
0x171e   :  { %2464 = vmatpush.msrb.mxu3 %v3893_v21 }
0x1720   :  { %2465 = vmatpush.msrb.mxu3 %v3895_v0 }
0x1722   :  { %2466 = vmatpush.msrb.mxu3 %v3900_v26 }
0x1724   :  { %2467 = vmatpush.msrb.mxu3 %v3924_v32 }
0x1785   :  { %v1813_v3 = vpop.f32.mrf.mxu2 }
0x1786   :  { %v1817_v12 = vrot.slane %v1813_v3, 4 }
0x1788   :  { %v1819_v45 = vadd.f32 %v1817_v12, %v3953_v34 }
0x178a   :  { %2972 = vtanh.f32 %v1819_v45  ;;  %v2771_v54 = vmul.f32 -1.442695, %v1819_v45 }
0x1790   :  { %v2973_v9 = vpop.eup %2972 }
0x1791   :  { %1845 = vrot.lane.b32.xlu2 %v2973_v9, %s3205_s4 }
0x17a0   :  { %v1887_v52 = vpop.f32.mrf.mxu3 }
0x17a1   :  { %v1891_v53 = vrot.slane %v1887_v52, 6 }
0x17a3   :  { %v1893_v36 = vadd.f32 %v1891_v53, %v3959_v11 }
0x17a5   :  { %2974 = vtanh.f32 %v1893_v36  ;;  %v2773_v20 = vmul.f32 -1.442695, %v1893_v36 }
0x17a6   :  { %2976 = vpow2.f32 %v2771_v54 }
0x17ab   :  { %v2975_v30 = vpop.eup %2974 }
0x17ac   :  { %1919 = vrot.lane.b32.xlu0 %v2975_v30, %s3205_s4  ;;  %v2977_v59 = vpop.eup %2976 }
0x17ad   :  { %v1823_v60 = vadd.f32 1.0, %v2977_v59 }
0x17af   :  { %2978 = vrcp.f32 %v1823_v60  ;;  %v1835_v50 = vand.u32 2147483648, %v1823_v60  ;;  %vm1829_vm6 = vweird.f32 %v1823_v60  ;;  %v1833_v57 = vand.u32 2147483647, %v1823_v60 }
0x17b0   :  { %2980 = vpow2.f32 %v2773_v20 }
0x17b1   :  { %v1836_v48 = vor.u32 1.1754944e-38, %v1835_v50  ;;  %vm1834_vm8 = vcmp.eq.f32.partialorder %v1833_v57, 8.507059e+37 }
0x17b5   :  { %v2979_v8 = vpop.eup %2978 }
0x17b6   :  { %v1825_v37 = vmul.f32 %v2979_v8, %v1823_v60  ;;  %vm1830_vm5 = vweird.f32 %v2979_v8  ;;  %v2981_v28 = vpop.eup %2980  ;;  %v1934_v60 = vrot.slane %v4035_v13, 2 }
0x17b7   :  { %vm1831_vm7 = vmor %vm1829_vm6, %vm1830_vm5  ;;  %v1897_v2 = vadd.f32 1.0, %v2981_v28 }
0x17b8   :  { %v1826_v5 = vsub.f32 1.0, %v1825_v37 }
0x17b9   :  { %2982 = vrcp.f32 %v1897_v2  ;;  %v1909_v58 = vand.u32 2147483648, %v1897_v2  ;;  %vm1903_vm10 = vweird.f32 %v1897_v2  ;;  %v1907_v41 = vand.u32 2147483647, %v1897_v2 }
0x17ba   :  { %v1827_v10 = vmul.f32 %v2979_v8, %v1826_v5 }
0x17bb   :  { %v1910_v43 = vor.u32 1.1754944e-38, %v1909_v58  ;;  %vm1908_vm15 = vcmp.eq.f32.partialorder %v1907_v41, 8.507059e+37 }
0x17bc   :  { %v1828_v51 = vadd.f32 %v2979_v8, %v1827_v10  ;;  %v4109_v10 = vpop.f32.mrf.mxu0 }
0x17be   :  { %v1832_v61 = vsel %vm1831_vm7, %v2979_v8, %v1828_v51 }
0x17bf   :  { %v1837_v17 = vsel %vm1834_vm8, %v1836_v48, %v1832_v61  ;;  %v2983_v62 = vpop.eup %2982 }
0x17c0   :  { %v1899_v46 = vmul.f32 %v2983_v62, %v1897_v2  ;;  %vm1904_vm9 = vweird.f32 %v2983_v62  ;;  %v1843_v3 = vmul.f32 %v1841_v23, %v1837_v17 }
0x17c1   :  { %vm1905_vm14 = vmor %vm1903_vm10, %vm1904_vm9 }
0x17c2   :  { %v1900_v35 = vsub.f32 1.0, %v1899_v46 }
0x17c4   :  { %v1901_v38 = vmul.f32 %v2983_v62, %v1900_v35 }
0x17c6   :  { %v1902_v40 = vadd.f32 %v2983_v62, %v1901_v38 }
0x17c8   :  { %v1906_v42 = vsel %vm1905_vm14, %v2983_v62, %v1902_v40 }
0x17c9   :  { %v1911_v44 = vsel %vm1908_vm15, %v1910_v43, %v1906_v42 }
0x17ca   :  { %v1917_v7 = vmul.f32 %v1915_v31, %v1911_v44 }
0x17eb   :  { %v1846_v49 = vpop.permute.xlu2 %1845 }
0x17ec   :  { %v1848_v14 = vmul.f32 %v1846_v49, %v1837_v17 }
0x17ee   :  { %1850 = vrot.lane.b32.xlu1 %v1848_v14, %s3207_s18 }
0x181e   :  { %v1920_v27 = vpop.permute.xlu0 %1919 }
0x181f   :  { %v1922_v39 = vmul.f32 %v1920_v27, %v1911_v44 }
0x1821   :  { %1924 = vrot.lane.b32.xlu2 %v1922_v39, %s3207_s18 }
0x1860   :  { %v1851_v12 = vpop.permute.xlu1 %1850 }
0x1861   :  { %v4065_v45 = vadd.f32 %v1851_v12, %v1843_v3 }
0x1863   :  { %2984 = vtanh.f32 %v4065_v45 }
0x1869   :  { %v2985_v9 = vpop.eup %2984 }
0x186a   :  { %1856 = vrot.lane.b32.xlu0 %v2985_v9, %s3205_s4 }
0x187b   :  { %v1925_v52 = vpop.permute.xlu2 %1924 }
0x187c   :  { %v4079_v53 = vadd.f32 %v1925_v52, %v1917_v7  ;;  %v4122_v52 = vsel %vm246_vm12, %v4065_v45, %v1841_v23 }
0x187e   :  { %2986 = vtanh.f32 %v4079_v53  ;;  %v4136_v19 = vsel %vm320_vm11, %v4079_v53, %v1915_v31 }
0x187f   :  { %v2060_v23 = vrot.slane %v4136_v19, 2 }
0x1884   :  { %v2987_v36 = vpop.eup %2986 }
0x1885   :  { %1930 = vrot.lane.b32.xlu1 %v2987_v36, %s3205_s4  ;;  %v1989_v36 = vrot.slane %v4122_v52, 6 }
0x18dc   :  { %v1857_v30 = vpop.permute.xlu0 %1856 }
0x18dd   :  { %v1859_v54 = vmul.f32 %v1857_v30, %v1837_v17 }
0x18df   :  { %v4086_v6 = vsel %vm246_vm12, %v1859_v54, %v1860_v56 }
0x18e0   :  { %v1939_v22 = vrot.slane %v4086_v6, 4  ;;  %v2008_v4 = vrot.slane %v4086_v6, 6 }
0x18e2   :  { %1940 = vrot.lane.b32.xlu2 %v1939_v22, %s3207_s18 }
0x18f7   :  { %v1931_v59 = vpop.permute.xlu1 %1930 }
0x18f8   :  { %v1933_v8 = vmul.f32 %v1931_v59, %v1911_v44 }
0x18fa   :  { %v4093_v37 = vsel %vm320_vm11, %v1933_v8, %v1934_v60 }
0x18fb   :  { %v2013_v5 = vrot.slane %v4093_v37, 2 }
0x18fd   :  { %2014 = vrot.lane.b32.xlu0 %v2013_v5, %s3207_s18 }
0x193c   :  { %v1941_v15 = vpop.permute.xlu2 %1940 }
0x193d   :  { %2774 = vmatmul.msk.f32.vlgmr.msrb.gmra.mxu0 %vm119_vm0, %v1941_v15 }
0x193e   :  { %2538 = vmatpush.msrb.mxu0 %v3869_v24 }
0x1940   :  { %2539 = vmatpush.msrb.mxu0 %v3874_v47 }
0x1942   :  { %2540 = vmatpush.msrb.mxu0 %v3885_v63 }
0x1944   :  { %2541 = vmatpush.msrb.mxu0 %v3887_v16 }
0x196f   :  { %v2015_v13 = vpop.permute.xlu0 %2014 }
0x1970   :  { %2776 = vmatmul.msk.f32.vlgmr.msrb.gmra.mxu1 %vm119_vm0, %v2015_v13 }
0x1971   :  { %2611 = vmatpush.msrb.mxu1 %v3893_v21 }
0x1973   :  { %2612 = vmatpush.msrb.mxu1 %v3895_v0 }
0x1975   :  { %2613 = vmatpush.msrb.mxu1 %v3900_v26 }
0x1977   :  { %2614 = vmatpush.msrb.mxu1 %v3924_v32 }
0x19ba   :  { %v1961_v24 = vpop.f32.mrf.mxu0 }
0x19bb   :  { %v1965_v51 = vrot.slane %v1961_v24, 2 }
0x19bd   :  { %v1967_v47 = vadd.f32 %v1965_v51, %v3953_v34 }
0x19bf   :  { %2988 = vtanh.f32 %v1967_v47  ;;  %v2775_v0 = vmul.f32 -1.442695, %v1967_v47 }
0x19c5   :  { %v2989_v63 = vpop.eup %2988 }
0x19c6   :  { %1993 = vrot.lane.b32.xlu1 %v2989_v63, %s3205_s4 }
0x19ed   :  { %v2035_v16 = vpop.f32.mrf.mxu1 }
0x19ee   :  { %v2038_v50 = vadd.f32 %v2035_v16, %v3959_v11  ;;  %v4167_v16 = vadd.f32 %v4109_v10, %v1454_v18 }
0x19f0   :  { %2990 = vtanh.f32 %v2038_v50  ;;  %v2777_v61 = vmul.f32 -1.442695, %v2038_v50 }
0x19f1   :  { %2992 = vpow2.f32 %v2775_v0 }
0x19f6   :  { %v2991_v21 = vpop.eup %2990 }
0x19f7   :  { %2064 = vrot.lane.b32.xlu2 %v2991_v21, %s3205_s4  ;;  %v2993_v26 = vpop.eup %2992 }
0x19f8   :  { %v1971_v32 = vadd.f32 1.0, %v2993_v26 }
0x19fa   :  { %2994 = vrcp.f32 %v1971_v32  ;;  %v1983_v11 = vand.u32 2147483648, %v1971_v32  ;;  %vm1977_vm13 = vweird.f32 %v1971_v32  ;;  %v1981_v28 = vand.u32 2147483647, %v1971_v32 }
0x19fb   :  { %2996 = vpow2.f32 %v2777_v61 }
0x19fc   :  { %v1984_v62 = vor.u32 1.1754944e-38, %v1983_v11  ;;  %vm1982_vm3 = vcmp.eq.f32.partialorder %v1981_v28, 8.507059e+37 }
0x1a00   :  { %v2995_v57 = vpop.eup %2994 }
0x1a01   :  { %v1973_v48 = vmul.f32 %v2995_v57, %v1971_v32  ;;  %v2997_v17 = vpop.eup %2996  ;;  %vm1978_vm1 = vweird.f32 %v2995_v57 }
0x1a02   :  { %v2042_v14 = vadd.f32 1.0, %v2997_v17  ;;  %vm1979_vm2 = vmor %vm1977_vm13, %vm1978_vm1 }
0x1a03   :  { %v1974_v34 = vsub.f32 1.0, %v1973_v48 }
0x1a04   :  { %2998 = vrcp.f32 %v2042_v14  ;;  %v2054_v27 = vand.u32 2147483648, %v2042_v14  ;;  %vm2048_vm5 = vweird.f32 %v2042_v14  ;;  %v2052_v44 = vand.u32 2147483647, %v2042_v14 }
0x1a05   :  { %v1975_v49 = vmul.f32 %v2995_v57, %v1974_v34 }
0x1a06   :  { %v2055_v3 = vor.u32 1.1754944e-38, %v2054_v27  ;;  %vm2053_vm7 = vcmp.eq.f32.partialorder %v2052_v44, 8.507059e+37 }
0x1a07   :  { %v1976_v20 = vadd.f32 %v2995_v57, %v1975_v49 }
0x1a09   :  { %v1980_v2 = vsel %vm1979_vm2, %v2995_v57, %v1976_v20 }
0x1a0a   :  { %v1985_v46 = vsel %vm1982_vm3, %v1984_v62, %v1980_v2  ;;  %v2999_v40 = vpop.eup %2998 }
0x1a0b   :  { %v2044_v58 = vmul.f32 %v2999_v40, %v2042_v14  ;;  %vm2049_vm4 = vweird.f32 %v2999_v40  ;;  %v1991_v30 = vmul.f32 %v1989_v36, %v1985_v46 }
0x1a0c   :  { %vm2050_vm6 = vmor %vm2048_vm5, %vm2049_vm4 }
0x1a0d   :  { %v2045_v41 = vsub.f32 1.0, %v2044_v58 }
0x1a0f   :  { %v2046_v42 = vmul.f32 %v2999_v40, %v2045_v41 }
0x1a11   :  { %v2047_v43 = vadd.f32 %v2999_v40, %v2046_v42 }
0x1a13   :  { %v2051_v39 = vsel %vm2050_vm6, %v2999_v40, %v2047_v43 }
0x1a14   :  { %v2056_v9 = vsel %vm2053_vm7, %v2055_v3, %v2051_v39 }
0x1a15   :  { %v2062_v45 = vmul.f32 %v2060_v23, %v2056_v9 }
0x1a38   :  { %v1994_v35 = vpop.permute.xlu1 %1993 }
0x1a39   :  { %v1996_v38 = vmul.f32 %v1994_v35, %v1985_v46 }
0x1a3b   :  { %1998 = vrot.lane.b32.xlu0 %v1996_v38, %s3207_s18 }
0x1a51   :  { %v2065_v12 = vpop.permute.xlu2 %2064 }
0x1a52   :  { %v2067_v7 = vmul.f32 %v2065_v12, %v2056_v9 }
0x1a54   :  { %2069 = vrot.lane.b32.xlu1 %v2067_v7, %s3207_s18 }
0x1aad   :  { %v1999_v56 = vpop.permute.xlu0 %1998 }
0x1aae   :  { %v4127_v54 = vadd.f32 %v1999_v56, %v1991_v30 }
0x1ab0   :  { %3000 = vtanh.f32 %v4127_v54  ;;  %v4180_v30 = vsel %vm246_vm12, %v4127_v54, %v1989_v36 }
0x1ab1   :  { %v2130_v56 = vrot.slane %v4180_v30, 6 }
0x1ab6   :  { %v3001_v22 = vpop.eup %3000 }
0x1ab7   :  { %2004 = vrot.lane.b32.xlu2 %v3001_v22, %s3205_s4 }
0x1ac6   :  { %v2070_v59 = vpop.permute.xlu1 %2069 }
0x1ac7   :  { %v4141_v60 = vadd.f32 %v2070_v59, %v2062_v45 }
0x1ac9   :  { %3002 = vtanh.f32 %v4141_v60  ;;  %v4194_v52 = vsel %vm320_vm11, %v4141_v60, %v2060_v23 }
0x1aca   :  { %v2202_v36 = vrot.slane %v4194_v52, 2 }
0x1acf   :  { %v3003_v8 = vpop.eup %3002 }
0x1ad0   :  { %2075 = vrot.lane.b32.xlu0 %v3003_v8, %s3205_s4 }
0x1b11   :  { %v2005_v15 = vpop.permute.xlu2 %2004 }
0x1b12   :  { %v2007_v13 = vmul.f32 %v2005_v15, %v1985_v46 }
0x1b14   :  { %v4148_v31 = vsel %vm246_vm12, %v2007_v13, %v2008_v4 }
0x1b15   :  { %v2083_v53 = vrot.slane %v4148_v31, 6 }
0x1b17   :  { %2084 = vrot.lane.b32.xlu2 %v2083_v53, %s3207_s18 }
0x1b42   :  { %v2076_v24 = vpop.permute.xlu0 %2075 }
0x1b43   :  { %v2078_v51 = vmul.f32 %v2076_v24, %v2056_v9 }
0x1b45   :  { %v4158_v47 = vsel %vm320_vm11, %v2078_v51, %v2013_v5 }
0x1b46   :  { %2153 = vrot.lane.b32.xlu1 %v4158_v47, %s3207_s18  ;;  %v2221_v51 = vrot.slane %v4158_v47, 2 }
0x1b71   :  { %v2085_v6 = vpop.permute.xlu2 %2084 }
0x1b72   :  { %2778 = vmatmul.msk.f32.vlgmr.msra.gmra.mxu2 %vm119_vm0, %v2085_v6 }
0x1bb8   :  { %v2154_v63 = vpop.permute.xlu1 %2153 }
0x1bb9   :  { %2780 = vmatmul.msk.f32.vlgmr.msra.gmra.mxu3 %vm119_vm0, %v2154_v63 }
0x1bf5   :  { %v2105_v50 = vpop.f32.mrf.mxu2 }
0x1bf6   :  { %v2108_v37 = vadd.f32 %v2105_v50, %v4167_v16 }
0x1bf8   :  { %3004 = vtanh.f32 %v2108_v37  ;;  %v2779_v32 = vmul.f32 -1.442695, %v2108_v37 }
0x1bfe   :  { %v3005_v5 = vpop.eup %3004 }
0x1bff   :  { %2134 = vrot.lane.b32.xlu0 %v3005_v5, %s3205_s4 }
0x1c3c   :  { %v2174_v21 = vpop.f32.mrf.mxu3 }
0x1c3d   :  { %v2178_v0 = vrot.slane %v2174_v21, 2 }
0x1c3f   :  { %v2180_v26 = vadd.f32 %v2178_v0, %v3955_v55 }
0x1c41   :  { %3006 = vtanh.f32 %v2180_v26  ;;  %v2781_v46 = vmul.f32 -1.442695, %v2180_v26 }
0x1c42   :  { %3008 = vpow2.f32 %v2779_v32 }
0x1c47   :  { %v3007_v57 = vpop.eup %3006 }
0x1c48   :  { %2206 = vrot.lane.b32.xlu1 %v3007_v57, %s3205_s4  ;;  %v3009_v1 = vpop.eup %3008 }
0x1c49   :  { %v2112_v18 = vadd.f32 1.0, %v3009_v1 }
0x1c4b   :  { %3010 = vrcp.f32 %v2112_v18  ;;  %v2124_v17 = vand.u32 2147483648, %v2112_v18  ;;  %vm2118_vm9 = vweird.f32 %v2112_v18  ;;  %v2122_v14 = vand.u32 2147483647, %v2112_v18 }
0x1c4c   :  { %3012 = vpow2.f32 %v2781_v46 }
0x1c4d   :  { %v2125_v11 = vor.u32 1.1754944e-38, %v2124_v17  ;;  %vm2123_vm14 = vcmp.eq.f32.partialorder %v2122_v14, 8.507059e+37 }
0x1c51   :  { %v3011_v10 = vpop.eup %3010 }
0x1c52   :  { %v2114_v61 = vmul.f32 %v3011_v10, %v2112_v18  ;;  %vm2119_vm8 = vweird.f32 %v3011_v10  ;;  %v3013_v35 = vpop.eup %3012 }
0x1c53   :  { %vm2120_vm10 = vmor %vm2118_vm9, %vm2119_vm8  ;;  %v2184_v38 = vadd.f32 1.0, %v3013_v35 }
0x1c54   :  { %v2115_v48 = vsub.f32 1.0, %v2114_v61 }
0x1c55   :  { %3014 = vrcp.f32 %v2184_v38  ;;  %v2196_v27 = vand.u32 2147483648, %v2184_v38  ;;  %vm2190_vm1 = vweird.f32 %v2184_v38  ;;  %v2194_v44 = vand.u32 2147483647, %v2184_v38 }
0x1c56   :  { %v2116_v34 = vmul.f32 %v3011_v10, %v2115_v48 }
0x1c57   :  { %v2197_v3 = vor.u32 1.1754944e-38, %v2196_v27  ;;  %vm2195_vm2 = vcmp.eq.f32.partialorder %v2194_v44, 8.507059e+37 }
0x1c58   :  { %v2117_v49 = vadd.f32 %v3011_v10, %v2116_v34 }
0x1c5a   :  { %v2121_v20 = vsel %vm2120_vm10, %v3011_v10, %v2117_v49 }
0x1c5b   :  { %v2126_v28 = vsel %vm2123_vm14, %v2125_v11, %v2121_v20  ;;  %v3015_v40 = vpop.eup %3014 }
0x1c5c   :  { %v2186_v58 = vmul.f32 %v3015_v40, %v2184_v38  ;;  %vm2191_vm15 = vweird.f32 %v3015_v40  ;;  %v2132_v22 = vmul.f32 %v2130_v56, %v2126_v28 }
0x1c5d   :  { %vm2192_vm13 = vmor %vm2190_vm1, %vm2191_vm15 }
0x1c5e   :  { %v2187_v41 = vsub.f32 1.0, %v2186_v58 }
0x1c60   :  { %v2188_v42 = vmul.f32 %v3015_v40, %v2187_v41 }
0x1c62   :  { %v2189_v43 = vadd.f32 %v3015_v40, %v2188_v42 }
0x1c64   :  { %v2193_v39 = vsel %vm2192_vm13, %v3015_v40, %v2189_v43 }
0x1c65   :  { %v2198_v9 = vsel %vm2195_vm2, %v2197_v3, %v2193_v39 }
0x1c66   :  { %v2204_v54 = vmul.f32 %v2202_v36, %v2198_v9 }
0x1c71   :  { %v2135_v2 = vpop.permute.xlu0 %2134 }
0x1c72   :  { %v2137_v62 = vmul.f32 %v2135_v2, %v2126_v28 }
0x1c74   :  { %2139 = vrot.lane.b32.xlu2 %v2137_v62, %s3207_s18 }
0x1cba   :  { %v2207_v12 = vpop.permute.xlu1 %2206 }
0x1cbb   :  { %v2209_v7 = vmul.f32 %v2207_v12, %v2198_v9 }
0x1cbd   :  { %2211 = vrot.lane.b32.xlu0 %v2209_v7, %s3207_s18 }
0x1cce   :  { %v2140_v45 = vpop.permute.xlu2 %2139 }
0x1ccf   :  { %v4185_v59 = vadd.f32 %v2140_v45, %v2132_v22 }
0x1cd1   :  { %3016 = vtanh.f32 %v4185_v59  ;;  %v4231_v45 = vsel %vm320_vm11, %v4185_v59, %v2130_v56 }
0x1cd7   :  { %v3017_v8 = vpop.eup %3016 }
0x1cd8   :  { %2145 = vrot.lane.b32.xlu1 %v3017_v8, %s3205_s4  ;;  %v2275_v8 = vrot.slane %v4231_v45, 6 }
0x1d2f   :  { %v2212_v15 = vpop.permute.xlu0 %2211 }
0x1d30   :  { %v4199_v4 = vadd.f32 %v2212_v15, %v2204_v54 }
0x1d32   :  { %3018 = vtanh.f32 %v4199_v4  ;;  %v4245_v30 = vsel %vm246_vm12, %v4199_v4, %v2202_v36 }
0x1d33   :  { %v2349_v56 = vrot.slane %v4245_v30, 2 }
0x1d38   :  { %v3019_v13 = vpop.eup %3018 }
0x1d39   :  { %2217 = vrot.lane.b32.xlu2 %v3019_v13, %s3205_s4 }
0x1d4a   :  { %v2146_v24 = vpop.permute.xlu1 %2145 }
0x1d4b   :  { %v2148_v19 = vmul.f32 %v2146_v24, %v2126_v28 }
0x1d4d   :  { %v4207_v23 = vsel %vm320_vm11, %v2148_v19, %v2083_v53 }
0x1d4e   :  { %2226 = vrot.lane.b32.xlu0 %v4207_v23, %s3207_s18  ;;  %v2294_v52 = vrot.slane %v4207_v23, 6 }
0x1d93   :  { %v2218_v60 = vpop.permute.xlu2 %2217 }
0x1d94   :  { %v2220_v6 = vmul.f32 %v2218_v60, %v2198_v9 }
0x1d96   :  { %v4214_v63 = vsel %vm246_vm12, %v2220_v6, %v2221_v51 }
0x1d97   :  { %v2299_v50 = vrot.slane %v4214_v63, 6 }
0x1d99   :  { %2300 = vrot.lane.b32.xlu1 %v2299_v50, %s3207_s18 }
0x1dc0   :  { %v2227_v31 = vpop.permute.xlu0 %2226 }
0x1dc1   :  { %2782 = vmatmul.msk.f32.vlgmr.msra.gmra.mxu0 %vm119_vm0, %v2227_v31 }
0x1e0b   :  { %v2301_v53 = vpop.permute.xlu1 %2300 }
0x1e0c   :  { %2784 = vmatmul.msk.f32.vlgmr.msra.gmra.mxu1 %vm119_vm0, %v2301_v53  ;;  %v2368_v53 = vrot.slane %v4214_v63, 2 }
0x1e3e   :  { %v2247_v37 = vpop.f32.mrf.mxu0 }
0x1e3f   :  { %v2251_v5 = vrot.slane %v2247_v37, 6 }
0x1e41   :  { %v2253_v21 = vadd.f32 %v2251_v5, %v4167_v16 }
0x1e43   :  { %3020 = vtanh.f32 %v2253_v21  ;;  %v2783_v0 = vmul.f32 -1.442695, %v2253_v21 }
0x1e45   :  { %3022 = vpow2.f32 %v2783_v0 }
0x1e49   :  { %v3021_v47 = vpop.eup %3020 }
0x1e4a   :  { %2279 = vrot.lane.b32.xlu2 %v3021_v47, %s3205_s4 }
0x1e4b   :  { %v3023_v26 = vpop.eup %3022 }
0x1e4c   :  { %v2257_v32 = vadd.f32 1.0, %v3023_v26 }
0x1e4e   :  { %3024 = vrcp.f32 %v2257_v32  ;;  %v2269_v14 = vand.u32 2147483648, %v2257_v32  ;;  %vm2263_vm4 = vweird.f32 %v2257_v32  ;;  %v2267_v20 = vand.u32 2147483647, %v2257_v32 }
0x1e50   :  { %v2270_v28 = vor.u32 1.1754944e-38, %v2269_v14  ;;  %vm2268_vm6 = vcmp.eq.f32.partialorder %v2267_v20, 8.507059e+37 }
0x1e54   :  { %v3025_v10 = vpop.eup %3024 }
0x1e55   :  { %v2259_v61 = vmul.f32 %v3025_v10, %v2257_v32  ;;  %vm2264_vm3 = vweird.f32 %v3025_v10 }
0x1e56   :  { %vm2265_vm5 = vmor %vm2263_vm4, %vm2264_vm3 }
0x1e57   :  { %v2260_v34 = vsub.f32 1.0, %v2259_v61 }
0x1e59   :  { %v2261_v49 = vmul.f32 %v3025_v10, %v2260_v34 }
0x1e5b   :  { %v2262_v17 = vadd.f32 %v3025_v10, %v2261_v49 }
0x1e5d   :  { %v2266_v11 = vsel %vm2265_vm5, %v3025_v10, %v2262_v17 }
0x1e5e   :  { %v2271_v62 = vsel %vm2268_vm6, %v2270_v28, %v2266_v11 }
0x1e5f   :  { %v2277_v54 = vmul.f32 %v2275_v8, %v2271_v62 }
0x1e89   :  { %v2321_v57 = vpop.f32.mrf.mxu1 }
0x1e8a   :  { %v2325_v1 = vrot.slane %v2321_v57, 4 }
0x1e8c   :  { %v2327_v18 = vadd.f32 %v2325_v1, %v3955_v55 }
0x1e8e   :  { %3026 = vtanh.f32 %v2327_v18  ;;  %v2785_v35 = vmul.f32 -1.442695, %v2327_v18 }
0x1e90   :  { %3028 = vpow2.f32 %v2785_v35 }
0x1e94   :  { %v3027_v48 = vpop.eup %3026 }
0x1e95   :  { %2353 = vrot.lane.b32.xlu0 %v3027_v48, %s3205_s4 }
0x1e96   :  { %v3029_v38 = vpop.eup %3028 }
0x1e97   :  { %v2331_v40 = vadd.f32 1.0, %v3029_v38 }
0x1e99   :  { %3030 = vrcp.f32 %v2331_v40  ;;  %v2343_v44 = vand.u32 2147483648, %v2331_v40  ;;  %vm2337_vm8 = vweird.f32 %v2331_v40  ;;  %v2341_v39 = vand.u32 2147483647, %v2331_v40 }
0x1e9b   :  { %v2344_v12 = vor.u32 1.1754944e-38, %v2343_v44  ;;  %vm2342_vm10 = vcmp.eq.f32.partialorder %v2341_v39, 8.507059e+37 }
0x1e9f   :  { %v3031_v58 = vpop.eup %3030 }
0x1ea0   :  { %v2333_v41 = vmul.f32 %v3031_v58, %v2331_v40  ;;  %vm2338_vm7 = vweird.f32 %v3031_v58 }
0x1ea1   :  { %vm2339_vm9 = vmor %vm2337_vm8, %vm2338_vm7 }
0x1ea2   :  { %v2334_v42 = vsub.f32 1.0, %v2333_v41 }
0x1ea4   :  { %v2280_v2 = vpop.permute.xlu2 %2279  ;;  %v2335_v43 = vmul.f32 %v3031_v58, %v2334_v42 }
0x1ea5   :  { %v2282_v46 = vmul.f32 %v2280_v2, %v2271_v62 }
0x1ea6   :  { %v2336_v27 = vadd.f32 %v3031_v58, %v2335_v43 }
0x1ea7   :  { %2284 = vrot.lane.b32.xlu1 %v2282_v46, %s3207_s18 }
0x1ea8   :  { %v2340_v3 = vsel %vm2339_vm9, %v3031_v58, %v2336_v27 }
0x1ea9   :  { %v2345_v9 = vsel %vm2342_vm10, %v2344_v12, %v2340_v3 }
0x1eaa   :  { %v2351_v59 = vmul.f32 %v2349_v56, %v2345_v9 }
0x1f07   :  { %v2354_v7 = vpop.permute.xlu0 %2353 }
0x1f08   :  { %v2356_v22 = vmul.f32 %v2354_v7, %v2345_v9 }
0x1f0a   :  { %2358 = vrot.lane.b32.xlu2 %v2356_v22, %s3207_s18 }
0x1f19   :  { %v2285_v15 = vpop.permute.xlu1 %2284 }
0x1f1a   :  { %v4236_v13 = vadd.f32 %v2285_v15, %v2277_v54 }
0x1f1c   :  { %3032 = vtanh.f32 %v4236_v13 }
0x1f22   :  { %v3033_v24 = vpop.eup %3032 }
0x1f23   :  { %2290 = vrot.lane.b32.xlu0 %v3033_v24, %s3205_s4 }
0x1f64   :  { %v2359_v19 = vpop.permute.xlu2 %2358 }
0x1f65   :  { %v4250_v60 = vadd.f32 %v2359_v19, %v2351_v59  ;;  %v4281_v59 = vsel %vm320_vm11, %v4236_v13, %v2275_v8 }
0x1f66   :  { %v2423_v19 = vrot.slane %v4281_v59, 6 }
0x1f67   :  { %3034 = vtanh.f32 %v4250_v60  ;;  %v4295_v45 = vsel %vm246_vm12, %v4250_v60, %v2349_v56 }
0x1f68   :  { %v2497_v8 = vrot.slane %v4295_v45, 2 }
0x1f6d   :  { %v3035_v51 = vpop.eup %3034 }
0x1f6e   :  { %2364 = vrot.lane.b32.xlu1 %v3035_v51, %s3205_s4 }
0x1f95   :  { %v2291_v6 = vpop.permute.xlu0 %2290 }
0x1f96   :  { %v2293_v50 = vmul.f32 %v2291_v6, %v2271_v62 }
0x1f98   :  { %v4257_v36 = vsel %vm320_vm11, %v2293_v50, %v2294_v52 }
0x1f99   :  { %v2373_v4 = vrot.slane %v4257_v36, 2  ;;  %v2442_v30 = vrot.slane %v4257_v36, 6 }
0x1f9b   :  { %2374 = vrot.lane.b32.xlu2 %v2373_v4, %s3207_s18 }
0x1fe0   :  { %v2365_v31 = vpop.permute.xlu1 %2364 }
0x1fe1   :  { %v2367_v37 = vmul.f32 %v2365_v31, %v2345_v9 }
0x1fe3   :  { %v4264_v5 = vsel %vm246_vm12, %v2367_v37, %v2368_v53 }
0x1fe4   :  { %v2447_v21 = vrot.slane %v4264_v5, 4 }
0x1fe6   :  { %2448 = vrot.lane.b32.xlu0 %v2447_v21, %s3207_s18 }
0x1ff5   :  { %v2375_v23 = vpop.permute.xlu2 %2374 }
0x1ff6   :  { %2786 = vmatmul.msk.f32.vlgmr.msrb.gmra.mxu2 %vm119_vm0, %v2375_v23 }
0x2058   :  { %v2449_v47 = vpop.permute.xlu0 %2448 }
0x2059   :  { %2788 = vmatmul.msk.f32.vlgmr.msrb.gmra.mxu3 %vm119_vm0, %v2449_v47  ;;  %v2516_v47 = vrot.slane %v4264_v5, 2 }
0x2079   :  { %v2395_v0 = vpop.f32.mrf.mxu2 }
0x207a   :  { %v2399_v26 = vrot.slane %v2395_v0, 4 }
0x207c   :  { %v2401_v32 = vadd.f32 %v2399_v26, %v4167_v16 }
0x207e   :  { %3036 = vtanh.f32 %v2401_v32  ;;  %v2787_v57 = vmul.f32 -1.442695, %v2401_v32 }
0x2080   :  { %3038 = vpow2.f32 %v2787_v57 }
0x2084   :  { %v3037_v63 = vpop.eup %3036 }
0x2085   :  { %2427 = vrot.lane.b32.xlu1 %v3037_v63, %s3205_s4 }
0x2086   :  { %v3039_v1 = vpop.eup %3038 }
0x2087   :  { %v2405_v18 = vadd.f32 1.0, %v3039_v1 }
0x2089   :  { %3040 = vrcp.f32 %v2405_v18  ;;  %v2417_v28 = vand.u32 2147483648, %v2405_v18  ;;  %vm2411_vm15 = vweird.f32 %v2405_v18  ;;  %v2415_v2 = vand.u32 2147483647, %v2405_v18 }
0x208b   :  { %v2418_v46 = vor.u32 1.1754944e-38, %v2417_v28  ;;  %vm2416_vm13 = vcmp.eq.f32.partialorder %v2415_v2, 8.507059e+37 }
0x208f   :  { %v3041_v34 = vpop.eup %3040 }
0x2090   :  { %v2407_v49 = vmul.f32 %v3041_v34, %v2405_v18  ;;  %vm2412_vm14 = vweird.f32 %v3041_v34 }
0x2091   :  { %vm2413_vm1 = vmor %vm2411_vm15, %vm2412_vm14 }
0x2092   :  { %v2408_v14 = vsub.f32 1.0, %v2407_v49 }
0x2094   :  { %v2409_v20 = vmul.f32 %v3041_v34, %v2408_v14 }
0x2096   :  { %v2410_v11 = vadd.f32 %v3041_v34, %v2409_v20 }
0x2098   :  { %v2414_v62 = vsel %vm2413_vm1, %v3041_v34, %v2410_v11 }
0x2099   :  { %v2419_v38 = vsel %vm2416_vm13, %v2418_v46, %v2414_v62 }
0x209a   :  { %v2425_v51 = vmul.f32 %v2423_v19, %v2419_v38 }
0x20dc   :  { %v2469_v10 = vpop.f32.mrf.mxu3 }
0x20dd   :  { %v2473_v61 = vrot.slane %v2469_v10, 6 }
0x20df   :  { %v2475_v48 = vadd.f32 %v2473_v61, %v3955_v55 }
0x20e1   :  { %3042 = vtanh.f32 %v2475_v48  ;;  %v2789_v58 = vmul.f32 -1.442695, %v2475_v48 }
0x20e3   :  { %3044 = vpow2.f32 %v2789_v58 }
0x20e7   :  { %v3043_v17 = vpop.eup %3042 }
0x20e8   :  { %2501 = vrot.lane.b32.xlu2 %v3043_v17, %s3205_s4 }
0x20e9   :  { %v3045_v41 = vpop.eup %3044 }
0x20ea   :  { %v2479_v42 = vadd.f32 1.0, %v3045_v41 }
0x20ec   :  { %3046 = vrcp.f32 %v2479_v42  ;;  %v2491_v12 = vand.u32 2147483648, %v2479_v42  ;;  %vm2485_vm3 = vweird.f32 %v2479_v42  ;;  %v2489_v9 = vand.u32 2147483647, %v2479_v42 }
0x20ee   :  { %v2492_v22 = vor.u32 1.1754944e-38, %v2491_v12  ;;  %vm2490_vm5 = vcmp.eq.f32.partialorder %v2489_v9, 8.507059e+37 }
0x20f2   :  { %v3047_v43 = vpop.eup %3046 }
0x20f3   :  { %v2481_v27 = vmul.f32 %v3047_v43, %v2479_v42  ;;  %vm2486_vm2 = vweird.f32 %v3047_v43 }
0x20f4   :  { %vm2487_vm4 = vmor %vm2485_vm3, %vm2486_vm2 }
0x20f5   :  { %v2482_v44 = vsub.f32 1.0, %v2481_v27 }
0x20f7   :  { %v2428_v35 = vpop.permute.xlu1 %2427  ;;  %v2483_v39 = vmul.f32 %v3047_v43, %v2482_v44 }
0x20f8   :  { %v2430_v40 = vmul.f32 %v2428_v35, %v2419_v38 }
0x20f9   :  { %v2484_v3 = vadd.f32 %v3047_v43, %v2483_v39 }
0x20fa   :  { %2432 = vrot.lane.b32.xlu0 %v2430_v40, %s3207_s18 }
0x20fb   :  { %v2488_v7 = vsel %vm2487_vm4, %v3047_v43, %v2484_v3 }
0x20fc   :  { %v2493_v15 = vsel %vm2490_vm5, %v2492_v22, %v2488_v7 }
0x20fd   :  { %v2499_v13 = vmul.f32 %v2497_v8, %v2493_v15 }
0x2142   :  { %v2502_v54 = vpop.permute.xlu2 %2501 }
0x2143   :  { %v2504_v24 = vmul.f32 %v2502_v54, %v2493_v15 }
0x2145   :  { %2506 = vrot.lane.b32.xlu1 %v2504_v24, %s3207_s18 }
0x216c   :  { %v2433_v6 = vpop.permute.xlu0 %2432 }
0x216d   :  { %v4286_v52 = vadd.f32 %v2433_v6, %v2425_v51 }
0x216f   :  { %3048 = vtanh.f32 %v4286_v52  ;;  %v2445_v51 = vsel %vm320_vm11, %v4286_v52, %v2423_v19 }
0x2170   :  { %v2571_v6 = vrot.slane %v2445_v51, 6 }
0x2175   :  { %v3049_v50 = vpop.eup %3048 }
0x2176   :  { %2438 = vrot.lane.b32.xlu2 %v3049_v50, %s3205_s4 }
0x21b7   :  { %v2507_v4 = vpop.permute.xlu1 %2506 }
0x21b8   :  { %v4300_v31 = vadd.f32 %v2507_v4, %v2499_v13 }
0x21ba   :  { %3050 = vtanh.f32 %v4300_v31 }
0x21c0   :  { %v3051_v53 = vpop.eup %3050 }
0x21c1   :  { %2512 = vrot.lane.b32.xlu0 %v3051_v53, %s3205_s4 }
0x21d0   :  { %v2439_v37 = vpop.permute.xlu2 %2438 }
0x21d1   :  { %v2441_v21 = vmul.f32 %v2439_v37, %v2419_v38  ;;  %v2519_v37 = vsel %vm246_vm12, %v4300_v31, %v2497_v8  ;;  %v2674_v8 = vld [vmem:[%s4376_s8 + $0x18] sm:$0xff]  ;;  %v2673_v31 = vld [vmem:[%s4376_s8 + $0x10] sm:$0xff] }
0x21d2   :  { %2697 = vmatpush.msra.mxu2 %v2674_v8 }
0x21d3   :  { %v4307_v56 = vsel %vm320_vm11, %v2441_v21, %v2442_v30  ;;  %v2641_v30 = vrot.slane %v2519_v37, 2 }
0x21d4   :  { %v2521_v60 = vrot.slane %v4307_v56, 4  ;;  %2698 = vmatpush.msra.mxu2 %v2673_v31 }
0x21d6   :  { %2522 = vrot.lane.b32.xlu1 %v2521_v60, %s3207_s18 }
0x2233   :  { %v2513_v23 = vpop.permute.xlu0 %2512 }
0x2234   :  { %v2515_v0 = vmul.f32 %v2513_v23, %v2493_v15  ;;  %v2590_v23 = vrot.slane %v4307_v56, 6 }
0x2236   :  { %v4314_v26 = vsel %vm246_vm12, %v2515_v0, %v2516_v47 }
0x2237   :  { %v2594_v32 = vrot.slane %v4314_v26, 2 }
0x2239   :  { %2595 = vrot.lane.b32.xlu2 %v2594_v32, %s3207_s18 }
0x2248   :  { %v2523_v36 = vpop.permute.xlu1 %2522 }
0x2249   :  { %2790 = vmatmul.msk.f32.vlgmr.msrb.gmra.mxu0 %vm119_vm0, %v2523_v36  ;;  %v2672_v36 = vld [vmem:[%s4376_s8 + $0x8] sm:$0xff]  ;;  %s3208_s8 = smov [#allocation12]  }
0x224a   :  { %2699 = vmatpush.msra.mxu2 %v2672_v36  ;;  %s2712_s2 = sshll.u32 %s3208_s8, 4  ;;  %s2713_s2 = int_to_ptr.vmem [resolvable:$true] %s2712_s2 }
0x224c   :  { %2700 = vmatpush.msra.mxu2 %v2671_v29 }
0x2293   :  { %v2596_v63 = vpop.permute.xlu2 %2595 }
0x2294   :  { %2792 = vmatmul.msk.f32.vlgmr.msrb.gmra.mxu1 %vm119_vm0, %v2596_v63 }
0x22c6   :  { %v2543_v57 = vpop.f32.mrf.mxu0 }
0x22c7   :  { %v2547_v1 = vrot.slane %v2543_v57, 2 }
0x22c9   :  { %v2549_v5 = vadd.f32 %v2547_v1, %v4167_v16 }
0x22cb   :  { %3052 = vtanh.f32 %v2549_v5  ;;  %v2791_v48 = vmul.f32 -1.442695, %v2549_v5 }
0x22d1   :  { %v3053_v18 = vpop.eup %3052 }
0x22d2   :  { %2575 = vrot.lane.b32.xlu0 %v3053_v18, %s3205_s4 }
0x2311   :  { %v2616_v10 = vpop.f32.mrf.mxu1 }
0x2312   :  { %v2619_v61 = vadd.f32 %v2616_v10, %v3955_v55  ;;  %v2811_v10 = vld [vmem:[%s4377_s9] ss:$0 sm:$0xff] }
0x2314   :  { %3054 = vtanh.f32 %v2619_v61  ;;  %v2793_v58 = vmul.f32 -1.442695, %v2619_v61 }
0x2315   :  { %3056 = vpow2.f32 %v2791_v48 }
0x231a   :  { %v3055_v34 = vpop.eup %3054 }
0x231b   :  { %2645 = vrot.lane.b32.xlu1 %v3055_v34, %s3205_s4  ;;  %v3057_v49 = vpop.eup %3056 }
0x231c   :  { %v2553_v17 = vadd.f32 1.0, %v3057_v49 }
0x231e   :  { %3058 = vrcp.f32 %v2553_v17  ;;  %v2565_v2 = vand.u32 2147483648, %v2553_v17  ;;  %vm2559_vm7 = vweird.f32 %v2553_v17  ;;  %v2563_v62 = vand.u32 2147483647, %v2553_v17 }
0x231f   :  { %3060 = vpow2.f32 %v2793_v58 }
0x2320   :  { %v2566_v46 = vor.u32 1.1754944e-38, %v2565_v2  ;;  %vm2564_vm9 = vcmp.eq.f32.partialorder %v2563_v62, 8.507059e+37 }
0x2324   :  { %v3059_v14 = vpop.eup %3058 }
0x2325   :  { %v2555_v20 = vmul.f32 %v3059_v14, %v2553_v17  ;;  %vm2560_vm6 = vweird.f32 %v3059_v14  ;;  %v3061_v41 = vpop.eup %3060 }
0x2326   :  { %vm2561_vm8 = vmor %vm2559_vm7, %vm2560_vm6  ;;  %v2623_v42 = vadd.f32 1.0, %v3061_v41 }
0x2327   :  { %v2556_v11 = vsub.f32 1.0, %v2555_v20 }
0x2328   :  { %3062 = vrcp.f32 %v2623_v42  ;;  %v2635_v12 = vand.u32 2147483648, %v2623_v42  ;;  %vm2629_vm14 = vweird.f32 %v2623_v42  ;;  %v2633_v9 = vand.u32 2147483647, %v2623_v42 }
0x2329   :  { %v2557_v16 = vmul.f32 %v3059_v14, %v2556_v11 }
0x232a   :  { %v2636_v22 = vor.u32 1.1754944e-38, %v2635_v12  ;;  %vm2634_vm1 = vcmp.eq.f32.partialorder %v2633_v9, 8.507059e+37 }
0x232b   :  { %v2558_v28 = vadd.f32 %v3059_v14, %v2557_v16 }
0x232d   :  { %v2562_v55 = vsel %vm2561_vm8, %v3059_v14, %v2558_v28 }
0x232e   :  { %v2567_v35 = vsel %vm2564_vm9, %v2566_v46, %v2562_v55  ;;  %v3063_v43 = vpop.eup %3062 }
0x232f   :  { %v2625_v27 = vmul.f32 %v3063_v43, %v2623_v42  ;;  %vm2630_vm10 = vweird.f32 %v3063_v43  ;;  %v2573_v50 = vmul.f32 %v2571_v6, %v2567_v35 }
0x2330   :  { %vm2631_vm15 = vmor %vm2629_vm14, %vm2630_vm10 }
0x2331   :  { %v2626_v44 = vsub.f32 1.0, %v2625_v27 }
0x2333   :  { %v2627_v39 = vmul.f32 %v3063_v43, %v2626_v44 }
0x2335   :  { %v2628_v3 = vadd.f32 %v3063_v43, %v2627_v39 }
0x2337   :  { %v2632_v7 = vsel %vm2631_vm15, %v3063_v43, %v2628_v3 }
0x2338   :  { %v2637_v15 = vsel %vm2634_vm1, %v2636_v22, %v2632_v7 }
0x2339   :  { %v2643_v59 = vmul.f32 %v2641_v30, %v2637_v15 }
0x2344   :  { %v2576_v38 = vpop.permute.xlu0 %2575 }
0x2345   :  { %v2578_v40 = vmul.f32 %v2576_v38, %v2567_v35 }
0x2347   :  { %2580 = vrot.lane.b32.xlu2 %v2578_v40, %s3207_s18 }
0x238d   :  { %v2646_v54 = vpop.permute.xlu1 %2645 }
0x238e   :  { %v2648_v24 = vmul.f32 %v2646_v54, %v2637_v15 }
0x2390   :  { %2650 = vrot.lane.b32.xlu0 %v2648_v24, %s3207_s18 }
0x23a1   :  { %v2581_v13 = vpop.permute.xlu2 %2580 }
0x23a2   :  { %v2583_v4 = vadd.f32 %v2581_v13, %v2573_v50 }
0x23a4   :  { %3064 = vtanh.f32 %v2583_v4 }
0x23aa   :  { %v3065_v53 = vpop.eup %3064 }
0x23ab   :  { %2586 = vrot.lane.b32.xlu1 %v3065_v53, %s3205_s4 }
0x2402   :  { %v2651_v21 = vpop.permute.xlu0 %2650 }
0x2403   :  { %v2653_v60 = vadd.f32 %v2651_v21, %v2643_v59 }
0x2405   :  { %3066 = vtanh.f32 %v2653_v60 }
0x240b   :  { %v3067_v19 = vpop.eup %3066 }
0x240c   :  { %2656 = vrot.lane.b32.xlu2 %v3067_v19, %s3205_s4 }
0x241d   :  { %v2587_v52 = vpop.permute.xlu1 %2586 }
0x241e   :  { %v2589_v47 = vmul.f32 %v2587_v52, %v2567_v35 }
0x2420   :  { %v2592_v0 = vsel %vm320_vm11, %v2589_v47, %v2590_v23  ;;  %vm2705_vm11 = vcmask 25600  }
0x2421   :  { %v2666_v45 = vmax.f32 %v3871_v25, %v2592_v0 }
0x2466   :  { %v2657_v25 = vpop.permute.xlu2 %2656 }
0x2467   :  { %v2659_v56 = vmul.f32 %v2657_v25, %v2637_v15 }
0x2469   :  { %v2661_v63 = vsel %vm246_vm12, %v2659_v56, %v2594_v32 }
0x246a   :  { %v2668_v57 = vrot.slane %v2661_v63, 2 }
0x246c   :  { %v2670_v1 = vmax.f32 %v2666_v45, %v2668_v57 }
0x246e   :  { %v2680_v5 = vrot.slane %v2670_v1, 6 }
0x2470   :  { %2681 = vrot.lane.b32.xlu0 %v2680_v5, %s3207_s18 }
0x24e2   :  { %v2682_v18 = vpop.permute.xlu0 %2681 }
0x24e3   :  { %2794 = vmatmul.msk.f32.vlgmr.msra.gmra.mxu2 %vm119_vm0, %v2682_v18 }
0x2566   :  { %v2702_v33 = vpop.f32.mrf.mxu2 }
0x2567   :  { %v2703_v26 = vadd.f32 %v2811_v10, %v2702_v33 }
0x2569   :  { %2706 = vst.msk [vmem:[#allocation12] sm:$0x3] %vm2705_vm11, %v2703_v26 }
0x256a   :  { %2717 = dma.vmem_to_hbm [thread:$0]  %s2713_s2, 32, %s2715_s14, [#allocation6]  }
0x256b   :  { %3194 = dma.done.wait [#allocation6], 32  }
0x256c   :  { %3195 = vsyncadd [#allocation6], 4294967264 }
0x256d   :  { %2722 = vsyncpa [#allocation5], 1 }
0x256e   :  { %2723 = vsyncpa [#allocation8], 1 }
0x256f   :  { %2724 = vsyncpa [#allocation11], 1 }
0x2570   :  { %2725 = vsyncpa [#allocation6], 1 }

</bundles_post_ra>
